<compile_context>
chip_gen: v7x
topology: tpu7x:2x2x1
jax: 0.10.0
libtpu: 0.0.40
codegen_flags: <defaults>
</compile_context>

<pallas_src>
import functools
import math

import jax
import jax.numpy as jnp
from jax.experimental import pallas as pl
from jax.experimental.pallas import tpu as pltpu


# ----------------------------------------------------------------------------
# Model constants (deterministic synthetic scale-down of the torchvision model)
# ----------------------------------------------------------------------------
NUM_CLASSES = 2        # incl. background (num_classes=2 default)
HIDDEN_LAYER = 16      # mask head hidden units (scaled down from 256)
REP_SIZE = 32          # TwoMLPHead representation size (scaled down from 1024)
C_FEAT = 16            # FPN feature channels (scaled down from 256)
C1 = 8                 # conv1 output channels
NUM_ANCHORS = 3
POOL = 7
PRE_NMS_TEST = 50      # nms[2]
POST_NMS_TEST = 2      # nms[3]

BBOX_XFORM_CLIP = math.log(1000.0 / 16.0)

# For a 3x3 / stride-2 / pad-1 conv read out of the parity-phase-split,
# zero top/left-haloed activation scratch:  tap index d -> (phase, slice offset).
_S2_TAP = ((1, 0), (0, 1), (1, 1))


# ----------------------------------------------------------------------------
# Fused backbone + RPN kernel (one grid step per image).
# Each conv layer = one MXU GEMM over an in-VMEM im2col slab.
# ----------------------------------------------------------------------------
def _backbone_rpn_kernel(x_ref, w1_ref, b1_ref, w2_ref, b2_ref, wf_ref, bf_ref,
                         w3_ref, b3_ref, wr_ref, br_ref, o_ref,
                         yb_ref, ic2_ref, fp_ref, ic3_ref, *, h2, w2):
    n_pix = h2 * w2

    # ---- conv1 (3x3, s2, relu): single GEMM over the phase-grouped host im2col ----
    y1 = jnp.dot(x_ref[...], w1_ref[...], preferred_element_type=jnp.float32)
    y1 = jnp.maximum(y1 + b1_ref[...], 0.0)                      # (4*n_pix, C1) f32

    # Scatter conv1's output into 4 parity-phase buffers with a zero top/left halo.
    # Row-wise copies (no reshape) keep this layout-trivial; halo rows stay zero.
    yb_ref[...] = jnp.zeros_like(yb_ref)
    for pi in range(2):
        for pj in range(2):
            base = (pi * 2 + pj) * n_pix
            for a in range(h2):
                yb_ref[pi, pj, 1 + a, 1:1 + w2, :] = (
                    y1[base + a * w2: base + (a + 1) * w2, :])

    # ---- conv2 (3x3, s2, relu): in-kernel im2col (contiguous tap slices) + 1 GEMM ----
    for di in range(3):
        rp, ro = _S2_TAP[di]
        for dj in range(3):
            cp, co = _S2_TAP[dj]
            t = di * 3 + dj
            ic2_ref[:, :, t * C1:(t + 1) * C1] = yb_ref[rp, cp, ro:ro + h2, co:co + w2, :]
    lhs2 = ic2_ref[...].reshape(n_pix, 9 * C1).astype(jnp.bfloat16)
    y2 = jnp.dot(lhs2, w2_ref[...], preferred_element_type=jnp.float32)
    y2 = jnp.maximum(y2 + b2_ref[...], 0.0).astype(jnp.bfloat16)  # (n_pix, C_FEAT)

    # ---- FPN 1x1 conv ----
    feat = jnp.dot(y2, wf_ref[...], preferred_element_type=jnp.float32) + bf_ref[...]
    o_ref[:, 0:C_FEAT] = feat                                     # f32 feature output

    # ---- RPN 3x3 conv (s1, pad1, relu): zero-haloed scratch + im2col + 1 GEMM ----
    fp_ref[...] = jnp.zeros_like(fp_ref)
    for a in range(h2):
        fp_ref[1 + a, 1:1 + w2, :] = feat[a * w2:(a + 1) * w2, :]
    for di in range(3):
        for dj in range(3):
            t = di * 3 + dj
            ic3_ref[:, :, t * C_FEAT:(t + 1) * C_FEAT] = fp_ref[di:di + h2, dj:dj + w2, :]
    lhs3 = ic3_ref[...].reshape(n_pix, 9 * C_FEAT).astype(jnp.bfloat16)
    t3 = jnp.dot(lhs3, w3_ref[...], preferred_element_type=jnp.float32)
    t3 = jnp.maximum(t3 + b3_ref[...], 0.0).astype(jnp.bfloat16)

    # ---- fused RPN objectness|box 1x1 heads (one GEMM) ----
    rpn = jnp.dot(t3, wr_ref[...], preferred_element_type=jnp.float32) + br_ref[...]
    o_ref[:, C_FEAT:C_FEAT + 5 * NUM_ANCHORS] = rpn


def backbone_rpn_forward(params, im2col1, h2, w2):
    """im2col1: (N, 4*h2*w2, 27) bf16 -> (N, h2*w2, C_FEAT + 5*A) f32."""
    N = im2col1.shape[0]
    n_pix = h2 * w2
    n_out = C_FEAT + 5 * NUM_ANCHORS
    kernel = functools.partial(_backbone_rpn_kernel, h2=h2, w2=w2)
    return pl.pallas_call(
        kernel,
        out_shape=jax.ShapeDtypeStruct((N, n_pix, n_out), jnp.float32),
        grid=(N,),
        in_specs=[
            pl.BlockSpec((None, 4 * n_pix, 27), lambda n: (n, 0, 0)),
            pl.BlockSpec((27, C1), lambda n: (0, 0)),
            pl.BlockSpec((1, C1), lambda n: (0, 0)),
            pl.BlockSpec((9 * C1, C_FEAT), lambda n: (0, 0)),
            pl.BlockSpec((1, C_FEAT), lambda n: (0, 0)),
            pl.BlockSpec((C_FEAT, C_FEAT), lambda n: (0, 0)),
            pl.BlockSpec((1, C_FEAT), lambda n: (0, 0)),
            pl.BlockSpec((9 * C_FEAT, C_FEAT), lambda n: (0, 0)),
            pl.BlockSpec((1, C_FEAT), lambda n: (0, 0)),
            pl.BlockSpec((C_FEAT, 5 * NUM_ANCHORS), lambda n: (0, 0)),
            pl.BlockSpec((1, 5 * NUM_ANCHORS), lambda n: (0, 0)),
        ],
        out_specs=pl.BlockSpec((None, n_pix, n_out), lambda n: (n, 0, 0)),
        scratch_shapes=[
            pltpu.VMEM((2, 2, h2 + 1, w2 + 1, C1), jnp.float32),   # conv1 phase buffers
            pltpu.VMEM((h2, w2, 9 * C1), jnp.float32),             # conv2 im2col
            pltpu.VMEM((h2 + 2, w2 + 2, C_FEAT), jnp.float32),     # padded RPN input
            pltpu.VMEM((h2, w2, 9 * C_FEAT), jnp.float32),         # rpn-conv im2col
        ],
        compiler_params=pltpu.CompilerParams(
            dimension_semantics=("parallel",),
            vmem_limit_bytes=32 * 1024 * 1024,
        ),
    )(im2col1, params['w1'], params['b1'], params['w2'], params['b2'],
      params['wfpn'], params['bfpn'], params['wrpn_conv'], params['brpn_conv'],
      params['wrpn_head'], params['brpn_head'])


# ----------------------------------------------------------------------------
# Fused ROI heads kernel: TwoMLPHead + FastRCNNPredictor and MaskRCNNPredictor
# in one pallas_call (two outputs); hidden activations stay in registers/VMEM.
# ----------------------------------------------------------------------------
def _heads_kernel(pb_ref, pm_ref, w6_ref, b6_ref, w7_ref, b7_ref, wp_ref, bp_ref,
                  wm1_ref, bm1_ref, wm2_ref, bm2_ref, box_ref, mask_ref):
    # box branch: fc6 -> relu -> fc7 -> relu -> (cls|bbox) predictor
    xb = pb_ref[...].astype(jnp.bfloat16)
    h = jnp.dot(xb, w6_ref[...], preferred_element_type=jnp.float32) + b6_ref[...]
    h = jnp.maximum(h, 0.0).astype(jnp.bfloat16)
    h = jnp.dot(h, w7_ref[...], preferred_element_type=jnp.float32) + b7_ref[...]
    h = jnp.maximum(h, 0.0).astype(jnp.bfloat16)
    box_ref[...] = jnp.dot(h, wp_ref[...], preferred_element_type=jnp.float32) + bp_ref[...]

    # mask branch: deconv(2x2,s2) GEMM + ReLU + 1x1 conv, fused via block-diag weight
    xm = pm_ref[...].astype(jnp.bfloat16)
    hm = jnp.dot(xm, wm1_ref[...], preferred_element_type=jnp.float32) + bm1_ref[...]
    hm = jnp.maximum(hm, 0.0).astype(jnp.bfloat16)
    mask_ref[...] = jnp.dot(hm, wm2_ref[...], preferred_element_type=jnp.float32) + bm2_ref[...]


def heads_forward(params, pooled_box, pooled_mask):
    N, R, dbox = pooled_box.shape
    M = pooled_mask.shape[1]
    return pl.pallas_call(
        _heads_kernel,
        out_shape=(jax.ShapeDtypeStruct((N, R, 5 * NUM_CLASSES), jnp.float32),
                   jax.ShapeDtypeStruct((N, M, 4 * NUM_CLASSES), jnp.float32)),
        grid=(N,),
        in_specs=[
            pl.BlockSpec((None, R, dbox), lambda n: (n, 0, 0)),
            pl.BlockSpec((None, M, C_FEAT), lambda n: (n, 0, 0)),
            pl.BlockSpec((dbox, REP_SIZE), lambda n: (0, 0)),
            pl.BlockSpec((1, REP_SIZE), lambda n: (0, 0)),
            pl.BlockSpec((REP_SIZE, REP_SIZE), lambda n: (0, 0)),
            pl.BlockSpec((1, REP_SIZE), lambda n: (0, 0)),
            pl.BlockSpec((REP_SIZE, 5 * NUM_CLASSES), lambda n: (0, 0)),
            pl.BlockSpec((1, 5 * NUM_CLASSES), lambda n: (0, 0)),
            pl.BlockSpec((C_FEAT, 4 * HIDDEN_LAYER), lambda n: (0, 0)),
            pl.BlockSpec((1, 4 * HIDDEN_LAYER), lambda n: (0, 0)),
            pl.BlockSpec((4 * HIDDEN_LAYER, 4 * NUM_CLASSES), lambda n: (0, 0)),
            pl.BlockSpec((1, 4 * NUM_CLASSES), lambda n: (0, 0)),
        ],
        out_specs=(pl.BlockSpec((None, R, 5 * NUM_CLASSES), lambda n: (n, 0, 0)),
                   pl.BlockSpec((None, M, 4 * NUM_CLASSES), lambda n: (n, 0, 0))),
        compiler_params=pltpu.CompilerParams(
            dimension_semantics=("parallel",),
            vmem_limit_bytes=32 * 1024 * 1024,
        ),
    )(pooled_box, pooled_mask,
      params['fc6_w'], params['fc6_b'], params['fc7_w'], params['fc7_b'],
      params['w_pred'], params['b_pred'],
      params['mask_w1'], params['mask_b1'], params['mask_w2'], params['mask_b2'])


# ----------------------------------------------------------------------------
# Host-side helpers (plain JAX glue)
# ----------------------------------------------------------------------------
def _build_conv1_im2col(x_nhwc, h2, w2):
    """One fused host op-chain (pad + strided gather): (N,H,W,3) -> (N, 4*h2*w2, 27).

    Rows are grouped by conv1 OUTPUT parity phase (pi, pj) so the kernel can
    scatter conv1's result into phase buffers with contiguous writes only.
    Row order inside a phase block: (a, b) row-major over the (h2, w2) grid;
    columns: taps (i, j) row-major, channel innermost (matches w.reshape(27, C1)).
    """
    N = x_nhwc.shape[0]
    xpad = jnp.pad(x_nhwc, ((0, 0), (1, 1), (1, 1), (0, 0)))
    blocks = []
    for pi in range(2):
        for pj in range(2):
            taps = []
            for i in range(3):
                for j in range(3):
                    r0 = 2 * pi + i
                    c0 = 2 * pj + j
                    taps.append(xpad[:, r0:r0 + 4 * (h2 - 1) + 1:4,
                                     c0:c0 + 4 * (w2 - 1) + 1:4, :])
            blk = jnp.concatenate(taps, axis=-1)                # (N, h2, w2, 27)
            blocks.append(blk.reshape(N, h2 * w2, 27))
    return jnp.concatenate(blocks, axis=1)                      # (N, 4*h2*w2, 27)


def decode_boxes(anchors, deltas):
    wa = anchors[:, 2] - anchors[:, 0]
    ha = anchors[:, 3] - anchors[:, 1]
    cxa = anchors[:, 0] + 0.5 * wa
    cya = anchors[:, 1] + 0.5 * ha
    dx, dy, dw, dh = deltas[:, 0], deltas[:, 1], deltas[:, 2], deltas[:, 3]
    cx = dx * wa + cxa
    cy = dy * ha + cya
    w = jnp.exp(jnp.minimum(dw, BBOX_XFORM_CLIP)) * wa
    h = jnp.exp(jnp.minimum(dh, BBOX_XFORM_CLIP)) * ha
    return jnp.stack([cx - 0.5 * w, cy - 0.5 * h, cx + 0.5 * w, cy + 0.5 * h], axis=-1)


def clip_boxes(boxes, w_img, h_img):
    lim = jnp.asarray([w_img, h_img, w_img, h_img], jnp.float32)
    return jnp.clip(boxes, 0.0, lim)


def roi_pool_single(feat_img, boxes, out_size, spatial_scale):
    # TODO(synk): RoIAlign (bilinear, sampling_ratio) is a data-dependent gather;
    # kept as a nearest-neighbor JAX gather at this tiny ROI count.
    Hf, Wf, _ = feat_img.shape
    b = boxes * spatial_scale
    x1, y1, x2, y2 = b[:, 0], b[:, 1], b[:, 2], b[:, 3]
    grid = (jnp.arange(out_size, dtype=jnp.float32) + 0.5) / out_size
    gx = x1[:, None] + (x2 - x1)[:, None] * grid[None, :]
    gy = y1[:, None] + (y2 - y1)[:, None] * grid[None, :]
    gxi = jnp.clip(jnp.floor(gx).astype(jnp.int32), 0, Wf - 1)
    gyi = jnp.clip(jnp.floor(gy).astype(jnp.int32), 0, Hf - 1)
    return feat_img[gyi[:, :, None], gxi[:, None, :], :]        # (R, out, out, C)


# ----------------------------------------------------------------------------
# Parameters (deterministic synthetic init; pre-packed for the kernels so no
# cast/reshape/concat/kron runs inside the jitted forward).
# ----------------------------------------------------------------------------
def init_params(key):
    keys = jax.random.split(key, 12)

    def w(k, shape, scale=0.05):
        return scale * jax.random.normal(k, shape, jnp.float32)

    c1_w = w(keys[0], (3, 3, 3, C1));                 c1_b = jnp.zeros((C1,), jnp.float32)
    c2_w = w(keys[1], (3, 3, C1, C_FEAT));            c2_b = jnp.zeros((C_FEAT,), jnp.float32)
    fpn_w = w(keys[2], (1, 1, C_FEAT, C_FEAT));       fpn_b = jnp.zeros((C_FEAT,), jnp.float32)
    rpn_conv_w = w(keys[3], (3, 3, C_FEAT, C_FEAT));  rpn_conv_b = jnp.zeros((C_FEAT,), jnp.float32)
    rpn_cls_w = w(keys[4], (1, 1, C_FEAT, NUM_ANCHORS))
    rpn_cls_b = jnp.zeros((NUM_ANCHORS,), jnp.float32)
    rpn_box_w = w(keys[5], (1, 1, C_FEAT, 4 * NUM_ANCHORS))
    rpn_box_b = jnp.zeros((4 * NUM_ANCHORS,), jnp.float32)
    fc6_w = w(keys[6], (POOL * POOL * C_FEAT, REP_SIZE)); fc6_b = jnp.zeros((REP_SIZE,), jnp.float32)
    fc7_w = w(keys[7], (REP_SIZE, REP_SIZE));             fc7_b = jnp.zeros((REP_SIZE,), jnp.float32)
    cls_w = w(keys[8], (REP_SIZE, NUM_CLASSES));          cls_b = jnp.zeros((NUM_CLASSES,), jnp.float32)
    bbox_w = w(keys[9], (REP_SIZE, NUM_CLASSES * 4));     bbox_b = jnp.zeros((NUM_CLASSES * 4,), jnp.float32)
    mask_deconv_w = w(keys[10], (C_FEAT, 2 * 2 * HIDDEN_LAYER))
    mask_deconv_b = jnp.zeros((2 * 2 * HIDDEN_LAYER,), jnp.float32)
    mask_fcn_w = w(keys[11], (HIDDEN_LAYER, NUM_CLASSES))
    mask_fcn_b = jnp.zeros((NUM_CLASSES,), jnp.float32)

    bf16 = jnp.bfloat16
    p = {
        # backbone / RPN (weights pre-flattened to GEMM form, bf16)
        'w1': c1_w.reshape(9 * 3, C1).astype(bf16),
        'b1': c1_b.reshape(1, C1),
        'w2': c2_w.reshape(9 * C1, C_FEAT).astype(bf16),
        'b2': c2_b.reshape(1, C_FEAT),
        'wfpn': fpn_w.reshape(C_FEAT, C_FEAT).astype(bf16),
        'bfpn': fpn_b.reshape(1, C_FEAT),
        'wrpn_conv': rpn_conv_w.reshape(9 * C_FEAT, C_FEAT).astype(bf16),
        'brpn_conv': rpn_conv_b.reshape(1, C_FEAT),
        'wrpn_head': jnp.concatenate(
            [rpn_cls_w.reshape(C_FEAT, NUM_ANCHORS),
             rpn_box_w.reshape(C_FEAT, 4 * NUM_ANCHORS)], axis=1).astype(bf16),
        'brpn_head': jnp.concatenate([rpn_cls_b, rpn_box_b]).reshape(1, 5 * NUM_ANCHORS),
        # box head (fc6 -> fc7 -> fused cls|bbox predictor)
        'fc6_w': fc6_w.astype(bf16), 'fc6_b': fc6_b.reshape(1, REP_SIZE),
        'fc7_w': fc7_w.astype(bf16), 'fc7_b': fc7_b.reshape(1, REP_SIZE),
        'w_pred': jnp.concatenate([cls_w, bbox_w], axis=1).astype(bf16),
        'b_pred': jnp.concatenate([cls_b, bbox_b]).reshape(1, 5 * NUM_CLASSES),
        # mask head (deconv GEMM + block-diagonal 1x1 conv weight)
        'mask_w1': mask_deconv_w.astype(bf16),
        'mask_b1': mask_deconv_b.reshape(1, 4 * HIDDEN_LAYER),
        'mask_w2': jnp.kron(jnp.eye(4, dtype=jnp.float32), mask_fcn_w).astype(bf16),
        'mask_b2': jnp.tile(mask_fcn_b, 4).reshape(1, 4 * NUM_CLASSES),
    }
    return p


# ----------------------------------------------------------------------------
# Forward pass (inference path only; training-loss path not implemented)
# ----------------------------------------------------------------------------
def faster_rcnn_forward(params, images_nchw):
    # TODO(synk): GeneralizedRCNNTransform (resize + pretrained-stat normalization)
    # is omitted — no pretrained statistics in this synthetic setup.
    N, _, H_img, W_img = images_nchw.shape
    assert H_img % 4 == 0 and W_img % 4 == 0
    h2, w2 = H_img // 4, W_img // 4     # feature-map size after two stride-2 convs
    stride = 4

    x = jnp.transpose(images_nchw, (0, 2, 3, 1)).astype(jnp.float32)   # NHWC
    im2col1 = _build_conv1_im2col(x, h2, w2).astype(jnp.bfloat16)      # (N, 4*h2*w2, 27)

    # --- fused backbone + FPN + RPN (single pallas_call, VMEM-resident chain) ---
    out = backbone_rpn_forward(params, im2col1, h2, w2)                # (N, h2*w2, 31)
    feat = out[..., :C_FEAT].reshape(N, h2, w2, C_FEAT)
    rpn = out[..., C_FEAT:]
    obj_flat = rpn[..., :NUM_ANCHORS].reshape(N, h2 * w2 * NUM_ANCHORS)
    deltas_flat = rpn[..., NUM_ANCHORS:].reshape(N, h2 * w2 * NUM_ANCHORS, 4)

    # anchors in image coordinates
    sizes = jnp.array([8.0, 16.0, 32.0], jnp.float32)
    ys = (jnp.arange(h2, dtype=jnp.float32) + 0.5) * stride
    xs = (jnp.arange(w2, dtype=jnp.float32) + 0.5) * stride
    cy, cx = jnp.meshgrid(ys, xs, indexing='ij')
    cy = cy[..., None]
    cx = cx[..., None]
    sz = sizes[None, None, :]
    anchors = jnp.stack([cx - sz / 2, cy - sz / 2, cx + sz / 2, cy + sz / 2], axis=-1)
    anchors = anchors.reshape(-1, 4)

    # --- proposal selection ---
    pre_nms = min(PRE_NMS_TEST, obj_flat.shape[1])
    _, top_idx = jax.lax.top_k(obj_flat, pre_nms)
    # TODO(synk): per-image NMS is sequential & data-dependent; proposals are the
    # top post_nms_top_n_test-scoring anchors directly.
    prop_idx = top_idx[:, :POST_NMS_TEST]                               # (N, R)
    prop_deltas = jnp.take_along_axis(deltas_flat, prop_idx[..., None], axis=1)
    prop_anchors = anchors[prop_idx]
    proposals = jax.vmap(decode_boxes)(prop_anchors, prop_deltas)
    proposals = clip_boxes(proposals, float(W_img), float(H_img))       # (N, R, 4)
    R = POST_NMS_TEST

    # --- RoI pooling + fused box/mask heads (single pallas_call, two outputs) ---
    pooled = jax.vmap(lambda fm, bx: roi_pool_single(fm, bx, POOL, 1.0 / stride))(
        feat, proposals)                                                # (N, R, 7, 7, C)
    pooled_box = pooled.reshape(N, R, POOL * POOL * C_FEAT)
    pooled_mask = pooled.reshape(N, R * POOL * POOL, C_FEAT)
    box_out, mask_out = heads_forward(params, pooled_box, pooled_mask)

    head_out = box_out.reshape(N * R, 5 * NUM_CLASSES)
    cls_logits = head_out[:, :NUM_CLASSES]
    bbox_pred = head_out[:, NUM_CLASSES:]

    probs = jax.nn.softmax(cls_logits, axis=-1)
    fg_probs = probs[:, 1:]
    labels_flat = jnp.argmax(fg_probs, axis=-1) + 1                     # (N*R,)
    scores_flat = jnp.max(fg_probs, axis=-1)

    bbox_pred_c = bbox_pred.reshape(N * R, NUM_CLASSES, 4)
    sel_deltas = jnp.take_along_axis(
        bbox_pred_c, labels_flat[:, None, None], axis=1).squeeze(1)     # (N*R, 4)
    boxes_flat = decode_boxes(proposals.reshape(N * R, 4), sel_deltas)
    boxes_flat = clip_boxes(boxes_flat, float(W_img), float(H_img))

    # mask logits: the 2x2 deconv interleave is resolved on the tiny per-class logits
    mask_logits = mask_out.reshape(N * R, POOL, POOL, 2, 2, NUM_CLASSES)
    mask_sel = jnp.take_along_axis(
        mask_logits, labels_flat[:, None, None, None, None, None], axis=-1).squeeze(-1)
    mask_sel = mask_sel.transpose(0, 1, 3, 2, 4).reshape(N * R, 2 * POOL, 2 * POOL)
    masks = jax.nn.sigmoid(mask_sel).reshape(N, R, 2 * POOL, 2 * POOL)

    return {
        'boxes': boxes_flat.reshape(N, R, 4),
        'labels': labels_flat.reshape(N, R),
        'scores': scores_flat.reshape(N, R),
        'masks': masks,
    }


if __name__ == "__main__":
    key = jax.random.PRNGKey(0)
    pkey, xkey = jax.random.split(key)
    params = init_params(pkey)
    images = jax.random.uniform(xkey, (2, 3, 32, 32), jnp.float32)   # NCHW, like PyTorch
    fwd = jax.jit(functools.partial(faster_rcnn_forward, params))
    out = fwd(images)
    jax.block_until_ready(out)
    assert out['boxes'].shape == (2, POST_NMS_TEST, 4)
    assert out['labels'].shape == (2, POST_NMS_TEST)
    assert out['scores'].shape == (2, POST_NMS_TEST)
    assert out['masks'].shape == (2, POST_NMS_TEST, 14, 14)
    print("KERNEL_OK")
</pallas_src>

<mosaic_0001>
module attributes {stable_mosaic.version = 11 : i64} {
  func.func @_backbone_rpn_kernel(%arg0: i32, %arg1: memref<1x256x27xbf16, #tpu.memory_space<vmem>>, %arg2: memref<27x8xbf16, #tpu.memory_space<vmem>>, %arg3: memref<1x8xf32, #tpu.memory_space<vmem>>, %arg4: memref<72x16xbf16, #tpu.memory_space<vmem>>, %arg5: memref<1x16xf32, #tpu.memory_space<vmem>>, %arg6: memref<16x16xbf16, #tpu.memory_space<vmem>>, %arg7: memref<1x16xf32, #tpu.memory_space<vmem>>, %arg8: memref<144x16xbf16, #tpu.memory_space<vmem>>, %arg9: memref<1x16xf32, #tpu.memory_space<vmem>>, %arg10: memref<16x15xbf16, #tpu.memory_space<vmem>>, %arg11: memref<1x15xf32, #tpu.memory_space<vmem>>, %arg12: memref<1x64x31xf32, #tpu.memory_space<vmem>>, %arg13: memref<2x2x9x9x8xf32, #tpu.memory_space<vmem>>, %arg14: memref<8x8x72xf32, #tpu.memory_space<vmem>>, %arg15: memref<10x10x16xf32, #tpu.memory_space<vmem>>, %arg16: memref<8x8x144xf32, #tpu.memory_space<vmem>>) attributes {dimension_semantics = [#tpu.dimension_semantics<parallel>], iteration_bounds = array<i64: 2>, scalar_prefetch = 0 : i64, scratch_operands = 4 : i64, tpu.core_type = #tpu.core_type<tc>, window_params = [{transform_indices = @transform_0, window_bounds = array<i64: 1, 256, 27>}, {pipeline_mode = #tpu.pipeline_mode<synchronous>, transform_indices = @transform_1, window_bounds = array<i64: 27, 8>}, {pipeline_mode = #tpu.pipeline_mode<synchronous>, transform_indices = @transform_2, window_bounds = array<i64: 1, 8>}, {pipeline_mode = #tpu.pipeline_mode<synchronous>, transform_indices = @transform_3, window_bounds = array<i64: 72, 16>}, {pipeline_mode = #tpu.pipeline_mode<synchronous>, transform_indices = @transform_4, window_bounds = array<i64: 1, 16>}, {pipeline_mode = #tpu.pipeline_mode<synchronous>, transform_indices = @transform_5, window_bounds = array<i64: 16, 16>}, {pipeline_mode = #tpu.pipeline_mode<synchronous>, transform_indices = @transform_6, window_bounds = array<i64: 1, 16>}, {pipeline_mode = #tpu.pipeline_mode<synchronous>, transform_indices = @transform_7, window_bounds = array<i64: 144, 16>}, {pipeline_mode = #tpu.pipeline_mode<synchronous>, transform_indices = @transform_8, window_bounds = array<i64: 1, 16>}, {pipeline_mode = #tpu.pipeline_mode<synchronous>, transform_indices = @transform_9, window_bounds = array<i64: 16, 15>}, {pipeline_mode = #tpu.pipeline_mode<synchronous>, transform_indices = @transform_10, window_bounds = array<i64: 1, 15>}, {transform_indices = @transform_11, window_bounds = array<i64: 1, 64, 31>}]} {
    %c0 = arith.constant 0 : index
    %c0_0 = arith.constant 0 : index
    %c0_1 = arith.constant 0 : index
    %0 = vector.load %arg1[%c0, %c0_0, %c0_1] : memref<1x256x27xbf16, #tpu.memory_space<vmem>>, vector<1x256x27xbf16>
    %1 = vector.shape_cast %0 : vector<1x256x27xbf16> to vector<256x27xbf16>
    %c0_2 = arith.constant 0 : index
    %c0_3 = arith.constant 0 : index
    %2 = vector.load %arg2[%c0_2, %c0_3] : memref<27x8xbf16, #tpu.memory_space<vmem>>, vector<27x8xbf16>
    %cst = arith.constant dense<0.000000e+00> : vector<256x8xf32>
    %3 = tpu.matmul %1, %2, %cst {dimension_numbers = #tpu.dot_dimension_numbers<[1], [0], [0], [1], [0, 0, 1, 1], [], []>} : vector<256x27xbf16>, vector<27x8xbf16>, vector<256x8xf32> -> vector<256x8xf32>
    %c0_4 = arith.constant 0 : index
    %c0_5 = arith.constant 0 : index
    %4 = vector.load %arg3[%c0_4, %c0_5] : memref<1x8xf32, #tpu.memory_space<vmem>>, vector<1x8xf32>
    %5 = vector.broadcast %4 : vector<1x8xf32> to vector<256x8xf32>
    %6 = arith.addf %3, %5 : vector<256x8xf32>
    %cst_6 = arith.constant 0.000000e+00 : f32
    %7 = vector.broadcast %cst_6 : f32 to vector<256x8xf32>
    %8 = arith.maximumf %6, %7 : vector<256x8xf32>
    %cst_7 = arith.constant 0.000000e+00 : f32
    %9 = vector.broadcast %cst_7 : f32 to vector<2x2x9x9x8xf32>
    %c0_8 = arith.constant 0 : index
    %c0_9 = arith.constant 0 : index
    %c0_10 = arith.constant 0 : index
    %c0_11 = arith.constant 0 : index
    %c0_12 = arith.constant 0 : index
    %10 = vector.load %arg13[%c0_8, %c0_9, %c0_10, %c0_11, %c0_12] : memref<2x2x9x9x8xf32, #tpu.memory_space<vmem>>, vector<2x2x9x9x8xf32>
    tpu.vector_store %arg13[%c0_8, %c0_9, %c0_10, %c0_11, %c0_12], %9 {strides = array<i32>} : memref<2x2x9x9x8xf32, #tpu.memory_space<vmem>>, vector<2x2x9x9x8xf32>,
    %11 = vector.extract_strided_slice %8 {offsets = [0, 0], sizes = [8, 8], strides = [1, 1]} : vector<256x8xf32> to vector<8x8xf32>
    %c0_13 = arith.constant 0 : index
    %c0_14 = arith.constant 0 : index
    %c1 = arith.constant 1 : index
    %c1_15 = arith.constant 1 : index
    %c0_16 = arith.constant 0 : index
    %12 = vector.load %arg13[%c0_13, %c0_14, %c1, %c1_15, %c0_16] : memref<2x2x9x9x8xf32, #tpu.memory_space<vmem>>, vector<1x1x1x8x8xf32>
    %13 = vector.shape_cast %12 : vector<1x1x1x8x8xf32> to vector<8x8xf32>
    %14 = vector.shape_cast %11 : vector<8x8xf32> to vector<1x1x1x8x8xf32>
    tpu.vector_store %arg13[%c0_13, %c0_14, %c1, %c1_15, %c0_16], %14 {strides = array<i32>} : memref<2x2x9x9x8xf32, #tpu.memory_space<vmem>>, vector<1x1x1x8x8xf32>,
    %15 = vector.extract_strided_slice %8 {offsets = [8, 0], sizes = [8, 8], strides = [1, 1]} : vector<256x8xf32> to vector<8x8xf32>
    %c0_17 = arith.constant 0 : index
    %c0_18 = arith.constant 0 : index
    %c2 = arith.constant 2 : index
    %c1_19 = arith.constant 1 : index
    %c0_20 = arith.constant 0 : index
    %16 = vector.load %arg13[%c0_17, %c0_18, %c2, %c1_19, %c0_20] : memref<2x2x9x9x8xf32, #tpu.memory_space<vmem>>, vector<1x1x1x8x8xf32>
    %17 = vector.shape_cast %16 : vector<1x1x1x8x8xf32> to vector<8x8xf32>
    %18 = vector.shape_cast %15 : vector<8x8xf32> to vector<1x1x1x8x8xf32>
    tpu.vector_store %arg13[%c0_17, %c0_18, %c2, %c1_19, %c0_20], %18 {strides = array<i32>} : memref<2x2x9x9x8xf32, #tpu.memory_space<vmem>>, vector<1x1x1x8x8xf32>,
    %19 = vector.extract_strided_slice %8 {offsets = [16, 0], sizes = [8, 8], strides = [1, 1]} : vector<256x8xf32> to vector<8x8xf32>
    %c0_21 = arith.constant 0 : index
    %c0_22 = arith.constant 0 : index
    %c3 = arith.constant 3 : index
    %c1_23 = arith.constant 1 : index
    %c0_24 = arith.constant 0 : index
    %20 = vector.load %arg13[%c0_21, %c0_22, %c3, %c1_23, %c0_24] : memref<2x2x9x9x8xf32, #tpu.memory_space<vmem>>, vector<1x1x1x8x8xf32>
    %21 = vector.shape_cast %20 : vector<1x1x1x8x8xf32> to vector<8x8xf32>
    %22 = vector.shape_cast %19 : vector<8x8xf32> to vector<1x1x1x8x8xf32>
    tpu.vector_store %arg13[%c0_21, %c0_22, %c3, %c1_23, %c0_24], %22 {strides = array<i32>} : memref<2x2x9x9x8xf32, #tpu.memory_space<vmem>>, vector<1x1x1x8x8xf32>,
    %23 = vector.extract_strided_slice %8 {offsets = [24, 0], sizes = [8, 8], strides = [1, 1]} : vector<256x8xf32> to vector<8x8xf32>
    %c0_25 = arith.constant 0 : index
    %c0_26 = arith.constant 0 : index
    %c4 = arith.constant 4 : index
    %c1_27 = arith.constant 1 : index
    %c0_28 = arith.constant 0 : index
    %24 = vector.load %arg13[%c0_25, %c0_26, %c4, %c1_27, %c0_28] : memref<2x2x9x9x8xf32, #tpu.memory_space<vmem>>, vector<1x1x1x8x8xf32>
    %25 = vector.shape_cast %24 : vector<1x1x1x8x8xf32> to vector<8x8xf32>
    %26 = vector.shape_cast %23 : vector<8x8xf32> to vector<1x1x1x8x8xf32>
    tpu.vector_store %arg13[%c0_25, %c0_26, %c4, %c1_27, %c0_28], %26 {strides = array<i32>} : memref<2x2x9x9x8xf32, #tpu.memory_space<vmem>>, vector<1x1x1x8x8xf32>,
    %27 = vector.extract_strided_slice %8 {offsets = [32, 0], sizes = [8, 8], strides = [1, 1]} : vector<256x8xf32> to vector<8x8xf32>
    %c0_29 = arith.constant 0 : index
    %c0_30 = arith.constant 0 : index
    %c5 = arith.constant 5 : index
    %c1_31 = arith.constant 1 : index
    %c0_32 = arith.constant 0 : index
    %28 = vector.load %arg13[%c0_29, %c0_30, %c5, %c1_31, %c0_32] : memref<2x2x9x9x8xf32, #tpu.memory_space<vmem>>, vector<1x1x1x8x8xf32>
    %29 = vector.shape_cast %28 : vector<1x1x1x8x8xf32> to vector<8x8xf32>
    %30 = vector.shape_cast %27 : vector<8x8xf32> to vector<1x1x1x8x8xf32>
    tpu.vector_store %arg13[%c0_29, %c0_30, %c5, %c1_31, %c0_32], %30 {strides = array<i32>} : memref<2x2x9x9x8xf32, #tpu.memory_space<vmem>>, vector<1x1x1x8x8xf32>,
    %31 = vector.extract_strided_slice %8 {offsets = [40, 0], sizes = [8, 8], strides = [1, 1]} : vector<256x8xf32> to vector<8x8xf32>
    %c0_33 = arith.constant 0 : index
    %c0_34 = arith.constant 0 : index
    %c6 = arith.constant 6 : index
    %c1_35 = arith.constant 1 : index
    %c0_36 = arith.constant 0 : index
    %32 = vector.load %arg13[%c0_33, %c0_34, %c6, %c1_35, %c0_36] : memref<2x2x9x9x8xf32, #tpu.memory_space<vmem>>, vector<1x1x1x8x8xf32>
    %33 = vector.shape_cast %32 : vector<1x1x1x8x8xf32> to vector<8x8xf32>
    %34 = vector.shape_cast %31 : vector<8x8xf32> to vector<1x1x1x8x8xf32>
    tpu.vector_store %arg13[%c0_33, %c0_34, %c6, %c1_35, %c0_36], %34 {strides = array<i32>} : memref<2x2x9x9x8xf32, #tpu.memory_space<vmem>>, vector<1x1x1x8x8xf32>,
    %35 = vector.extract_strided_slice %8 {offsets = [48, 0], sizes = [8, 8], strides = [1, 1]} : vector<256x8xf32> to vector<8x8xf32>
    %c0_37 = arith.constant 0 : index
    %c0_38 = arith.constant 0 : index
    %c7 = arith.constant 7 : index
    %c1_39 = arith.constant 1 : index
    %c0_40 = arith.constant 0 : index
    %36 = vector.load %arg13[%c0_37, %c0_38, %c7, %c1_39, %c0_40] : memref<2x2x9x9x8xf32, #tpu.memory_space<vmem>>, vector<1x1x1x8x8xf32>
    %37 = vector.shape_cast %36 : vector<1x1x1x8x8xf32> to vector<8x8xf32>
    %38 = vector.shape_cast %35 : vector<8x8xf32> to vector<1x1x1x8x8xf32>
    tpu.vector_store %arg13[%c0_37, %c0_38, %c7, %c1_39, %c0_40], %38 {strides = array<i32>} : memref<2x2x9x9x8xf32, #tpu.memory_space<vmem>>, vector<1x1x1x8x8xf32>,
    %39 = vector.extract_strided_slice %8 {offsets = [56, 0], sizes = [8, 8], strides = [1, 1]} : vector<256x8xf32> to vector<8x8xf32>
    %c0_41 = arith.constant 0 : index
    %c0_42 = arith.constant 0 : index
    %c8 = arith.constant 8 : index
    %c1_43 = arith.constant 1 : index
    %c0_44 = arith.constant 0 : index
    %40 = vector.load %arg13[%c0_41, %c0_42, %c8, %c1_43, %c0_44] : memref<2x2x9x9x8xf32, #tpu.memory_space<vmem>>, vector<1x1x1x8x8xf32>
    %41 = vector.shape_cast %40 : vector<1x1x1x8x8xf32> to vector<8x8xf32>
    %42 = vector.shape_cast %39 : vector<8x8xf32> to vector<1x1x1x8x8xf32>
    tpu.vector_store %arg13[%c0_41, %c0_42, %c8, %c1_43, %c0_44], %42 {strides = array<i32>} : memref<2x2x9x9x8xf32, #tpu.memory_space<vmem>>, vector<1x1x1x8x8xf32>,
    %43 = vector.extract_strided_slice %8 {offsets = [64, 0], sizes = [8, 8], strides = [1, 1]} : vector<256x8xf32> to vector<8x8xf32>
    %c0_45 = arith.constant 0 : index
    %c1_46 = arith.constant 1 : index
    %c1_47 = arith.constant 1 : index
    %c1_48 = arith.constant 1 : index
    %c0_49 = arith.constant 0 : index
    %44 = vector.load %arg13[%c0_45, %c1_46, %c1_47, %c1_48, %c0_49] : memref<2x2x9x9x8xf32, #tpu.memory_space<vmem>>, vector<1x1x1x8x8xf32>
    %45 = vector.shape_cast %44 : vector<1x1x1x8x8xf32> to vector<8x8xf32>
    %46 = vector.shape_cast %43 : vector<8x8xf32> to vector<1x1x1x8x8xf32>
    tpu.vector_store %arg13[%c0_45, %c1_46, %c1_47, %c1_48, %c0_49], %46 {strides = array<i32>} : memref<2x2x9x9x8xf32, #tpu.memory_space<vmem>>, vector<1x1x1x8x8xf32>,
    %47 = vector.extract_strided_slice %8 {offsets = [72, 0], sizes = [8, 8], strides = [1, 1]} : vector<256x8xf32> to vector<8x8xf32>
    %c0_50 = arith.constant 0 : index
    %c1_51 = arith.constant 1 : index
    %c2_52 = arith.constant 2 : index
    %c1_53 = arith.constant 1 : index
    %c0_54 = arith.constant 0 : index
    %48 = vector.load %arg13[%c0_50, %c1_51, %c2_52, %c1_53, %c0_54] : memref<2x2x9x9x8xf32, #tpu.memory_space<vmem>>, vector<1x1x1x8x8xf32>
    %49 = vector.shape_cast %48 : vector<1x1x1x8x8xf32> to vector<8x8xf32>
    %50 = vector.shape_cast %47 : vector<8x8xf32> to vector<1x1x1x8x8xf32>
    tpu.vector_store %arg13[%c0_50, %c1_51, %c2_52, %c1_53, %c0_54], %50 {strides = array<i32>} : memref<2x2x9x9x8xf32, #tpu.memory_space<vmem>>, vector<1x1x1x8x8xf32>,
    %51 = vector.extract_strided_slice %8 {offsets = [80, 0], sizes = [8, 8], strides = [1, 1]} : vector<256x8xf32> to vector<8x8xf32>
    %c0_55 = arith.constant 0 : index
    %c1_56 = arith.constant 1 : index
    %c3_57 = arith.constant 3 : index
    %c1_58 = arith.constant 1 : index
    %c0_59 = arith.constant 0 : index
    %52 = vector.load %arg13[%c0_55, %c1_56, %c3_57, %c1_58, %c0_59] : memref<2x2x9x9x8xf32, #tpu.memory_space<vmem>>, vector<1x1x1x8x8xf32>
    %53 = vector.shape_cast %52 : vector<1x1x1x8x8xf32> to vector<8x8xf32>
    %54 = vector.shape_cast %51 : vector<8x8xf32> to vector<1x1x1x8x8xf32>
    tpu.vector_store %arg13[%c0_55, %c1_56, %c3_57, %c1_58, %c0_59], %54 {strides = array<i32>} : memref<2x2x9x9x8xf32, #tpu.memory_space<vmem>>, vector<1x1x1x8x8xf32>,
    %55 = vector.extract_strided_slice %8 {offsets = [88, 0], sizes = [8, 8], strides = [1, 1]} : vector<256x8xf32> to vector<8x8xf32>
    %c0_60 = arith.constant 0 : index
    %c1_61 = arith.constant 1 : index
    %c4_62 = arith.constant 4 : index
    %c1_63 = arith.constant 1 : index
    %c0_64 = arith.constant 0 : index
    %56 = vector.load %arg13[%c0_60, %c1_61, %c4_62, %c1_63, %c0_64] : memref<2x2x9x9x8xf32, #tpu.memory_space<vmem>>, vector<1x1x1x8x8xf32>
    %57 = vector.shape_cast %56 : vector<1x1x1x8x8xf32> to vector<8x8xf32>
    %58 = vector.shape_cast %55 : vector<8x8xf32> to vector<1x1x1x8x8xf32>
    tpu.vector_store %arg13[%c0_60, %c1_61, %c4_62, %c1_63, %c0_64], %58 {strides = array<i32>} : memref<2x2x9x9x8xf32, #tpu.memory_space<vmem>>, vector<1x1x1x8x8xf32>,
    %59 = vector.extract_strided_slice %8 {offsets = [96, 0], sizes = [8, 8], strides = [1, 1]} : vector<256x8xf32> to vector<8x8xf32>
    %c0_65 = arith.constant 0 : index
    %c1_66 = arith.constant 1 : index
    %c5_67 = arith.constant 5 : index
    %c1_68 = arith.constant 1 : index
    %c0_69 = arith.constant 0 : index
    %60 = vector.load %arg13[%c0_65, %c1_66, %c5_67, %c1_68, %c0_69] : memref<2x2x9x9x8xf32, #tpu.memory_space<vmem>>, vector<1x1x1x8x8xf32>
    %61 = vector.shape_cast %60 : vector<1x1x1x8x8xf32> to vector<8x8xf32>
    %62 = vector.shape_cast %59 : vector<8x8xf32> to vector<1x1x1x8x8xf32>
    tpu.vector_store %arg13[%c0_65, %c1_66, %c5_67, %c1_68, %c0_69], %62 {strides = array<i32>} : memref<2x2x9x9x8xf32, #tpu.memory_space<vmem>>, vector<1x1x1x8x8xf32>,
    %63 = vector.extract_strided_slice %8 {offsets = [104, 0], sizes = [8, 8], strides = [1, 1]} : vector<256x8xf32> to vector<8x8xf32>
    %c0_70 = arith.constant 0 : index
    %c1_71 = arith.constant 1 : index
    %c6_72 = arith.constant 6 : index
    %c1_73 = arith.constant 1 : index
    %c0_74 = arith.constant 0 : index
    %64 = vector.load %arg13[%c0_70, %c1_71, %c6_72, %c1_73, %c0_74] : memref<2x2x9x9x8xf32, #tpu.memory_space<vmem>>, vector<1x1x1x8x8xf32>
    %65 = vector.shape_cast %64 : vector<1x1x1x8x8xf32> to vector<8x8xf32>
    %66 = vector.shape_cast %63 : vector<8x8xf32> to vector<1x1x1x8x8xf32>
    tpu.vector_store %arg13[%c0_70, %c1_71, %c6_72, %c1_73, %c0_74], %66 {strides = array<i32>} : memref<2x2x9x9x8xf32, #tpu.memory_space<vmem>>, vector<1x1x1x8x8xf32>,
    %67 = vector.extract_strided_slice %8 {offsets = [112, 0], sizes = [8, 8], strides = [1, 1]} : vector<256x8xf32> to vector<8x8xf32>
    %c0_75 = arith.constant 0 : index
    %c1_76 = arith.constant 1 : index
    %c7_77 = arith.constant 7 : index
    %c1_78 = arith.constant 1 : index
    %c0_79 = arith.constant 0 : index
    %68 = vector.load %arg13[%c0_75, %c1_76, %c7_77, %c1_78, %c0_79] : memref<2x2x9x9x8xf32, #tpu.memory_space<vmem>>, vector<1x1x1x8x8xf32>
    %69 = vector.shape_cast %68 : vector<1x1x1x8x8xf32> to vector<8x8xf32>
    %70 = vector.shape_cast %67 : vector<8x8xf32> to vector<1x1x1x8x8xf32>
    tpu.vector_store %arg13[%c0_75, %c1_76, %c7_77, %c1_78, %c0_79], %70 {strides = array<i32>} : memref<2x2x9x9x8xf32, #tpu.memory_space<vmem>>, vector<1x1x1x8x8xf32>,
    %71 = vector.extract_strided_slice %8 {offsets = [120, 0], sizes = [8, 8], strides = [1, 1]} : vector<256x8xf32> to vector<8x8xf32>
    %c0_80 = arith.constant 0 : index
    %c1_81 = arith.constant 1 : index
    %c8_82 = arith.constant 8 : index
    %c1_83 = arith.constant 1 : index
    %c0_84 = arith.constant 0 : index
    %72 = vector.load %arg13[%c0_80, %c1_81, %c8_82, %c1_83, %c0_84] : memref<2x2x9x9x8xf32, #tpu.memory_space<vmem>>, vector<1x1x1x8x8xf32>
    %73 = vector.shape_cast %72 : vector<1x1x1x8x8xf32> to vector<8x8xf32>
    %74 = vector.shape_cast %71 : vector<8x8xf32> to vector<1x1x1x8x8xf32>
    tpu.vector_store %arg13[%c0_80, %c1_81, %c8_82, %c1_83, %c0_84], %74 {strides = array<i32>} : memref<2x2x9x9x8xf32, #tpu.memory_space<vmem>>, vector<1x1x1x8x8xf32>,
    %75 = vector.extract_strided_slice %8 {offsets = [128, 0], sizes = [8, 8], strides = [1, 1]} : vector<256x8xf32> to vector<8x8xf32>
    %c1_85 = arith.constant 1 : index
    %c0_86 = arith.constant 0 : index
    %c1_87 = arith.constant 1 : index
    %c1_88 = arith.constant 1 : index
    %c0_89 = arith.constant 0 : index
    %76 = vector.load %arg13[%c1_85, %c0_86, %c1_87, %c1_88, %c0_89] : memref<2x2x9x9x8xf32, #tpu.memory_space<vmem>>, vector<1x1x1x8x8xf32>
    %77 = vector.shape_cast %76 : vector<1x1x1x8x8xf32> to vector<8x8xf32>
    %78 = vector.shape_cast %75 : vector<8x8xf32> to vector<1x1x1x8x8xf32>
    tpu.vector_store %arg13[%c1_85, %c0_86, %c1_87, %c1_88, %c0_89], %78 {strides = array<i32>} : memref<2x2x9x9x8xf32, #tpu.memory_space<vmem>>, vector<1x1x1x8x8xf32>,
    %79 = vector.extract_strided_slice %8 {offsets = [136, 0], sizes = [8, 8], strides = [1, 1]} : vector<256x8xf32> to vector<8x8xf32>
    %c1_90 = arith.constant 1 : index
    %c0_91 = arith.constant 0 : index
    %c2_92 = arith.constant 2 : index
    %c1_93 = arith.constant 1 : index
    %c0_94 = arith.constant 0 : index
    %80 = vector.load %arg13[%c1_90, %c0_91, %c2_92, %c1_93, %c0_94] : memref<2x2x9x9x8xf32, #tpu.memory_space<vmem>>, vector<1x1x1x8x8xf32>
    %81 = vector.shape_cast %80 : vector<1x1x1x8x8xf32> to vector<8x8xf32>
    %82 = vector.shape_cast %79 : vector<8x8xf32> to vector<1x1x1x8x8xf32>
    tpu.vector_store %arg13[%c1_90, %c0_91, %c2_92, %c1_93, %c0_94], %82 {strides = array<i32>} : memref<2x2x9x9x8xf32, #tpu.memory_space<vmem>>, vector<1x1x1x8x8xf32>,
    %83 = vector.extract_strided_slice %8 {offsets = [144, 0], sizes = [8, 8], strides = [1, 1]} : vector<256x8xf32> to vector<8x8xf32>
    %c1_95 = arith.constant 1 : index
    %c0_96 = arith.constant 0 : index
    %c3_97 = arith.constant 3 : index
    %c1_98 = arith.constant 1 : index
    %c0_99 = arith.constant 0 : index
    %84 = vector.load %arg13[%c1_95, %c0_96, %c3_97, %c1_98, %c0_99] : memref<2x2x9x9x8xf32, #tpu.memory_space<vmem>>, vector<1x1x1x8x8xf32>
    %85 = vector.shape_cast %84 : vector<1x1x1x8x8xf32> to vector<8x8xf32>
    %86 = vector.shape_cast %83 : vector<8x8xf32> to vector<1x1x1x8x8xf32>
    tpu.vector_store %arg13[%c1_95, %c0_96, %c3_97, %c1_98, %c0_99], %86 {strides = array<i32>} : memref<2x2x9x9x8xf32, #tpu.memory_space<vmem>>, vector<1x1x1x8x8xf32>,
    %87 = vector.extract_strided_slice %8 {offsets = [152, 0], sizes = [8, 8], strides = [1, 1]} : vector<256x8xf32> to vector<8x8xf32>
    %c1_100 = arith.constant 1 : index
    %c0_101 = arith.constant 0 : index
    %c4_102 = arith.constant 4 : index
    %c1_103 = arith.constant 1 : index
    %c0_104 = arith.constant 0 : index
    %88 = vector.load %arg13[%c1_100, %c0_101, %c4_102, %c1_103, %c0_104] : memref<2x2x9x9x8xf32, #tpu.memory_space<vmem>>, vector<1x1x1x8x8xf32>
    %89 = vector.shape_cast %88 : vector<1x1x1x8x8xf32> to vector<8x8xf32>
    %90 = vector.shape_cast %87 : vector<8x8xf32> to vector<1x1x1x8x8xf32>
    tpu.vector_store %arg13[%c1_100, %c0_101, %c4_102, %c1_103, %c0_104], %90 {strides = array<i32>} : memref<2x2x9x9x8xf32, #tpu.memory_space<vmem>>, vector<1x1x1x8x8xf32>,
    %91 = vector.extract_strided_slice %8 {offsets = [160, 0], sizes = [8, 8], strides = [1, 1]} : vector<256x8xf32> to vector<8x8xf32>
    %c1_105 = arith.constant 1 : index
    %c0_106 = arith.constant 0 : index
    %c5_107 = arith.constant 5 : index
    %c1_108 = arith.constant 1 : index
    %c0_109 = arith.constant 0 : index
    %92 = vector.load %arg13[%c1_105, %c0_106, %c5_107, %c1_108, %c0_109] : memref<2x2x9x9x8xf32, #tpu.memory_space<vmem>>, vector<1x1x1x8x8xf32>
    %93 = vector.shape_cast %92 : vector<1x1x1x8x8xf32> to vector<8x8xf32>
    %94 = vector.shape_cast %91 : vector<8x8xf32> to vector<1x1x1x8x8xf32>
    tpu.vector_store %arg13[%c1_105, %c0_106, %c5_107, %c1_108, %c0_109], %94 {strides = array<i32>} : memref<2x2x9x9x8xf32, #tpu.memory_space<vmem>>, vector<1x1x1x8x8xf32>,
    %95 = vector.extract_strided_slice %8 {offsets = [168, 0], sizes = [8, 8], strides = [1, 1]} : vector<256x8xf32> to vector<8x8xf32>
    %c1_110 = arith.constant 1 : index
    %c0_111 = arith.constant 0 : index
    %c6_112 = arith.constant 6 : index
    %c1_113 = arith.constant 1 : index
    %c0_114 = arith.constant 0 : index
    %96 = vector.load %arg13[%c1_110, %c0_111, %c6_112, %c1_113, %c0_114] : memref<2x2x9x9x8xf32, #tpu.memory_space<vmem>>, vector<1x1x1x8x8xf32>
    %97 = vector.shape_cast %96 : vector<1x1x1x8x8xf32> to vector<8x8xf32>
    %98 = vector.shape_cast %95 : vector<8x8xf32> to vector<1x1x1x8x8xf32>
    tpu.vector_store %arg13[%c1_110, %c0_111, %c6_112, %c1_113, %c0_114], %98 {strides = array<i32>} : memref<2x2x9x9x8xf32, #tpu.memory_space<vmem>>, vector<1x1x1x8x8xf32>,
    %99 = vector.extract_strided_slice %8 {offsets = [176, 0], sizes = [8, 8], strides = [1, 1]} : vector<256x8xf32> to vector<8x8xf32>
    %c1_115 = arith.constant 1 : index
    %c0_116 = arith.constant 0 : index
    %c7_117 = arith.constant 7 : index
    %c1_118 = arith.constant 1 : index
    %c0_119 = arith.constant 0 : index
    %100 = vector.load %arg13[%c1_115, %c0_116, %c7_117, %c1_118, %c0_119] : memref<2x2x9x9x8xf32, #tpu.memory_space<vmem>>, vector<1x1x1x8x8xf32>
    %101 = vector.shape_cast %100 : vector<1x1x1x8x8xf32> to vector<8x8xf32>
    %102 = vector.shape_cast %99 : vector<8x8xf32> to vector<1x1x1x8x8xf32>
    tpu.vector_store %arg13[%c1_115, %c0_116, %c7_117, %c1_118, %c0_119], %102 {strides = array<i32>} : memref<2x2x9x9x8xf32, #tpu.memory_space<vmem>>, vector<1x1x1x8x8xf32>,
    %103 = vector.extract_strided_slice %8 {offsets = [184, 0], sizes = [8, 8], strides = [1, 1]} : vector<256x8xf32> to vector<8x8xf32>
    %c1_120 = arith.constant 1 : index
    %c0_121 = arith.constant 0 : index
    %c8_122 = arith.constant 8 : index
    %c1_123 = arith.constant 1 : index
    %c0_124 = arith.constant 0 : index
    %104 = vector.load %arg13[%c1_120, %c0_121, %c8_122, %c1_123, %c0_124] : memref<2x2x9x9x8xf32, #tpu.memory_space<vmem>>, vector<1x1x1x8x8xf32>
    %105 = vector.shape_cast %104 : vector<1x1x1x8x8xf32> to vector<8x8xf32>
    %106 = vector.shape_cast %103 : vector<8x8xf32> to vector<1x1x1x8x8xf32>
    tpu.vector_store %arg13[%c1_120, %c0_121, %c8_122, %c1_123, %c0_124], %106 {strides = array<i32>} : memref<2x2x9x9x8xf32, #tpu.memory_space<vmem>>, vector<1x1x1x8x8xf32>,
    %107 = vector.extract_strided_slice %8 {offsets = [192, 0], sizes = [8, 8], strides = [1, 1]} : vector<256x8xf32> to vector<8x8xf32>
    %c1_125 = arith.constant 1 : index
    %c1_126 = arith.constant 1 : index
    %c1_127 = arith.constant 1 : index
    %c1_128 = arith.constant 1 : index
    %c0_129 = arith.constant 0 : index
    %108 = vector.load %arg13[%c1_125, %c1_126, %c1_127, %c1_128, %c0_129] : memref<2x2x9x9x8xf32, #tpu.memory_space<vmem>>, vector<1x1x1x8x8xf32>
    %109 = vector.shape_cast %108 : vector<1x1x1x8x8xf32> to vector<8x8xf32>
    %110 = vector.shape_cast %107 : vector<8x8xf32> to vector<1x1x1x8x8xf32>
    tpu.vector_store %arg13[%c1_125, %c1_126, %c1_127, %c1_128, %c0_129], %110 {strides = array<i32>} : memref<2x2x9x9x8xf32, #tpu.memory_space<vmem>>, vector<1x1x1x8x8xf32>,
    %111 = vector.extract_strided_slice %8 {offsets = [200, 0], sizes = [8, 8], strides = [1, 1]} : vector<256x8xf32> to vector<8x8xf32>
    %c1_130 = arith.constant 1 : index
    %c1_131 = arith.constant 1 : index
    %c2_132 = arith.constant 2 : index
    %c1_133 = arith.constant 1 : index
    %c0_134 = arith.constant 0 : index
    %112 = vector.load %arg13[%c1_130, %c1_131, %c2_132, %c1_133, %c0_134] : memref<2x2x9x9x8xf32, #tpu.memory_space<vmem>>, vector<1x1x1x8x8xf32>
    %113 = vector.shape_cast %112 : vector<1x1x1x8x8xf32> to vector<8x8xf32>
    %114 = vector.shape_cast %111 : vector<8x8xf32> to vector<1x1x1x8x8xf32>
    tpu.vector_store %arg13[%c1_130, %c1_131, %c2_132, %c1_133, %c0_134], %114 {strides = array<i32>} : memref<2x2x9x9x8xf32, #tpu.memory_space<vmem>>, vector<1x1x1x8x8xf32>,
    %115 = vector.extract_strided_slice %8 {offsets = [208, 0], sizes = [8, 8], strides = [1, 1]} : vector<256x8xf32> to vector<8x8xf32>
    %c1_135 = arith.constant 1 : index
    %c1_136 = arith.constant 1 : index
    %c3_137 = arith.constant 3 : index
    %c1_138 = arith.constant 1 : index
    %c0_139 = arith.constant 0 : index
    %116 = vector.load %arg13[%c1_135, %c1_136, %c3_137, %c1_138, %c0_139] : memref<2x2x9x9x8xf32, #tpu.memory_space<vmem>>, vector<1x1x1x8x8xf32>
    %117 = vector.shape_cast %116 : vector<1x1x1x8x8xf32> to vector<8x8xf32>
    %118 = vector.shape_cast %115 : vector<8x8xf32> to vector<1x1x1x8x8xf32>
    tpu.vector_store %arg13[%c1_135, %c1_136, %c3_137, %c1_138, %c0_139], %118 {strides = array<i32>} : memref<2x2x9x9x8xf32, #tpu.memory_space<vmem>>, vector<1x1x1x8x8xf32>,
    %119 = vector.extract_strided_slice %8 {offsets = [216, 0], sizes = [8, 8], strides = [1, 1]} : vector<256x8xf32> to vector<8x8xf32>
    %c1_140 = arith.constant 1 : index
    %c1_141 = arith.constant 1 : index
    %c4_142 = arith.constant 4 : index
    %c1_143 = arith.constant 1 : index
    %c0_144 = arith.constant 0 : index
    %120 = vector.load %arg13[%c1_140, %c1_141, %c4_142, %c1_143, %c0_144] : memref<2x2x9x9x8xf32, #tpu.memory_space<vmem>>, vector<1x1x1x8x8xf32>
    %121 = vector.shape_cast %120 : vector<1x1x1x8x8xf32> to vector<8x8xf32>
    %122 = vector.shape_cast %119 : vector<8x8xf32> to vector<1x1x1x8x8xf32>
    tpu.vector_store %arg13[%c1_140, %c1_141, %c4_142, %c1_143, %c0_144], %122 {strides = array<i32>} : memref<2x2x9x9x8xf32, #tpu.memory_space<vmem>>, vector<1x1x1x8x8xf32>,
    %123 = vector.extract_strided_slice %8 {offsets = [224, 0], sizes = [8, 8], strides = [1, 1]} : vector<256x8xf32> to vector<8x8xf32>
    %c1_145 = arith.constant 1 : index
    %c1_146 = arith.constant 1 : index
    %c5_147 = arith.constant 5 : index
    %c1_148 = arith.constant 1 : index
    %c0_149 = arith.constant 0 : index
    %124 = vector.load %arg13[%c1_145, %c1_146, %c5_147, %c1_148, %c0_149] : memref<2x2x9x9x8xf32, #tpu.memory_space<vmem>>, vector<1x1x1x8x8xf32>
    %125 = vector.shape_cast %124 : vector<1x1x1x8x8xf32> to vector<8x8xf32>
    %126 = vector.shape_cast %123 : vector<8x8xf32> to vector<1x1x1x8x8xf32>
    tpu.vector_store %arg13[%c1_145, %c1_146, %c5_147, %c1_148, %c0_149], %126 {strides = array<i32>} : memref<2x2x9x9x8xf32, #tpu.memory_space<vmem>>, vector<1x1x1x8x8xf32>,
    %127 = vector.extract_strided_slice %8 {offsets = [232, 0], sizes = [8, 8], strides = [1, 1]} : vector<256x8xf32> to vector<8x8xf32>
    %c1_150 = arith.constant 1 : index
    %c1_151 = arith.constant 1 : index
    %c6_152 = arith.constant 6 : index
    %c1_153 = arith.constant 1 : index
    %c0_154 = arith.constant 0 : index
    %128 = vector.load %arg13[%c1_150, %c1_151, %c6_152, %c1_153, %c0_154] : memref<2x2x9x9x8xf32, #tpu.memory_space<vmem>>, vector<1x1x1x8x8xf32>
    %129 = vector.shape_cast %128 : vector<1x1x1x8x8xf32> to vector<8x8xf32>
    %130 = vector.shape_cast %127 : vector<8x8xf32> to vector<1x1x1x8x8xf32>
    tpu.vector_store %arg13[%c1_150, %c1_151, %c6_152, %c1_153, %c0_154], %130 {strides = array<i32>} : memref<2x2x9x9x8xf32, #tpu.memory_space<vmem>>, vector<1x1x1x8x8xf32>,
    %131 = vector.extract_strided_slice %8 {offsets = [240, 0], sizes = [8, 8], strides = [1, 1]} : vector<256x8xf32> to vector<8x8xf32>
    %c1_155 = arith.constant 1 : index
    %c1_156 = arith.constant 1 : index
    %c7_157 = arith.constant 7 : index
    %c1_158 = arith.constant 1 : index
    %c0_159 = arith.constant 0 : index
    %132 = vector.load %arg13[%c1_155, %c1_156, %c7_157, %c1_158, %c0_159] : memref<2x2x9x9x8xf32, #tpu.memory_space<vmem>>, vector<1x1x1x8x8xf32>
    %133 = vector.shape_cast %132 : vector<1x1x1x8x8xf32> to vector<8x8xf32>
    %134 = vector.shape_cast %131 : vector<8x8xf32> to vector<1x1x1x8x8xf32>
    tpu.vector_store %arg13[%c1_155, %c1_156, %c7_157, %c1_158, %c0_159], %134 {strides = array<i32>} : memref<2x2x9x9x8xf32, #tpu.memory_space<vmem>>, vector<1x1x1x8x8xf32>,
    %135 = vector.extract_strided_slice %8 {offsets = [248, 0], sizes = [8, 8], strides = [1, 1]} : vector<256x8xf32> to vector<8x8xf32>
    %c1_160 = arith.constant 1 : index
    %c1_161 = arith.constant 1 : index
    %c8_162 = arith.constant 8 : index
    %c1_163 = arith.constant 1 : index
    %c0_164 = arith.constant 0 : index
    %136 = vector.load %arg13[%c1_160, %c1_161, %c8_162, %c1_163, %c0_164] : memref<2x2x9x9x8xf32, #tpu.memory_space<vmem>>, vector<1x1x1x8x8xf32>
    %137 = vector.shape_cast %136 : vector<1x1x1x8x8xf32> to vector<8x8xf32>
    %138 = vector.shape_cast %135 : vector<8x8xf32> to vector<1x1x1x8x8xf32>
    tpu.vector_store %arg13[%c1_160, %c1_161, %c8_162, %c1_163, %c0_164], %138 {strides = array<i32>} : memref<2x2x9x9x8xf32, #tpu.memory_space<vmem>>, vector<1x1x1x8x8xf32>,
    %c1_165 = arith.constant 1 : index
    %c1_166 = arith.constant 1 : index
    %c0_167 = arith.constant 0 : index
    %c0_168 = arith.constant 0 : index
    %c0_169 = arith.constant 0 : index
    %139 = vector.load %arg13[%c1_165, %c1_166, %c0_167, %c0_168, %c0_169] : memref<2x2x9x9x8xf32, #tpu.memory_space<vmem>>, vector<1x1x8x8x8xf32>
    %140 = vector.shape_cast %139 : vector<1x1x8x8x8xf32> to vector<8x8x8xf32>
    %c0_170 = arith.constant 0 : index
    %c0_171 = arith.constant 0 : index
    %c0_172 = arith.constant 0 : index
    %141 = vector.load %arg14[%c0_170, %c0_171, %c0_172] : memref<8x8x72xf32, #tpu.memory_space<vmem>>, vector<8x8x8xf32>
    tpu.vector_store %arg14[%c0_170, %c0_171, %c0_172], %140 {strides = array<i32>} : memref<8x8x72xf32, #tpu.memory_space<vmem>>, vector<8x8x8xf32>,
    %c1_173 = arith.constant 1 : index
    %c0_174 = arith.constant 0 : index
    %c0_175 = arith.constant 0 : index
    %c1_176 = arith.constant 1 : index
    %c0_177 = arith.constant 0 : index
    %142 = vector.load %arg13[%c1_173, %c0_174, %c0_175, %c1_176, %c0_177] : memref<2x2x9x9x8xf32, #tpu.memory_space<vmem>>, vector<1x1x8x8x8xf32>
    %143 = vector.shape_cast %142 : vector<1x1x8x8x8xf32> to vector<8x8x8xf32>
    %c0_178 = arith.constant 0 : index
    %c0_179 = arith.constant 0 : index
    %c8_180 = arith.constant 8 : index
    %144 = vector.load %arg14[%c0_178, %c0_179, %c8_180] : memref<8x8x72xf32, #tpu.memory_space<vmem>>, vector<8x8x8xf32>
    tpu.vector_store %arg14[%c0_178, %c0_179, %c8_180], %143 {strides = array<i32>} : memref<8x8x72xf32, #tpu.memory_space<vmem>>, vector<8x8x8xf32>,
    %c1_181 = arith.constant 1 : index
    %c1_182 = arith.constant 1 : index
    %c0_183 = arith.constant 0 : index
    %c1_184 = arith.constant 1 : index
    %c0_185 = arith.constant 0 : index
    %145 = vector.load %arg13[%c1_181, %c1_182, %c0_183, %c1_184, %c0_185] : memref<2x2x9x9x8xf32, #tpu.memory_space<vmem>>, vector<1x1x8x8x8xf32>
    %146 = vector.shape_cast %145 : vector<1x1x8x8x8xf32> to vector<8x8x8xf32>
    %c0_186 = arith.constant 0 : index
    %c0_187 = arith.constant 0 : index
    %c16 = arith.constant 16 : index
    %147 = vector.load %arg14[%c0_186, %c0_187, %c16] : memref<8x8x72xf32, #tpu.memory_space<vmem>>, vector<8x8x8xf32>
    tpu.vector_store %arg14[%c0_186, %c0_187, %c16], %146 {strides = array<i32>} : memref<8x8x72xf32, #tpu.memory_space<vmem>>, vector<8x8x8xf32>,
    %c0_188 = arith.constant 0 : index
    %c1_189 = arith.constant 1 : index
    %c1_190 = arith.constant 1 : index
    %c0_191 = arith.constant 0 : index
    %c0_192 = arith.constant 0 : index
    %148 = vector.load %arg13[%c0_188, %c1_189, %c1_190, %c0_191, %c0_192] : memref<2x2x9x9x8xf32, #tpu.memory_space<vmem>>, vector<1x1x8x8x8xf32>
    %149 = vector.shape_cast %148 : vector<1x1x8x8x8xf32> to vector<8x8x8xf32>
    %c0_193 = arith.constant 0 : index
    %c0_194 = arith.constant 0 : index
    %c24 = arith.constant 24 : index
    %150 = vector.load %arg14[%c0_193, %c0_194, %c24] : memref<8x8x72xf32, #tpu.memory_space<vmem>>, vector<8x8x8xf32>
    tpu.vector_store %arg14[%c0_193, %c0_194, %c24], %149 {strides = array<i32>} : memref<8x8x72xf32, #tpu.memory_space<vmem>>, vector<8x8x8xf32>,
    %c0_195 = arith.constant 0 : index
    %c0_196 = arith.constant 0 : index
    %c1_197 = arith.constant 1 : index
    %c1_198 = arith.constant 1 : index
    %c0_199 = arith.constant 0 : index
    %151 = vector.load %arg13[%c0_195, %c0_196, %c1_197, %c1_198, %c0_199] : memref<2x2x9x9x8xf32, #tpu.memory_space<vmem>>, vector<1x1x8x8x8xf32>
    %152 = vector.shape_cast %151 : vector<1x1x8x8x8xf32> to vector<8x8x8xf32>
    %c0_200 = arith.constant 0 : index
    %c0_201 = arith.constant 0 : index
    %c32 = arith.constant 32 : index
    %153 = vector.load %arg14[%c0_200, %c0_201, %c32] : memref<8x8x72xf32, #tpu.memory_space<vmem>>, vector<8x8x8xf32>
    tpu.vector_store %arg14[%c0_200, %c0_201, %c32], %152 {strides = array<i32>} : memref<8x8x72xf32, #tpu.memory_space<vmem>>, vector<8x8x8xf32>,
    %c0_202 = arith.constant 0 : index
    %c1_203 = arith.constant 1 : index
    %c1_204 = arith.constant 1 : index
    %c1_205 = arith.constant 1 : index
    %c0_206 = arith.constant 0 : index
    %154 = vector.load %arg13[%c0_202, %c1_203, %c1_204, %c1_205, %c0_206] : memref<2x2x9x9x8xf32, #tpu.memory_space<vmem>>, vector<1x1x8x8x8xf32>
    %155 = vector.shape_cast %154 : vector<1x1x8x8x8xf32> to vector<8x8x8xf32>
    %c0_207 = arith.constant 0 : index
    %c0_208 = arith.constant 0 : index
    %c40 = arith.constant 40 : index
    %156 = vector.load %arg14[%c0_207, %c0_208, %c40] : memref<8x8x72xf32, #tpu.memory_space<vmem>>, vector<8x8x8xf32>
    tpu.vector_store %arg14[%c0_207, %c0_208, %c40], %155 {strides = array<i32>} : memref<8x8x72xf32, #tpu.memory_space<vmem>>, vector<8x8x8xf32>,
    %c1_209 = arith.constant 1 : index
    %c1_210 = arith.constant 1 : index
    %c1_211 = arith.constant 1 : index
    %c0_212 = arith.constant 0 : index
    %c0_213 = arith.constant 0 : index
    %157 = vector.load %arg13[%c1_209, %c1_210, %c1_211, %c0_212, %c0_213] : memref<2x2x9x9x8xf32, #tpu.memory_space<vmem>>, vector<1x1x8x8x8xf32>
    %158 = vector.shape_cast %157 : vector<1x1x8x8x8xf32> to vector<8x8x8xf32>
    %c0_214 = arith.constant 0 : index
    %c0_215 = arith.constant 0 : index
    %c48 = arith.constant 48 : index
    %159 = vector.load %arg14[%c0_214, %c0_215, %c48] : memref<8x8x72xf32, #tpu.memory_space<vmem>>, vector<8x8x8xf32>
    tpu.vector_store %arg14[%c0_214, %c0_215, %c48], %158 {strides = array<i32>} : memref<8x8x72xf32, #tpu.memory_space<vmem>>, vector<8x8x8xf32>,
    %c1_216 = arith.constant 1 : index
    %c0_217 = arith.constant 0 : index
    %c1_218 = arith.constant 1 : index
    %c1_219 = arith.constant 1 : index
    %c0_220 = arith.constant 0 : index
    %160 = vector.load %arg13[%c1_216, %c0_217, %c1_218, %c1_219, %c0_220] : memref<2x2x9x9x8xf32, #tpu.memory_space<vmem>>, vector<1x1x8x8x8xf32>
    %161 = vector.shape_cast %160 : vector<1x1x8x8x8xf32> to vector<8x8x8xf32>
    %c0_221 = arith.constant 0 : index
    %c0_222 = arith.constant 0 : index
    %c56 = arith.constant 56 : index
    %162 = vector.load %arg14[%c0_221, %c0_222, %c56] : memref<8x8x72xf32, #tpu.memory_space<vmem>>, vector<8x8x8xf32>
    tpu.vector_store %arg14[%c0_221, %c0_222, %c56], %161 {strides = array<i32>} : memref<8x8x72xf32, #tpu.memory_space<vmem>>, vector<8x8x8xf32>,
    %c1_223 = arith.constant 1 : index
    %c1_224 = arith.constant 1 : index
    %c1_225 = arith.constant 1 : index
    %c1_226 = arith.constant 1 : index
    %c0_227 = arith.constant 0 : index
    %163 = vector.load %arg13[%c1_223, %c1_224, %c1_225, %c1_226, %c0_227] : memref<2x2x9x9x8xf32, #tpu.memory_space<vmem>>, vector<1x1x8x8x8xf32>
    %164 = vector.shape_cast %163 : vector<1x1x8x8x8xf32> to vector<8x8x8xf32>
    %c0_228 = arith.constant 0 : index
    %c0_229 = arith.constant 0 : index
    %c64 = arith.constant 64 : index
    %165 = vector.load %arg14[%c0_228, %c0_229, %c64] : memref<8x8x72xf32, #tpu.memory_space<vmem>>, vector<8x8x8xf32>
    tpu.vector_store %arg14[%c0_228, %c0_229, %c64], %164 {strides = array<i32>} : memref<8x8x72xf32, #tpu.memory_space<vmem>>, vector<8x8x8xf32>,
    %c0_230 = arith.constant 0 : index
    %c0_231 = arith.constant 0 : index
    %c0_232 = arith.constant 0 : index
    %166 = vector.load %arg14[%c0_230, %c0_231, %c0_232] : memref<8x8x72xf32, #tpu.memory_space<vmem>>, vector<8x8x72xf32>
    %167 = vector.shape_cast %166 : vector<8x8x72xf32> to vector<64x72xf32>
    %168 = arith.truncf %167 : vector<64x72xf32> to vector<64x72xbf16>
    %c0_233 = arith.constant 0 : index
    %c0_234 = arith.constant 0 : index
    %169 = vector.load %arg4[%c0_233, %c0_234] : memref<72x16xbf16, #tpu.memory_space<vmem>>, vector<72x16xbf16>
    %cst_235 = arith.constant dense<0.000000e+00> : vector<64x16xf32>
    %170 = tpu.matmul %168, %169, %cst_235 {dimension_numbers = #tpu.dot_dimension_numbers<[1], [0], [0], [1], [0, 0, 1, 1], [], []>} : vector<64x72xbf16>, vector<72x16xbf16>, vector<64x16xf32> -> vector<64x16xf32>
    %c0_236 = arith.constant 0 : index
    %c0_237 = arith.constant 0 : index
    %171 = vector.load %arg5[%c0_236, %c0_237] : memref<1x16xf32, #tpu.memory_space<vmem>>, vector<1x16xf32>
    %172 = vector.broadcast %171 : vector<1x16xf32> to vector<64x16xf32>
    %173 = arith.addf %170, %172 : vector<64x16xf32>
    %cst_238 = arith.constant 0.000000e+00 : f32
    %174 = vector.broadcast %cst_238 : f32 to vector<64x16xf32>
    %175 = arith.maximumf %173, %174 : vector<64x16xf32>
    %176 = arith.truncf %175 : vector<64x16xf32> to vector<64x16xbf16>
    %c0_239 = arith.constant 0 : index
    %c0_240 = arith.constant 0 : index
    %177 = vector.load %arg6[%c0_239, %c0_240] : memref<16x16xbf16, #tpu.memory_space<vmem>>, vector<16x16xbf16>
    %cst_241 = arith.constant dense<0.000000e+00> : vector<64x16xf32>
    %178 = tpu.matmul %176, %177, %cst_241 {dimension_numbers = #tpu.dot_dimension_numbers<[1], [0], [0], [1], [0, 0, 1, 1], [], []>} : vector<64x16xbf16>, vector<16x16xbf16>, vector<64x16xf32> -> vector<64x16xf32>
    %c0_242 = arith.constant 0 : index
    %c0_243 = arith.constant 0 : index
    %179 = vector.load %arg7[%c0_242, %c0_243] : memref<1x16xf32, #tpu.memory_space<vmem>>, vector<1x16xf32>
    %180 = vector.broadcast %179 : vector<1x16xf32> to vector<64x16xf32>
    %181 = arith.addf %178, %180 : vector<64x16xf32>
    %c0_244 = arith.constant 0 : index
    %c0_245 = arith.constant 0 : index
    %c0_246 = arith.constant 0 : index
    %182 = vector.load %arg12[%c0_244, %c0_245, %c0_246] : memref<1x64x31xf32, #tpu.memory_space<vmem>>, vector<1x64x16xf32>
    %183 = vector.shape_cast %182 : vector<1x64x16xf32> to vector<64x16xf32>
    %184 = vector.shape_cast %181 : vector<64x16xf32> to vector<1x64x16xf32>
    tpu.vector_store %arg12[%c0_244, %c0_245, %c0_246], %184 {strides = array<i32>} : memref<1x64x31xf32, #tpu.memory_space<vmem>>, vector<1x64x16xf32>,
    %cst_247 = arith.constant 0.000000e+00 : f32
    %185 = vector.broadcast %cst_247 : f32 to vector<10x10x16xf32>
    %c0_248 = arith.constant 0 : index
    %c0_249 = arith.constant 0 : index
    %c0_250 = arith.constant 0 : index
    %186 = vector.load %arg15[%c0_248, %c0_249, %c0_250] : memref<10x10x16xf32, #tpu.memory_space<vmem>>, vector<10x10x16xf32>
    tpu.vector_store %arg15[%c0_248, %c0_249, %c0_250], %185 {strides = array<i32>} : memref<10x10x16xf32, #tpu.memory_space<vmem>>, vector<10x10x16xf32>,
    %187 = vector.extract_strided_slice %181 {offsets = [0, 0], sizes = [8, 16], strides = [1, 1]} : vector<64x16xf32> to vector<8x16xf32>
    %c1_251 = arith.constant 1 : index
    %c1_252 = arith.constant 1 : index
    %c0_253 = arith.constant 0 : index
    %188 = vector.load %arg15[%c1_251, %c1_252, %c0_253] : memref<10x10x16xf32, #tpu.memory_space<vmem>>, vector<1x8x16xf32>
    %189 = vector.shape_cast %188 : vector<1x8x16xf32> to vector<8x16xf32>
    %190 = vector.shape_cast %187 : vector<8x16xf32> to vector<1x8x16xf32>
    tpu.vector_store %arg15[%c1_251, %c1_252, %c0_253], %190 {strides = array<i32>} : memref<10x10x16xf32, #tpu.memory_space<vmem>>, vector<1x8x16xf32>,
    %191 = vector.extract_strided_slice %181 {offsets = [8, 0], sizes = [8, 16], strides = [1, 1]} : vector<64x16xf32> to vector<8x16xf32>
    %c2_254 = arith.constant 2 : index
    %c1_255 = arith.constant 1 : index
    %c0_256 = arith.constant 0 : index
    %192 = vector.load %arg15[%c2_254, %c1_255, %c0_256] : memref<10x10x16xf32, #tpu.memory_space<vmem>>, vector<1x8x16xf32>
    %193 = vector.shape_cast %192 : vector<1x8x16xf32> to vector<8x16xf32>
    %194 = vector.shape_cast %191 : vector<8x16xf32> to vector<1x8x16xf32>
    tpu.vector_store %arg15[%c2_254, %c1_255, %c0_256], %194 {strides = array<i32>} : memref<10x10x16xf32, #tpu.memory_space<vmem>>, vector<1x8x16xf32>,
    %195 = vector.extract_strided_slice %181 {offsets = [16, 0], sizes = [8, 16], strides = [1, 1]} : vector<64x16xf32> to vector<8x16xf32>
    %c3_257 = arith.constant 3 : index
    %c1_258 = arith.constant 1 : index
    %c0_259 = arith.constant 0 : index
    %196 = vector.load %arg15[%c3_257, %c1_258, %c0_259] : memref<10x10x16xf32, #tpu.memory_space<vmem>>, vector<1x8x16xf32>
    %197 = vector.shape_cast %196 : vector<1x8x16xf32> to vector<8x16xf32>
    %198 = vector.shape_cast %195 : vector<8x16xf32> to vector<1x8x16xf32>
    tpu.vector_store %arg15[%c3_257, %c1_258, %c0_259], %198 {strides = array<i32>} : memref<10x10x16xf32, #tpu.memory_space<vmem>>, vector<1x8x16xf32>,
    %199 = vector.extract_strided_slice %181 {offsets = [24, 0], sizes = [8, 16], strides = [1, 1]} : vector<64x16xf32> to vector<8x16xf32>
    %c4_260 = arith.constant 4 : index
    %c1_261 = arith.constant 1 : index
    %c0_262 = arith.constant 0 : index
    %200 = vector.load %arg15[%c4_260, %c1_261, %c0_262] : memref<10x10x16xf32, #tpu.memory_space<vmem>>, vector<1x8x16xf32>
    %201 = vector.shape_cast %200 : vector<1x8x16xf32> to vector<8x16xf32>
    %202 = vector.shape_cast %199 : vector<8x16xf32> to vector<1x8x16xf32>
    tpu.vector_store %arg15[%c4_260, %c1_261, %c0_262], %202 {strides = array<i32>} : memref<10x10x16xf32, #tpu.memory_space<vmem>>, vector<1x8x16xf32>,
    %203 = vector.extract_strided_slice %181 {offsets = [32, 0], sizes = [8, 16], strides = [1, 1]} : vector<64x16xf32> to vector<8x16xf32>
    %c5_263 = arith.constant 5 : index
    %c1_264 = arith.constant 1 : index
    %c0_265 = arith.constant 0 : index
    %204 = vector.load %arg15[%c5_263, %c1_264, %c0_265] : memref<10x10x16xf32, #tpu.memory_space<vmem>>, vector<1x8x16xf32>
    %205 = vector.shape_cast %204 : vector<1x8x16xf32> to vector<8x16xf32>
    %206 = vector.shape_cast %203 : vector<8x16xf32> to vector<1x8x16xf32>
    tpu.vector_store %arg15[%c5_263, %c1_264, %c0_265], %206 {strides = array<i32>} : memref<10x10x16xf32, #tpu.memory_space<vmem>>, vector<1x8x16xf32>,
    %207 = vector.extract_strided_slice %181 {offsets = [40, 0], sizes = [8, 16], strides = [1, 1]} : vector<64x16xf32> to vector<8x16xf32>
    %c6_266 = arith.constant 6 : index
    %c1_267 = arith.constant 1 : index
    %c0_268 = arith.constant 0 : index
    %208 = vector.load %arg15[%c6_266, %c1_267, %c0_268] : memref<10x10x16xf32, #tpu.memory_space<vmem>>, vector<1x8x16xf32>
    %209 = vector.shape_cast %208 : vector<1x8x16xf32> to vector<8x16xf32>
    %210 = vector.shape_cast %207 : vector<8x16xf32> to vector<1x8x16xf32>
    tpu.vector_store %arg15[%c6_266, %c1_267, %c0_268], %210 {strides = array<i32>} : memref<10x10x16xf32, #tpu.memory_space<vmem>>, vector<1x8x16xf32>,
    %211 = vector.extract_strided_slice %181 {offsets = [48, 0], sizes = [8, 16], strides = [1, 1]} : vector<64x16xf32> to vector<8x16xf32>
    %c7_269 = arith.constant 7 : index
    %c1_270 = arith.constant 1 : index
    %c0_271 = arith.constant 0 : index
    %212 = vector.load %arg15[%c7_269, %c1_270, %c0_271] : memref<10x10x16xf32, #tpu.memory_space<vmem>>, vector<1x8x16xf32>
    %213 = vector.shape_cast %212 : vector<1x8x16xf32> to vector<8x16xf32>
    %214 = vector.shape_cast %211 : vector<8x16xf32> to vector<1x8x16xf32>
    tpu.vector_store %arg15[%c7_269, %c1_270, %c0_271], %214 {strides = array<i32>} : memref<10x10x16xf32, #tpu.memory_space<vmem>>, vector<1x8x16xf32>,
    %215 = vector.extract_strided_slice %181 {offsets = [56, 0], sizes = [8, 16], strides = [1, 1]} : vector<64x16xf32> to vector<8x16xf32>
    %c8_272 = arith.constant 8 : index
    %c1_273 = arith.constant 1 : index
    %c0_274 = arith.constant 0 : index
    %216 = vector.load %arg15[%c8_272, %c1_273, %c0_274] : memref<10x10x16xf32, #tpu.memory_space<vmem>>, vector<1x8x16xf32>
    %217 = vector.shape_cast %216 : vector<1x8x16xf32> to vector<8x16xf32>
    %218 = vector.shape_cast %215 : vector<8x16xf32> to vector<1x8x16xf32>
    tpu.vector_store %arg15[%c8_272, %c1_273, %c0_274], %218 {strides = array<i32>} : memref<10x10x16xf32, #tpu.memory_space<vmem>>, vector<1x8x16xf32>,
    %c0_275 = arith.constant 0 : index
    %c0_276 = arith.constant 0 : index
    %c0_277 = arith.constant 0 : index
    %219 = vector.load %arg15[%c0_275, %c0_276, %c0_277] : memref<10x10x16xf32, #tpu.memory_space<vmem>>, vector<8x8x16xf32>
    %c0_278 = arith.constant 0 : index
    %c0_279 = arith.constant 0 : index
    %c0_280 = arith.constant 0 : index
    %220 = vector.load %arg16[%c0_278, %c0_279, %c0_280] : memref<8x8x144xf32, #tpu.memory_space<vmem>>, vector<8x8x16xf32>
    tpu.vector_store %arg16[%c0_278, %c0_279, %c0_280], %219 {strides = array<i32>} : memref<8x8x144xf32, #tpu.memory_space<vmem>>, vector<8x8x16xf32>,
    %c0_281 = arith.constant 0 : index
    %c1_282 = arith.constant 1 : index
    %c0_283 = arith.constant 0 : index
    %221 = vector.load %arg15[%c0_281, %c1_282, %c0_283] : memref<10x10x16xf32, #tpu.memory_space<vmem>>, vector<8x8x16xf32>
    %c0_284 = arith.constant 0 : index
    %c0_285 = arith.constant 0 : index
    %c16_286 = arith.constant 16 : index
    %222 = vector.load %arg16[%c0_284, %c0_285, %c16_286] : memref<8x8x144xf32, #tpu.memory_space<vmem>>, vector<8x8x16xf32>
    tpu.vector_store %arg16[%c0_284, %c0_285, %c16_286], %221 {strides = array<i32>} : memref<8x8x144xf32, #tpu.memory_space<vmem>>, vector<8x8x16xf32>,
    %c0_287 = arith.constant 0 : index
    %c2_288 = arith.constant 2 : index
    %c0_289 = arith.constant 0 : index
    %223 = vector.load %arg15[%c0_287, %c2_288, %c0_289] : memref<10x10x16xf32, #tpu.memory_space<vmem>>, vector<8x8x16xf32>
    %c0_290 = arith.constant 0 : index
    %c0_291 = arith.constant 0 : index
    %c32_292 = arith.constant 32 : index
    %224 = vector.load %arg16[%c0_290, %c0_291, %c32_292] : memref<8x8x144xf32, #tpu.memory_space<vmem>>, vector<8x8x16xf32>
    tpu.vector_store %arg16[%c0_290, %c0_291, %c32_292], %223 {strides = array<i32>} : memref<8x8x144xf32, #tpu.memory_space<vmem>>, vector<8x8x16xf32>,
    %c1_293 = arith.constant 1 : index
    %c0_294 = arith.constant 0 : index
    %c0_295 = arith.constant 0 : index
    %225 = vector.load %arg15[%c1_293, %c0_294, %c0_295] : memref<10x10x16xf32, #tpu.memory_space<vmem>>, vector<8x8x16xf32>
    %c0_296 = arith.constant 0 : index
    %c0_297 = arith.constant 0 : index
    %c48_298 = arith.constant 48 : index
    %226 = vector.load %arg16[%c0_296, %c0_297, %c48_298] : memref<8x8x144xf32, #tpu.memory_space<vmem>>, vector<8x8x16xf32>
    tpu.vector_store %arg16[%c0_296, %c0_297, %c48_298], %225 {strides = array<i32>} : memref<8x8x144xf32, #tpu.memory_space<vmem>>, vector<8x8x16xf32>,
    %c1_299 = arith.constant 1 : index
    %c1_300 = arith.constant 1 : index
    %c0_301 = arith.constant 0 : index
    %227 = vector.load %arg15[%c1_299, %c1_300, %c0_301] : memref<10x10x16xf32, #tpu.memory_space<vmem>>, vector<8x8x16xf32>
    %c0_302 = arith.constant 0 : index
    %c0_303 = arith.constant 0 : index
    %c64_304 = arith.constant 64 : index
    %228 = vector.load %arg16[%c0_302, %c0_303, %c64_304] : memref<8x8x144xf32, #tpu.memory_space<vmem>>, vector<8x8x16xf32>
    tpu.vector_store %arg16[%c0_302, %c0_303, %c64_304], %227 {strides = array<i32>} : memref<8x8x144xf32, #tpu.memory_space<vmem>>, vector<8x8x16xf32>,
    %c1_305 = arith.constant 1 : index
    %c2_306 = arith.constant 2 : index
    %c0_307 = arith.constant 0 : index
    %229 = vector.load %arg15[%c1_305, %c2_306, %c0_307] : memref<10x10x16xf32, #tpu.memory_space<vmem>>, vector<8x8x16xf32>
    %c0_308 = arith.constant 0 : index
    %c0_309 = arith.constant 0 : index
    %c80 = arith.constant 80 : index
    %230 = vector.load %arg16[%c0_308, %c0_309, %c80] : memref<8x8x144xf32, #tpu.memory_space<vmem>>, vector<8x8x16xf32>
    tpu.vector_store %arg16[%c0_308, %c0_309, %c80], %229 {strides = array<i32>} : memref<8x8x144xf32, #tpu.memory_space<vmem>>, vector<8x8x16xf32>,
    %c2_310 = arith.constant 2 : index
    %c0_311 = arith.constant 0 : index
    %c0_312 = arith.constant 0 : index
    %231 = vector.load %arg15[%c2_310, %c0_311, %c0_312] : memref<10x10x16xf32, #tpu.memory_space<vmem>>, vector<8x8x16xf32>
    %c0_313 = arith.constant 0 : index
    %c0_314 = arith.constant 0 : index
    %c96 = arith.constant 96 : index
    %232 = vector.load %arg16[%c0_313, %c0_314, %c96] : memref<8x8x144xf32, #tpu.memory_space<vmem>>, vector<8x8x16xf32>
    tpu.vector_store %arg16[%c0_313, %c0_314, %c96], %231 {strides = array<i32>} : memref<8x8x144xf32, #tpu.memory_space<vmem>>, vector<8x8x16xf32>,
    %c2_315 = arith.constant 2 : index
    %c1_316 = arith.constant 1 : index
    %c0_317 = arith.constant 0 : index
    %233 = vector.load %arg15[%c2_315, %c1_316, %c0_317] : memref<10x10x16xf32, #tpu.memory_space<vmem>>, vector<8x8x16xf32>
    %c0_318 = arith.constant 0 : index
    %c0_319 = arith.constant 0 : index
    %c112 = arith.constant 112 : index
    %234 = vector.load %arg16[%c0_318, %c0_319, %c112] : memref<8x8x144xf32, #tpu.memory_space<vmem>>, vector<8x8x16xf32>
    tpu.vector_store %arg16[%c0_318, %c0_319, %c112], %233 {strides = array<i32>} : memref<8x8x144xf32, #tpu.memory_space<vmem>>, vector<8x8x16xf32>,
    %c2_320 = arith.constant 2 : index
    %c2_321 = arith.constant 2 : index
    %c0_322 = arith.constant 0 : index
    %235 = vector.load %arg15[%c2_320, %c2_321, %c0_322] : memref<10x10x16xf32, #tpu.memory_space<vmem>>, vector<8x8x16xf32>
    %c0_323 = arith.constant 0 : index
    %c0_324 = arith.constant 0 : index
    %c128 = arith.constant 128 : index
    %236 = vector.load %arg16[%c0_323, %c0_324, %c128] : memref<8x8x144xf32, #tpu.memory_space<vmem>>, vector<8x8x16xf32>
    tpu.vector_store %arg16[%c0_323, %c0_324, %c128], %235 {strides = array<i32>} : memref<8x8x144xf32, #tpu.memory_space<vmem>>, vector<8x8x16xf32>,
    %c0_325 = arith.constant 0 : index
    %c0_326 = arith.constant 0 : index
    %c0_327 = arith.constant 0 : index
    %237 = vector.load %arg16[%c0_325, %c0_326, %c0_327] : memref<8x8x144xf32, #tpu.memory_space<vmem>>, vector<8x8x144xf32>
    %238 = vector.shape_cast %237 : vector<8x8x144xf32> to vector<64x144xf32>
    %239 = arith.truncf %238 : vector<64x144xf32> to vector<64x144xbf16>
    %c0_328 = arith.constant 0 : index
    %c0_329 = arith.constant 0 : index
    %240 = vector.load %arg8[%c0_328, %c0_329] : memref<144x16xbf16, #tpu.memory_space<vmem>>, vector<144x16xbf16>
    %cst_330 = arith.constant dense<0.000000e+00> : vector<64x16xf32>
    %241 = tpu.matmul %239, %240, %cst_330 {dimension_numbers = #tpu.dot_dimension_numbers<[1], [0], [0], [1], [0, 0, 1, 1], [], []>} : vector<64x144xbf16>, vector<144x16xbf16>, vector<64x16xf32> -> vector<64x16xf32>
    %c0_331 = arith.constant 0 : index
    %c0_332 = arith.constant 0 : index
    %242 = vector.load %arg9[%c0_331, %c0_332] : memref<1x16xf32, #tpu.memory_space<vmem>>, vector<1x16xf32>
    %243 = vector.broadcast %242 : vector<1x16xf32> to vector<64x16xf32>
    %244 = arith.addf %241, %243 : vector<64x16xf32>
    %cst_333 = arith.constant 0.000000e+00 : f32
    %245 = vector.broadcast %cst_333 : f32 to vector<64x16xf32>
    %246 = arith.maximumf %244, %245 : vector<64x16xf32>
    %247 = arith.truncf %246 : vector<64x16xf32> to vector<64x16xbf16>
    %c0_334 = arith.constant 0 : index
    %c0_335 = arith.constant 0 : index
    %248 = vector.load %arg10[%c0_334, %c0_335] : memref<16x15xbf16, #tpu.memory_space<vmem>>, vector<16x15xbf16>
    %cst_336 = arith.constant dense<0.000000e+00> : vector<64x15xf32>
    %249 = tpu.matmul %247, %248, %cst_336 {dimension_numbers = #tpu.dot_dimension_numbers<[1], [0], [0], [1], [0, 0, 1, 1], [], []>} : vector<64x16xbf16>, vector<16x15xbf16>, vector<64x15xf32> -> vector<64x15xf32>
    %c0_337 = arith.constant 0 : index
    %c0_338 = arith.constant 0 : index
    %250 = vector.load %arg11[%c0_337, %c0_338] : memref<1x15xf32, #tpu.memory_space<vmem>>, vector<1x15xf32>
    %251 = vector.broadcast %250 : vector<1x15xf32> to vector<64x15xf32>
    %252 = arith.addf %249, %251 : vector<64x15xf32>
    %c0_339 = arith.constant 0 : index
    %c0_340 = arith.constant 0 : index
    %c16_341 = arith.constant 16 : index
    %253 = vector.load %arg12[%c0_339, %c0_340, %c16_341] : memref<1x64x31xf32, #tpu.memory_space<vmem>>, vector<1x64x15xf32>
    %254 = vector.shape_cast %253 : vector<1x64x15xf32> to vector<64x15xf32>
    %255 = vector.shape_cast %252 : vector<64x15xf32> to vector<1x64x15xf32>
    tpu.vector_store %arg12[%c0_339, %c0_340, %c16_341], %255 {strides = array<i32>} : memref<1x64x31xf32, #tpu.memory_space<vmem>>, vector<1x64x15xf32>,
    return
  }
  func.func @transform_0(%arg0: i32) -> (i32, i32, i32) {
    %c0_i32 = arith.constant 0 : i32
    %c0_i32_0 = arith.constant 0 : i32
    %c0_i32_1 = arith.constant 0 : i32
    return %arg0, %c0_i32, %c0_i32_0 : i32, i32, i32
  }
  func.func @transform_1(%arg0: i32) -> (i32, i32) {
    %c0_i32 = arith.constant 0 : i32
    %c0_i32_0 = arith.constant 0 : i32
    %c0_i32_1 = arith.constant 0 : i32
    return %c0_i32, %c0_i32_0 : i32, i32
  }
  func.func @transform_2(%arg0: i32) -> (i32, i32) {
    %c0_i32 = arith.constant 0 : i32
    %c0_i32_0 = arith.constant 0 : i32
    %c0_i32_1 = arith.constant 0 : i32
    return %c0_i32, %c0_i32_0 : i32, i32
  }
  func.func @transform_3(%arg0: i32) -> (i32, i32) {
    %c0_i32 = arith.constant 0 : i32
    %c0_i32_0 = arith.constant 0 : i32
    %c0_i32_1 = arith.constant 0 : i32
    return %c0_i32, %c0_i32_0 : i32, i32
  }
  func.func @transform_4(%arg0: i32) -> (i32, i32) {
    %c0_i32 = arith.constant 0 : i32
    %c0_i32_0 = arith.constant 0 : i32
    %c0_i32_1 = arith.constant 0 : i32
    return %c0_i32, %c0_i32_0 : i32, i32
  }
  func.func @transform_5(%arg0: i32) -> (i32, i32) {
    %c0_i32 = arith.constant 0 : i32
    %c0_i32_0 = arith.constant 0 : i32
    %c0_i32_1 = arith.constant 0 : i32
    return %c0_i32, %c0_i32_0 : i32, i32
  }
  func.func @transform_6(%arg0: i32) -> (i32, i32) {
    %c0_i32 = arith.constant 0 : i32
    %c0_i32_0 = arith.constant 0 : i32
    %c0_i32_1 = arith.constant 0 : i32
    return %c0_i32, %c0_i32_0 : i32, i32
  }
  func.func @transform_7(%arg0: i32) -> (i32, i32) {
    %c0_i32 = arith.constant 0 : i32
    %c0_i32_0 = arith.constant 0 : i32
    %c0_i32_1 = arith.constant 0 : i32
    return %c0_i32, %c0_i32_0 : i32, i32
  }
  func.func @transform_8(%arg0: i32) -> (i32, i32) {
    %c0_i32 = arith.constant 0 : i32
    %c0_i32_0 = arith.constant 0 : i32
    %c0_i32_1 = arith.constant 0 : i32
    return %c0_i32, %c0_i32_0 : i32, i32
  }
  func.func @transform_9(%arg0: i32) -> (i32, i32) {
    %c0_i32 = arith.constant 0 : i32
    %c0_i32_0 = arith.constant 0 : i32
    %c0_i32_1 = arith.constant 0 : i32
    return %c0_i32, %c0_i32_0 : i32, i32
  }
  func.func @transform_10(%arg0: i32) -> (i32, i32) {
    %c0_i32 = arith.constant 0 : i32
    %c0_i32_0 = arith.constant 0 : i32
    %c0_i32_1 = arith.constant 0 : i32
    return %c0_i32, %c0_i32_0 : i32, i32
  }
  func.func @transform_11(%arg0: i32) -> (i32, i32, i32) {
    %c0_i32 = arith.constant 0 : i32
    %c0_i32_0 = arith.constant 0 : i32
    %c0_i32_1 = arith.constant 0 : i32
    return %arg0, %c0_i32, %c0_i32_0 : i32, i32, i32
  }
}

module attributes {stable_mosaic.version = 11 : i64} {
  func.func @_heads_kernel(%arg0: i32, %arg1: memref<1x2x784xf32, #tpu.memory_space<vmem>>, %arg2: memref<1x98x16xf32, #tpu.memory_space<vmem>>, %arg3: memref<784x32xbf16, #tpu.memory_space<vmem>>, %arg4: memref<1x32xf32, #tpu.memory_space<vmem>>, %arg5: memref<32x32xbf16, #tpu.memory_space<vmem>>, %arg6: memref<1x32xf32, #tpu.memory_space<vmem>>, %arg7: memref<32x10xbf16, #tpu.memory_space<vmem>>, %arg8: memref<1x10xf32, #tpu.memory_space<vmem>>, %arg9: memref<16x64xbf16, #tpu.memory_space<vmem>>, %arg10: memref<1x64xf32, #tpu.memory_space<vmem>>, %arg11: memref<64x8xbf16, #tpu.memory_space<vmem>>, %arg12: memref<1x8xf32, #tpu.memory_space<vmem>>, %arg13: memref<1x2x10xf32, #tpu.memory_space<vmem>>, %arg14: memref<1x98x8xf32, #tpu.memory_space<vmem>>) attributes {dimension_semantics = [#tpu.dimension_semantics<parallel>], iteration_bounds = array<i64: 2>, scalar_prefetch = 0 : i64, scratch_operands = 0 : i64, tpu.core_type = #tpu.core_type<tc>, window_params = [{transform_indices = @transform_0, window_bounds = array<i64: 1, 2, 784>}, {transform_indices = @transform_1, window_bounds = array<i64: 1, 98, 16>}, {pipeline_mode = #tpu.pipeline_mode<synchronous>, transform_indices = @transform_2, window_bounds = array<i64: 784, 32>}, {pipeline_mode = #tpu.pipeline_mode<synchronous>, transform_indices = @transform_3, window_bounds = array<i64: 1, 32>}, {pipeline_mode = #tpu.pipeline_mode<synchronous>, transform_indices = @transform_4, window_bounds = array<i64: 32, 32>}, {pipeline_mode = #tpu.pipeline_mode<synchronous>, transform_indices = @transform_5, window_bounds = array<i64: 1, 32>}, {pipeline_mode = #tpu.pipeline_mode<synchronous>, transform_indices = @transform_6, window_bounds = array<i64: 32, 10>}, {pipeline_mode = #tpu.pipeline_mode<synchronous>, transform_indices = @transform_7, window_bounds = array<i64: 1, 10>}, {pipeline_mode = #tpu.pipeline_mode<synchronous>, transform_indices = @transform_8, window_bounds = array<i64: 16, 64>}, {pipeline_mode = #tpu.pipeline_mode<synchronous>, transform_indices = @transform_9, window_bounds = array<i64: 1, 64>}, {pipeline_mode = #tpu.pipeline_mode<synchronous>, transform_indices = @transform_10, window_bounds = array<i64: 64, 8>}, {pipeline_mode = #tpu.pipeline_mode<synchronous>, transform_indices = @transform_11, window_bounds = array<i64: 1, 8>}, {transform_indices = @transform_12, window_bounds = array<i64: 1, 2, 10>}, {transform_indices = @transform_13, window_bounds = array<i64: 1, 98, 8>}]} {
    %c0 = arith.constant 0 : index
    %c0_0 = arith.constant 0 : index
    %c0_1 = arith.constant 0 : index
    %0 = vector.load %arg1[%c0, %c0_0, %c0_1] : memref<1x2x784xf32, #tpu.memory_space<vmem>>, vector<1x2x784xf32>
    %1 = vector.shape_cast %0 : vector<1x2x784xf32> to vector<2x784xf32>
    %2 = arith.truncf %1 : vector<2x784xf32> to vector<2x784xbf16>
    %c0_2 = arith.constant 0 : index
    %c0_3 = arith.constant 0 : index
    %3 = vector.load %arg3[%c0_2, %c0_3] : memref<784x32xbf16, #tpu.memory_space<vmem>>, vector<784x32xbf16>
    %cst = arith.constant dense<0.000000e+00> : vector<2x32xf32>
    %4 = tpu.matmul %2, %3, %cst {dimension_numbers = #tpu.dot_dimension_numbers<[1], [0], [0], [1], [0, 0, 1, 1], [], []>} : vector<2x784xbf16>, vector<784x32xbf16>, vector<2x32xf32> -> vector<2x32xf32>
    %c0_4 = arith.constant 0 : index
    %c0_5 = arith.constant 0 : index
    %5 = vector.load %arg4[%c0_4, %c0_5] : memref<1x32xf32, #tpu.memory_space<vmem>>, vector<1x32xf32>
    %6 = vector.broadcast %5 : vector<1x32xf32> to vector<2x32xf32>
    %7 = arith.addf %4, %6 : vector<2x32xf32>
    %cst_6 = arith.constant 0.000000e+00 : f32
    %8 = vector.broadcast %cst_6 : f32 to vector<2x32xf32>
    %9 = arith.maximumf %7, %8 : vector<2x32xf32>
    %10 = arith.truncf %9 : vector<2x32xf32> to vector<2x32xbf16>
    %c0_7 = arith.constant 0 : index
    %c0_8 = arith.constant 0 : index
    %11 = vector.load %arg5[%c0_7, %c0_8] : memref<32x32xbf16, #tpu.memory_space<vmem>>, vector<32x32xbf16>
    %cst_9 = arith.constant dense<0.000000e+00> : vector<2x32xf32>
    %12 = tpu.matmul %10, %11, %cst_9 {dimension_numbers = #tpu.dot_dimension_numbers<[1], [0], [0], [1], [0, 0, 1, 1], [], []>} : vector<2x32xbf16>, vector<32x32xbf16>, vector<2x32xf32> -> vector<2x32xf32>
    %c0_10 = arith.constant 0 : index
    %c0_11 = arith.constant 0 : index
    %13 = vector.load %arg6[%c0_10, %c0_11] : memref<1x32xf32, #tpu.memory_space<vmem>>, vector<1x32xf32>
    %14 = vector.broadcast %13 : vector<1x32xf32> to vector<2x32xf32>
    %15 = arith.addf %12, %14 : vector<2x32xf32>
    %cst_12 = arith.constant 0.000000e+00 : f32
    %16 = vector.broadcast %cst_12 : f32 to vector<2x32xf32>
    %17 = arith.maximumf %15, %16 : vector<2x32xf32>
    %18 = arith.truncf %17 : vector<2x32xf32> to vector<2x32xbf16>
    %c0_13 = arith.constant 0 : index
    %c0_14 = arith.constant 0 : index
    %19 = vector.load %arg7[%c0_13, %c0_14] : memref<32x10xbf16, #tpu.memory_space<vmem>>, vector<32x10xbf16>
    %cst_15 = arith.constant dense<0.000000e+00> : vector<2x10xf32>
    %20 = tpu.matmul %18, %19, %cst_15 {dimension_numbers = #tpu.dot_dimension_numbers<[1], [0], [0], [1], [0, 0, 1, 1], [], []>} : vector<2x32xbf16>, vector<32x10xbf16>, vector<2x10xf32> -> vector<2x10xf32>
    %c0_16 = arith.constant 0 : index
    %c0_17 = arith.constant 0 : index
    %21 = vector.load %arg8[%c0_16, %c0_17] : memref<1x10xf32, #tpu.memory_space<vmem>>, vector<1x10xf32>
    %22 = vector.broadcast %21 : vector<1x10xf32> to vector<2x10xf32>
    %23 = arith.addf %20, %22 : vector<2x10xf32>
    %c0_18 = arith.constant 0 : index
    %c0_19 = arith.constant 0 : index
    %c0_20 = arith.constant 0 : index
    %24 = vector.load %arg13[%c0_18, %c0_19, %c0_20] : memref<1x2x10xf32, #tpu.memory_space<vmem>>, vector<1x2x10xf32>
    %25 = vector.shape_cast %24 : vector<1x2x10xf32> to vector<2x10xf32>
    %26 = vector.shape_cast %23 : vector<2x10xf32> to vector<1x2x10xf32>
    tpu.vector_store %arg13[%c0_18, %c0_19, %c0_20], %26 {strides = array<i32>} : memref<1x2x10xf32, #tpu.memory_space<vmem>>, vector<1x2x10xf32>,
    %c0_21 = arith.constant 0 : index
    %c0_22 = arith.constant 0 : index
    %c0_23 = arith.constant 0 : index
    %27 = vector.load %arg2[%c0_21, %c0_22, %c0_23] : memref<1x98x16xf32, #tpu.memory_space<vmem>>, vector<1x98x16xf32>
    %28 = vector.shape_cast %27 : vector<1x98x16xf32> to vector<98x16xf32>
    %29 = arith.truncf %28 : vector<98x16xf32> to vector<98x16xbf16>
    %c0_24 = arith.constant 0 : index
    %c0_25 = arith.constant 0 : index
    %30 = vector.load %arg9[%c0_24, %c0_25] : memref<16x64xbf16, #tpu.memory_space<vmem>>, vector<16x64xbf16>
    %cst_26 = arith.constant dense<0.000000e+00> : vector<98x64xf32>
    %31 = tpu.matmul %29, %30, %cst_26 {dimension_numbers = #tpu.dot_dimension_numbers<[1], [0], [0], [1], [0, 0, 1, 1], [], []>} : vector<98x16xbf16>, vector<16x64xbf16>, vector<98x64xf32> -> vector<98x64xf32>
    %c0_27 = arith.constant 0 : index
    %c0_28 = arith.constant 0 : index
    %32 = vector.load %arg10[%c0_27, %c0_28] : memref<1x64xf32, #tpu.memory_space<vmem>>, vector<1x64xf32>
    %33 = vector.broadcast %32 : vector<1x64xf32> to vector<98x64xf32>
    %34 = arith.addf %31, %33 : vector<98x64xf32>
    %cst_29 = arith.constant 0.000000e+00 : f32
    %35 = vector.broadcast %cst_29 : f32 to vector<98x64xf32>
    %36 = arith.maximumf %34, %35 : vector<98x64xf32>
    %37 = arith.truncf %36 : vector<98x64xf32> to vector<98x64xbf16>
    %c0_30 = arith.constant 0 : index
    %c0_31 = arith.constant 0 : index
    %38 = vector.load %arg11[%c0_30, %c0_31] : memref<64x8xbf16, #tpu.memory_space<vmem>>, vector<64x8xbf16>
    %cst_32 = arith.constant dense<0.000000e+00> : vector<98x8xf32>
    %39 = tpu.matmul %37, %38, %cst_32 {dimension_numbers = #tpu.dot_dimension_numbers<[1], [0], [0], [1], [0, 0, 1, 1], [], []>} : vector<98x64xbf16>, vector<64x8xbf16>, vector<98x8xf32> -> vector<98x8xf32>
    %c0_33 = arith.constant 0 : index
    %c0_34 = arith.constant 0 : index
    %40 = vector.load %arg12[%c0_33, %c0_34] : memref<1x8xf32, #tpu.memory_space<vmem>>, vector<1x8xf32>
    %41 = vector.broadcast %40 : vector<1x8xf32> to vector<98x8xf32>
    %42 = arith.addf %39, %41 : vector<98x8xf32>
    %c0_35 = arith.constant 0 : index
    %c0_36 = arith.constant 0 : index
    %c0_37 = arith.constant 0 : index
    %43 = vector.load %arg14[%c0_35, %c0_36, %c0_37] : memref<1x98x8xf32, #tpu.memory_space<vmem>>, vector<1x98x8xf32>
    %44 = vector.shape_cast %43 : vector<1x98x8xf32> to vector<98x8xf32>
    %45 = vector.shape_cast %42 : vector<98x8xf32> to vector<1x98x8xf32>
    tpu.vector_store %arg14[%c0_35, %c0_36, %c0_37], %45 {strides = array<i32>} : memref<1x98x8xf32, #tpu.memory_space<vmem>>, vector<1x98x8xf32>,
    return
  }
  func.func @transform_0(%arg0: i32) -> (i32, i32, i32) {
    %c0_i32 = arith.constant 0 : i32
    %c0_i32_0 = arith.constant 0 : i32
    %c0_i32_1 = arith.constant 0 : i32
    return %arg0, %c0_i32, %c0_i32_0 : i32, i32, i32
  }
  func.func @transform_1(%arg0: i32) -> (i32, i32, i32) {
    %c0_i32 = arith.constant 0 : i32
    %c0_i32_0 = arith.constant 0 : i32
    %c0_i32_1 = arith.constant 0 : i32
    return %arg0, %c0_i32, %c0_i32_0 : i32, i32, i32
  }
  func.func @transform_2(%arg0: i32) -> (i32, i32) {
    %c0_i32 = arith.constant 0 : i32
    %c0_i32_0 = arith.constant 0 : i32
    %c0_i32_1 = arith.constant 0 : i32
    return %c0_i32, %c0_i32_0 : i32, i32
  }
  func.func @transform_3(%arg0: i32) -> (i32, i32) {
    %c0_i32 = arith.constant 0 : i32
    %c0_i32_0 = arith.constant 0 : i32
    %c0_i32_1 = arith.constant 0 : i32
    return %c0_i32, %c0_i32_0 : i32, i32
  }
  func.func @transform_4(%arg0: i32) -> (i32, i32) {
    %c0_i32 = arith.constant 0 : i32
    %c0_i32_0 = arith.constant 0 : i32
    %c0_i32_1 = arith.constant 0 : i32
    return %c0_i32, %c0_i32_0 : i32, i32
  }
  func.func @transform_5(%arg0: i32) -> (i32, i32) {
    %c0_i32 = arith.constant 0 : i32
    %c0_i32_0 = arith.constant 0 : i32
    %c0_i32_1 = arith.constant 0 : i32
    return %c0_i32, %c0_i32_0 : i32, i32
  }
  func.func @transform_6(%arg0: i32) -> (i32, i32) {
    %c0_i32 = arith.constant 0 : i32
    %c0_i32_0 = arith.constant 0 : i32
    %c0_i32_1 = arith.constant 0 : i32
    return %c0_i32, %c0_i32_0 : i32, i32
  }
  func.func @transform_7(%arg0: i32) -> (i32, i32) {
    %c0_i32 = arith.constant 0 : i32
    %c0_i32_0 = arith.constant 0 : i32
    %c0_i32_1 = arith.constant 0 : i32
    return %c0_i32, %c0_i32_0 : i32, i32
  }
  func.func @transform_8(%arg0: i32) -> (i32, i32) {
    %c0_i32 = arith.constant 0 : i32
    %c0_i32_0 = arith.constant 0 : i32
    %c0_i32_1 = arith.constant 0 : i32
    return %c0_i32, %c0_i32_0 : i32, i32
  }
  func.func @transform_9(%arg0: i32) -> (i32, i32) {
    %c0_i32 = arith.constant 0 : i32
    %c0_i32_0 = arith.constant 0 : i32
    %c0_i32_1 = arith.constant 0 : i32
    return %c0_i32, %c0_i32_0 : i32, i32
  }
  func.func @transform_10(%arg0: i32) -> (i32, i32) {
    %c0_i32 = arith.constant 0 : i32
    %c0_i32_0 = arith.constant 0 : i32
    %c0_i32_1 = arith.constant 0 : i32
    return %c0_i32, %c0_i32_0 : i32, i32
  }
  func.func @transform_11(%arg0: i32) -> (i32, i32) {
    %c0_i32 = arith.constant 0 : i32
    %c0_i32_0 = arith.constant 0 : i32
    %c0_i32_1 = arith.constant 0 : i32
    return %c0_i32, %c0_i32_0 : i32, i32
  }
  func.func @transform_12(%arg0: i32) -> (i32, i32, i32) {
    %c0_i32 = arith.constant 0 : i32
    %c0_i32_0 = arith.constant 0 : i32
    %c0_i32_1 = arith.constant 0 : i32
    return %arg0, %c0_i32, %c0_i32_0 : i32, i32, i32
  }
  func.func @transform_13(%arg0: i32) -> (i32, i32, i32) {
    %c0_i32 = arith.constant 0 : i32
    %c0_i32_0 = arith.constant 0 : i32
    %c0_i32_1 = arith.constant 0 : i32
    return %arg0, %c0_i32, %c0_i32_0 : i32, i32, i32
  }
}

</mosaic_0001>

<bundles_post_ra>
// kernel: custom-call
= control target key start
LH: loop header
LB: loop body
LE: loop exit
PB: predicated region body
PF: predicated region fallthrough
CT: control target
= control target key end

     0   :  { %5 = vsyncpa [#allocation9], 0  ;;  %v1059_v0 = vmov 2147483648   ;;  %v1060_v1 = vmov 2147483647   ;;  %s1191_s0 = inlined_call_operand.vmem [shape: f32[2,192], index: 0, kind: input, shape index: {}]   ;;  %s1192_s1 = inlined_call_operand.hbm [shape: f32[2,2], index: 1, kind: output, shape index: {0}]   ;;  %s1193_s2 = inlined_call_operand.vmem [shape: s32[2,2], index: 2, kind: output, shape index: {1}]  }
   0x1   :  { %7 = vst [vmem:[#allocation12] sm:$0xff] %v1059_v0  ;;  %8 = vst [vmem:[#allocation14] sm:$0xff] %v1060_v1 }
   0x2   :  { %v28_v2 = vld [vmem:[%s1191_s0] sm:$0xf]  ;;  %v46_v3 = vlaneseq  ;;  %v1061_v4 = vmov 2147483648   ;;  %v1062_v5 = vmov 2147483647   ;;  %s1092_s0 = smov 0  }
   0x3   :  { %29 = vst [vmem:[#allocation16] sm:$0xf] %v28_v2  ;;  %75 = vst [vmem:[#allocation13] sm:$0xff] %v1061_v4 }
   0x4   :  { %76 = vst [vmem:[#allocation15] sm:$0xff] %v1062_v5  ;;  %v1088_v6 = vshrl.u32 %v46_v3, 7  ;;  %v47_v7 = vand.u32 127, %v46_v3 }
   0x6   :  { %v50_v8 = vshrl.u32 %v1088_v6, 1 }
   0x8   :  { %v52_v9 = vmul.u32 128, %v50_v8 }
   0xa   :  { %v53_v10 = vadd.s32 %v52_v9, %v47_v7  ;;  %v55_v11 = vld [vmem:[#allocation16] sm:$0xff] }
   0xb   :  { %vm56_vm0 = vcmp.lt.s32.totalorder %v55_v11, 0  ;;  %v57_v12 = vsub.s32 2147483647, %v55_v11 }
   0xc   :  { %vm60_vm1 = vcmp.lt.s32.totalorder %v53_v10, 192  ;;  %73 = vst [vmem:[#allocation17] sm:$0xff] %v53_v10 }
   0xd   :  { %v58_v13 = vsel %vm56_vm0, %v57_v12, %v55_v11 }
   0xe   :  { %v61_v14 = vsel %vm60_vm1, %v58_v13, 2147483648 }
   0xf   :  { %62 = vst [vmem:[#allocation16] sm:$0xff] %v61_v14 }
  0x10 LB: > { %s397_s11 = scalar_lea.vmem [#allocation13], %s1057_s0  ;;  %s399_s12 = scalar_lea.vmem [#allocation15], %s1057_s0  ;;  %s1057_s0 = sphi %s1092_s0, %s83_s0  }
  0x11   : > { %s83_s0 = sadd.s32 1, %s1057_s0  }
  0x12   : > { %p80_p2 = scmp.ge.s32.totalorder %s83_s0, 2  }
  0x13   : > { %v85_v16 = vld [vmem:[#allocation17] sm:$0xff]  ;;  %s1068_s0 = smov (%p80_p2), [#allocation8]  }
  0x14   : > { %v88_v18 = vrot.slane %v85_v16, 2 }
  0x16   : > { %v84_v15 = vld [vmem:[#allocation16] sm:$0xff]  ;;  %vm92_vm4 = vcmp.lt.s32.totalorder %v88_v18, %v85_v16 }
  0x17   : > { %v87_v17 = vrot.slane %v84_v15, 2 }
  0x19   : > { %vm90_vm2 = vcmp.gt.s32.totalorder %v87_v17, %v84_v15  ;;  %vm91_vm3 = vcmp.eq.s32.totalorder %v87_v17, %v84_v15 }
  0x1a   : > { %vm93_vm5 = vmand %vm91_vm3, %vm92_vm4 }
  0x1b   : > { %vm94_vm6 = vmor %vm90_vm2, %vm93_vm5 }
  0x1c   : > { %v95_v19 = vsel %vm94_vm6, %v87_v17, %v84_v15  ;;  %v96_v20 = vsel %vm94_vm6, %v88_v18, %v85_v16 }
  0x1d   : > { %v98_v21 = vrot.slane %v95_v19, 2  ;;  %v99_v22 = vrot.slane %v96_v20, 2 }
  0x1f   : > { %vm101_vm7 = vcmp.gt.s32.totalorder %v98_v21, %v95_v19  ;;  %vm102_vm8 = vcmp.eq.s32.totalorder %v98_v21, %v95_v19  ;;  %vm103_vm9 = vcmp.lt.s32.totalorder %v99_v22, %v96_v20 }
  0x20   : > { %vm104_vm10 = vmand %vm102_vm8, %vm103_vm9 }
  0x21   : > { %vm105_vm11 = vmor %vm101_vm7, %vm104_vm10 }
  0x22   : > { %v106_v23 = vsel %vm105_vm11, %v98_v21, %v95_v19  ;;  %v107_v24 = vsel %vm105_vm11, %v99_v22, %v96_v20 }
  0x23   : > { %v109_v25 = vrot.slane %v106_v23, 2  ;;  %v110_v26 = vrot.slane %v107_v24, 2 }
  0x25   : > { %vm112_vm12 = vcmp.gt.s32.totalorder %v109_v25, %v106_v23  ;;  %vm113_vm13 = vcmp.eq.s32.totalorder %v109_v25, %v106_v23  ;;  %vm114_vm14 = vcmp.lt.s32.totalorder %v110_v26, %v107_v24 }
  0x26   : > { %vm115_vm15 = vmand %vm113_vm13, %vm114_vm14 }
  0x27   : > { %vm116_vm0 = vmor %vm112_vm12, %vm115_vm15 }
  0x28   : > { %v118_v27 = vsel %vm116_vm0, %v110_v26, %v107_v24  ;;  %v117_v28 = vsel %vm116_vm0, %v109_v25, %v106_v23 }
  0x29   : > { %152 = vxpose.xlu1.b32.start [1/16] %v118_v27, 128  ;;  %120 = vxpose.xlu0.b32.start [1/16] %v117_v28, 128 }
  0x2d   : > { %153 = vxpose.xlu1.b32.cont [2/16] %v118_v27, 128  ;;  %121 = vxpose.xlu0.b32.cont [2/16] %v117_v28, 128 }
  0x31   : > { %154 = vxpose.xlu1.b32.cont [3/16] %v118_v27, 128  ;;  %122 = vxpose.xlu0.b32.cont [3/16] %v117_v28, 128 }
  0x35   : > { %155 = vxpose.xlu1.b32.cont [4/16] %v118_v27, 128  ;;  %123 = vxpose.xlu0.b32.cont [4/16] %v117_v28, 128 }
  0x39   : > { %156 = vxpose.xlu1.b32.cont [5/16] %v118_v27, 128  ;;  %124 = vxpose.xlu0.b32.cont [5/16] %v117_v28, 128 }
  0x3d   : > { %157 = vxpose.xlu1.b32.cont [6/16] %v118_v27, 128  ;;  %125 = vxpose.xlu0.b32.cont [6/16] %v117_v28, 128 }
  0x41   : > { %158 = vxpose.xlu1.b32.cont [7/16] %v118_v27, 128  ;;  %126 = vxpose.xlu0.b32.cont [7/16] %v117_v28, 128 }
  0x45   : > { %159 = vxpose.xlu1.b32.cont [8/16] %v118_v27, 128  ;;  %127 = vxpose.xlu0.b32.cont [8/16] %v117_v28, 128 }
  0x49   : > { %160 = vxpose.xlu1.b32.cont [9/16] %v118_v27, 128  ;;  %128 = vxpose.xlu0.b32.cont [9/16] %v117_v28, 128 }
  0x4d   : > { %161 = vxpose.xlu1.b32.cont [10/16] %v118_v27, 128  ;;  %129 = vxpose.xlu0.b32.cont [10/16] %v117_v28, 128 }
  0x51   : > { %162 = vxpose.xlu1.b32.cont [11/16] %v118_v27, 128  ;;  %130 = vxpose.xlu0.b32.cont [11/16] %v117_v28, 128 }
  0x55   : > { %163 = vxpose.xlu1.b32.cont [12/16] %v118_v27, 128  ;;  %131 = vxpose.xlu0.b32.cont [12/16] %v117_v28, 128 }
  0x59   : > { %164 = vxpose.xlu1.b32.cont [13/16] %v118_v27, 128  ;;  %132 = vxpose.xlu0.b32.cont [13/16] %v117_v28, 128 }
  0x5d   : > { %165 = vxpose.xlu1.b32.cont [14/16] %v118_v27, 128  ;;  %133 = vxpose.xlu0.b32.cont [14/16] %v117_v28, 128 }
  0x61   : > { %166 = vxpose.xlu1.b32.cont [15/16] %v118_v27, 128  ;;  %134 = vxpose.xlu0.b32.cont [15/16] %v117_v28, 128 }
  0x65   : > { %167 = vxpose.xlu1.b32.end [16/16] %v118_v27, 128  ;;  %135 = vxpose.xlu0.b32.end [16/16] %v117_v28, 128 }
  0xa9   : > { %v168_v29 = vpop.trf.xlu1  ;;  %v136_v30 = vpop.trf.xlu0 }
  0xad   : > { %v169_v31 = vpop.trf.xlu1  ;;  %v137_v32 = vpop.trf.xlu0 }
  0xae   : > { %vm188_vm1 = vcmp.lt.s32.totalorder %v169_v31, %v168_v29  ;;  %vm186_vm2 = vcmp.gt.s32.totalorder %v137_v32, %v136_v30  ;;  %vm187_vm3 = vcmp.eq.s32.totalorder %v137_v32, %v136_v30 }
  0xaf   : > { %vm189_vm4 = vmand %vm187_vm3, %vm188_vm1 }
  0xb0   : > { %vm190_vm5 = vmor %vm186_vm2, %vm189_vm4 }
  0xb1   : > { %v191_v33 = vsel %vm190_vm5, %v137_v32, %v136_v30  ;;  %v170_v34 = vpop.trf.xlu1  ;;  %v192_v35 = vsel %vm190_vm5, %v169_v31, %v168_v29  ;;  %v138_v36 = vpop.trf.xlu0 }
  0xb2   : > { %vm197_vm6 = vcmp.lt.s32.totalorder %v170_v34, %v192_v35  ;;  %vm195_vm7 = vcmp.gt.s32.totalorder %v138_v36, %v191_v33  ;;  %vm196_vm8 = vcmp.eq.s32.totalorder %v138_v36, %v191_v33 }
  0xb3   : > { %vm198_vm9 = vmand %vm196_vm8, %vm197_vm6 }
  0xb4   : > { %vm199_vm10 = vmor %vm195_vm7, %vm198_vm9 }
  0xb5   : > { %v200_v37 = vsel %vm199_vm10, %v138_v36, %v191_v33  ;;  %v171_v38 = vpop.trf.xlu1  ;;  %v201_v39 = vsel %vm199_vm10, %v170_v34, %v192_v35  ;;  %v139_v40 = vpop.trf.xlu0 }
  0xb6   : > { %vm206_vm11 = vcmp.lt.s32.totalorder %v171_v38, %v201_v39  ;;  %vm204_vm12 = vcmp.gt.s32.totalorder %v139_v40, %v200_v37  ;;  %vm205_vm13 = vcmp.eq.s32.totalorder %v139_v40, %v200_v37 }
  0xb7   : > { %vm207_vm14 = vmand %vm205_vm13, %vm206_vm11 }
  0xb8   : > { %vm208_vm15 = vmor %vm204_vm12, %vm207_vm14 }
  0xb9   : > { %v209_v41 = vsel %vm208_vm15, %v139_v40, %v200_v37  ;;  %v172_v42 = vpop.trf.xlu1  ;;  %v210_v43 = vsel %vm208_vm15, %v171_v38, %v201_v39  ;;  %v140_v44 = vpop.trf.xlu0 }
  0xba   : > { %vm215_vm0 = vcmp.lt.s32.totalorder %v172_v42, %v210_v43  ;;  %vm213_vm1 = vcmp.gt.s32.totalorder %v140_v44, %v209_v41  ;;  %vm214_vm2 = vcmp.eq.s32.totalorder %v140_v44, %v209_v41 }
  0xbb   : > { %vm216_vm3 = vmand %vm214_vm2, %vm215_vm0 }
  0xbc   : > { %vm217_vm4 = vmor %vm213_vm1, %vm216_vm3 }
  0xbd   : > { %v218_v45 = vsel %vm217_vm4, %v140_v44, %v209_v41  ;;  %v173_v46 = vpop.trf.xlu1  ;;  %v219_v47 = vsel %vm217_vm4, %v172_v42, %v210_v43  ;;  %v141_v48 = vpop.trf.xlu0 }
  0xbe   : > { %vm224_vm5 = vcmp.lt.s32.totalorder %v173_v46, %v219_v47  ;;  %vm222_vm6 = vcmp.gt.s32.totalorder %v141_v48, %v218_v45  ;;  %vm223_vm7 = vcmp.eq.s32.totalorder %v141_v48, %v218_v45 }
  0xbf   : > { %vm225_vm8 = vmand %vm223_vm7, %vm224_vm5 }
  0xc0   : > { %vm226_vm9 = vmor %vm222_vm6, %vm225_vm8 }
  0xc1   : > { %v227_v49 = vsel %vm226_vm9, %v141_v48, %v218_v45  ;;  %v174_v50 = vpop.trf.xlu1  ;;  %v228_v51 = vsel %vm226_vm9, %v173_v46, %v219_v47  ;;  %v142_v52 = vpop.trf.xlu0 }
  0xc2   : > { %vm233_vm10 = vcmp.lt.s32.totalorder %v174_v50, %v228_v51  ;;  %vm231_vm11 = vcmp.gt.s32.totalorder %v142_v52, %v227_v49  ;;  %vm232_vm12 = vcmp.eq.s32.totalorder %v142_v52, %v227_v49 }
  0xc3   : > { %vm234_vm13 = vmand %vm232_vm12, %vm233_vm10 }
  0xc4   : > { %vm235_vm14 = vmor %vm231_vm11, %vm234_vm13 }
  0xc5   : > { %v236_v53 = vsel %vm235_vm14, %v142_v52, %v227_v49  ;;  %v175_v54 = vpop.trf.xlu1  ;;  %v237_v55 = vsel %vm235_vm14, %v174_v50, %v228_v51  ;;  %v143_v56 = vpop.trf.xlu0 }
  0xc6   : > { %vm242_vm15 = vcmp.lt.s32.totalorder %v175_v54, %v237_v55  ;;  %vm240_vm0 = vcmp.gt.s32.totalorder %v143_v56, %v236_v53  ;;  %vm241_vm1 = vcmp.eq.s32.totalorder %v143_v56, %v236_v53 }
  0xc7   : > { %vm243_vm2 = vmand %vm241_vm1, %vm242_vm15 }
  0xc8   : > { %vm244_vm3 = vmor %vm240_vm0, %vm243_vm2 }
  0xc9   : > { %v245_v57 = vsel %vm244_vm3, %v143_v56, %v236_v53  ;;  %v176_v58 = vpop.trf.xlu1  ;;  %v246_v59 = vsel %vm244_vm3, %v175_v54, %v237_v55  ;;  %v144_v60 = vpop.trf.xlu0 }
  0xca   : > { %vm251_vm4 = vcmp.lt.s32.totalorder %v176_v58, %v246_v59  ;;  %vm249_vm5 = vcmp.gt.s32.totalorder %v144_v60, %v245_v57  ;;  %vm250_vm6 = vcmp.eq.s32.totalorder %v144_v60, %v245_v57 }
  0xcb   : > { %vm252_vm7 = vmand %vm250_vm6, %vm251_vm4 }
  0xcc   : > { %vm253_vm8 = vmor %vm249_vm5, %vm252_vm7 }
  0xcd   : > { %v254_v61 = vsel %vm253_vm8, %v144_v60, %v245_v57  ;;  %v177_v62 = vpop.trf.xlu1  ;;  %v255_v63 = vsel %vm253_vm8, %v176_v58, %v246_v59  ;;  %v145_v0 = vpop.trf.xlu0  ;;  %v1063_v60 = vmov 2147483648  }
  0xce   : > { %vm260_vm9 = vcmp.lt.s32.totalorder %v177_v62, %v255_v63  ;;  %vm258_vm10 = vcmp.gt.s32.totalorder %v145_v0, %v254_v61  ;;  %vm259_vm11 = vcmp.eq.s32.totalorder %v145_v0, %v254_v61 }
  0xcf   : > { %vm261_vm12 = vmand %vm259_vm11, %vm260_vm9 }
  0xd0   : > { %vm262_vm13 = vmor %vm258_vm10, %vm261_vm12 }
  0xd1   : > { %v263_v1 = vsel %vm262_vm13, %v145_v0, %v254_v61  ;;  %v178_v2 = vpop.trf.xlu1  ;;  %v264_v4 = vsel %vm262_vm13, %v177_v62, %v255_v63  ;;  %v146_v5 = vpop.trf.xlu0  ;;  %v1064_v61 = vmov 2147483647  }
  0xd2   : > { %vm269_vm14 = vcmp.lt.s32.totalorder %v178_v2, %v264_v4  ;;  %vm267_vm15 = vcmp.gt.s32.totalorder %v146_v5, %v263_v1  ;;  %vm268_vm0 = vcmp.eq.s32.totalorder %v146_v5, %v263_v1 }
  0xd3   : > { %vm270_vm1 = vmand %vm268_vm0, %vm269_vm14 }
  0xd4   : > { %vm271_vm2 = vmor %vm267_vm15, %vm270_vm1 }
  0xd5   : > { %v272_v7 = vsel %vm271_vm2, %v146_v5, %v263_v1  ;;  %v179_v8 = vpop.trf.xlu1  ;;  %v273_v9 = vsel %vm271_vm2, %v178_v2, %v264_v4  ;;  %v147_v10 = vpop.trf.xlu0  ;;  %v495_v2 = vld [vmem:[#allocation12] sm:$0xff] (%p80_p2)  ;;  %v496_v4 = vld [vmem:[#allocation14] sm:$0xff] (%p80_p2)  ;;  %v1065_v5 = vmov (%p80_p2), 839939668  }
  0xd6   : > { %vm278_vm3 = vcmp.lt.s32.totalorder %v179_v8, %v273_v9  ;;  %vm276_vm4 = vcmp.gt.s32.totalorder %v147_v10, %v272_v7  ;;  %vm277_vm5 = vcmp.eq.s32.totalorder %v147_v10, %v272_v7 }
  0xd7   : > { %vm279_vm6 = vmand %vm277_vm5, %vm278_vm3 }
  0xd8   : > { %vm280_vm7 = vmor %vm276_vm4, %vm279_vm6 }
  0xd9   : > { %v281_v11 = vsel %vm280_vm7, %v147_v10, %v272_v7  ;;  %v180_v12 = vpop.trf.xlu1  ;;  %v282_v13 = vsel %vm280_vm7, %v179_v8, %v273_v9  ;;  %v148_v14 = vpop.trf.xlu0  ;;  %v520_v7 = vunpack.c.l.s4 (%p80_p2), %v1065_v5  ;;  %v1066_v8 = vmov (%p80_p2), 1417023538  }
  0xda   : > { %vm287_vm8 = vcmp.lt.s32.totalorder %v180_v12, %v282_v13  ;;  %vm285_vm9 = vcmp.gt.s32.totalorder %v148_v14, %v281_v11  ;;  %vm286_vm10 = vcmp.eq.s32.totalorder %v148_v14, %v281_v11  ;;  %v548_v9 = vunpack.c.l.s4 (%p80_p2), %v1066_v8 }
  0xdb   : > { %vm288_vm11 = vmand %vm286_vm10, %vm287_vm8  ;;  %v521_v10 = vunpack.c.0.s8 (%p80_p2), %v520_v7 }
  0xdc   : > { %vm289_vm12 = vmor %vm285_vm9, %vm288_vm11 }
  0xdd   : > { %v290_v15 = vsel %vm289_vm12, %v148_v14, %v281_v11  ;;  %v181_v16 = vpop.trf.xlu1  ;;  %v291_v17 = vsel %vm289_vm12, %v180_v12, %v282_v13  ;;  %v149_v18 = vpop.trf.xlu0  ;;  %v541_v14 = vand.u32 (%p80_p2), 4, %v1088_v6 }
  0xde   : > { %vm296_vm13 = vcmp.lt.s32.totalorder %v181_v16, %v291_v17  ;;  %vm294_vm14 = vcmp.gt.s32.totalorder %v149_v18, %v290_v15  ;;  %vm295_vm15 = vcmp.eq.s32.totalorder %v149_v18, %v290_v15 }
  0xdf   : > { %vm297_vm0 = vmand %vm295_vm15, %vm296_vm13 }
  0xe0   : > { %vm298_vm1 = vmor %vm294_vm14, %vm297_vm0 }
  0xe1   : > { %v299_v19 = vsel %vm298_vm1, %v149_v18, %v290_v15  ;;  %v182_v20 = vpop.trf.xlu1  ;;  %v300_v21 = vsel %vm298_vm1, %v181_v16, %v291_v17  ;;  %v150_v22 = vpop.trf.xlu0  ;;  %v549_v16 = vunpack.c.0.s8 (%p80_p2), %v548_v9 }
  0xe2   : > { %vm305_vm2 = vcmp.lt.s32.totalorder %v182_v20, %v300_v21  ;;  %vm303_vm3 = vcmp.gt.s32.totalorder %v150_v22, %v299_v19  ;;  %vm304_vm4 = vcmp.eq.s32.totalorder %v150_v22, %v299_v19 }
  0xe3   : > { %vm306_vm5 = vmand %vm304_vm4, %vm305_vm2 }
  0xe4   : > { %vm307_vm6 = vmor %vm303_vm3, %vm306_vm5 }
  0xe5   : > { %v308_v23 = vsel %vm307_vm6, %v150_v22, %v299_v19  ;;  %v183_v24 = vpop.trf.xlu1  ;;  %v309_v25 = vsel %vm307_vm6, %v182_v20, %v300_v21  ;;  %v151_v26 = vpop.trf.xlu0  ;;  %v1067_v22 = vmov (%p80_p2), 1732584193  }
  0xe6   : > { %vm314_vm7 = vcmp.lt.s32.totalorder %v183_v24, %v309_v25  ;;  %vm312_vm8 = vcmp.gt.s32.totalorder %v151_v26, %v308_v23  ;;  %vm313_vm9 = vcmp.eq.s32.totalorder %v151_v26, %v308_v23 }
  0xe7   : > { %vm315_vm10 = vmand %vm313_vm9, %vm314_vm7 }
  0xe8   : > { %vm316_vm11 = vmor %vm312_vm8, %vm315_vm10 }
  0xe9   : > { %v317_v27 = vsel %vm316_vm11, %v151_v26, %v308_v23  ;;  %v318_v28 = vsel %vm316_vm11, %v183_v24, %v309_v25  ;;  %v576_v23 = vunpack.c.l.s4 (%p80_p2), %v1067_v22  ;;  %v1117_v24 = vsub.s32 (%p80_p2), %v549_v16, %v1088_v6 }
  0xea   : > { %v320_v29 = vrot.slane %v317_v27, 1  ;;  %v321_v30 = vrot.slane %v318_v28, 1  ;;  %v569_v25 = vand.u32 (%p80_p2), 2, %v1088_v6 }
  0xec   : > { %vm323_vm12 = vcmp.gt.s32.totalorder %v320_v29, %v317_v27  ;;  %vm324_vm13 = vcmp.eq.s32.totalorder %v320_v29, %v317_v27  ;;  %vm325_vm14 = vcmp.lt.s32.totalorder %v321_v30, %v318_v28 }
  0xed   : > { %vm326_vm15 = vmand %vm324_vm13, %vm325_vm14 }
  0xee   : > { %vm327_vm0 = vmor %vm323_vm12, %vm326_vm15 }
  0xef   : > { %v328_v31 = vsel %vm327_vm0, %v320_v29, %v317_v27  ;;  %v329_v32 = vsel %vm327_vm0, %v321_v30, %v318_v28  ;;  %v577_v28 = vunpack.c.0.s8 (%p80_p2), %v576_v23 }
  0xf0   : > { %v331_v33 = vrot.slane %v328_v31, 1  ;;  %v332_v34 = vrot.slane %v329_v32, 1 }
  0xf2   : > { %vm334_vm1 = vcmp.gt.s32.totalorder %v331_v33, %v328_v31  ;;  %vm335_vm2 = vcmp.eq.s32.totalorder %v331_v33, %v328_v31  ;;  %vm336_vm3 = vcmp.lt.s32.totalorder %v332_v34, %v329_v32 }
  0xf3   : > { %vm337_vm4 = vmand %vm335_vm2, %vm336_vm3 }
  0xf4   : > { %vm338_vm5 = vmor %vm334_vm1, %vm337_vm4 }
  0xf5   : > { %v339_v35 = vsel %vm338_vm5, %v331_v33, %v328_v31  ;;  %v340_v36 = vsel %vm338_vm5, %v332_v34, %v329_v32  ;;  %v1131_v33 = vsub.s32 (%p80_p2), %v577_v28, %v1088_v6 }
  0xf6   : > { %v342_v37 = vrot.slane %v339_v35, 1  ;;  %v343_v38 = vrot.slane %v340_v36, 1 }
  0xf8   : > { %vm347_vm6 = vcmp.lt.s32.totalorder %v343_v38, %v340_v36  ;;  %vm345_vm7 = vcmp.gt.s32.totalorder %v342_v37, %v339_v35  ;;  %vm346_vm8 = vcmp.eq.s32.totalorder %v342_v37, %v339_v35 }
  0xf9   : > { %vm348_vm9 = vmand %vm346_vm8, %vm347_vm6 }
  0xfa   : > { %vm349_vm10 = vmor %vm345_vm7, %vm348_vm9 }
  0xfb   : > { %v350_v39 = vsel %vm349_vm10, %v342_v37, %v339_v35  ;;  %v351_v40 = vsel %vm349_vm10, %v343_v38, %v340_v36  ;;  %v597_v37 = vand.u32 (%p80_p2), 1, %v1088_v6 }
  0xfc   : > { %v353_v41 = vrot.slane %v350_v39, 1  ;;  %v354_v42 = vrot.slane %v351_v40, 1 }
  0xfe   : > { %vm356_vm11 = vcmp.gt.s32.totalorder %v353_v41, %v350_v39  ;;  %vm357_vm12 = vcmp.eq.s32.totalorder %v353_v41, %v350_v39  ;;  %vm358_vm13 = vcmp.lt.s32.totalorder %v354_v42, %v351_v40 }
  0xff   : > { %vm359_vm14 = vmand %vm357_vm12, %vm358_vm13 }
 0x100   : > { %vm360_vm15 = vmor %vm356_vm11, %vm359_vm14 }
 0x101   : > { %v361_v43 = vsel %vm360_vm15, %v353_v41, %v350_v39  ;;  %v362_v44 = vsel %vm360_vm15, %v354_v42, %v351_v40 }
 0x102   : > { %v364_v45 = vrot.slane %v361_v43, 1  ;;  %v365_v46 = vrot.slane %v362_v44, 1 }
 0x104   : > { %vm367_vm0 = vcmp.gt.s32.totalorder %v364_v45, %v361_v43  ;;  %vm368_vm1 = vcmp.eq.s32.totalorder %v364_v45, %v361_v43  ;;  %vm369_vm2 = vcmp.lt.s32.totalorder %v365_v46, %v362_v44 }
 0x105   : > { %vm370_vm3 = vmand %vm368_vm1, %vm369_vm2 }
 0x106   : > { %vm371_vm4 = vmor %vm367_vm0, %vm370_vm3 }
 0x107   : > { %v372_v47 = vsel %vm371_vm4, %v364_v45, %v361_v43  ;;  %v373_v48 = vsel %vm371_vm4, %v365_v46, %v362_v44 }
 0x108   : > { %v375_v49 = vrot.slane %v372_v47, 1  ;;  %v376_v50 = vrot.slane %v373_v48, 1 }
 0x10a   : > { %vm378_vm5 = vcmp.gt.s32.totalorder %v375_v49, %v372_v47  ;;  %vm379_vm6 = vcmp.eq.s32.totalorder %v375_v49, %v372_v47  ;;  %vm380_vm7 = vcmp.lt.s32.totalorder %v376_v50, %v373_v48 }
 0x10b   : > { %vm381_vm8 = vmand %vm379_vm6, %vm380_vm7  ;;  %vm1111_vm6 = vcmp.ne.s32.totalorder (%p80_p2), %v541_v14, 0 }
 0x10c   : > { %vm382_vm9 = vmor %vm378_vm5, %vm381_vm8 }
 0x10d   : > { %v383_v51 = vsel %vm382_vm9, %v375_v49, %v372_v47  ;;  %v384_v52 = vsel %vm382_vm9, %v376_v50, %v373_v48 }
 0x10e   : > { %v386_v53 = vrot.slane %v383_v51, 1  ;;  %v387_v54 = vrot.slane %v384_v52, 1 }
 0x110   : > { %vm389_vm10 = vcmp.gt.s32.totalorder %v386_v53, %v383_v51  ;;  %vm390_vm11 = vcmp.eq.s32.totalorder %v386_v53, %v383_v51  ;;  %vm391_vm12 = vcmp.lt.s32.totalorder %v387_v54, %v384_v52 }
 0x111   : > { %vm392_vm13 = vmand %vm390_vm11, %vm391_vm12 }
 0x112   : > { %vm393_vm14 = vmor %vm389_vm10, %vm392_vm13 }
 0x113   : > { %v395_v55 = vsel %vm393_vm14, %v387_v54, %v384_v52  ;;  %v394_v56 = vsel %vm393_vm14, %v386_v53, %v383_v51 }
 0x114   : > { %402 = vxpose.xlu0.b32.start.end [1/1] (short) (narrow) %v395_v55, 8  ;;  %398 = vst [vmem:[%s397_s11] sm:$0x1] %v394_v56  ;;  %400 = vst [vmem:[%s399_s12] sm:$0x1] %v395_v55  ;;  %s936_s11 = sshll.u32 (%p80_p2), %s1068_s0, 4  ;;  %s937_s11 = int_to_ptr.vmem [resolvable:$true] %s936_s11 }
 0x115   :  { %s1027_s12 = scalar_lea.vmem (%p80_p2), %s937_s11, 32  ;;  %p1032_p4 = scmp.lt.s32.totalorder (%p80_p2), %s937_s11, %s937_s11 }
 0x116   :  { %p1028_p3 = scmp.ne.s32.totalorder (%p80_p2), %s937_s11, %s1027_s12  ;;  %p1033_p5 = scmp.lt.s32.totalorder (%p80_p2), %s1027_s12, %s1027_s12 }
 0x118   :  { %p1034_p6 = por (%p80_p2), %p1033_p5, %p1032_p4 }
 0x11a   :  { %p1035_p7 = pnand (%p80_p2), %p1034_p6, %p1028_p3 }
 0x11b   :  { %v483_v0 = vld [vmem:[#allocation13 + $0x7] ss:$-1 sm:$0xff] (%p80_p2)  ;;  %v489_v1 = vld [vmem:[#allocation15 + $0x7] ss:$-1 sm:$0xff] (%p80_p2) }
 0x11c   :  { %vm501_vm1 = vcmp.gt.s32.totalorder (%p80_p2), %v495_v2, %v483_v0  ;;  %vm502_vm2 = vcmp.eq.s32.totalorder (%p80_p2), %v495_v2, %v483_v0  ;;  %vm503_vm3 = vcmp.lt.s32.totalorder (%p80_p2), %v496_v4, %v489_v1 }
 0x11d   :  { %vm504_vm4 = vmand (%p80_p2), %vm502_vm2, %vm503_vm3  ;;  %vm1124_vm2 = vcmp.ne.s32.totalorder (%p80_p2), %v569_v25, 0 }
 0x11e   :  { %vm505_vm5 = vmor (%p80_p2), %vm501_vm1, %vm504_vm4 }
 0x11f   :  { %v506_v11 = vsel (%p80_p2), %vm505_vm5, %v495_v2, %v483_v0  ;;  %v508_v12 = vsel (%p80_p2), %vm505_vm5, %v483_v0, %v495_v2  ;;  %v510_v13 = vsel (%p80_p2), %vm505_vm5, %v496_v4, %v489_v1  ;;  %v512_v15 = vsel (%p80_p2), %vm505_vm5, %v489_v1, %v496_v4 }
 0x194   : > { %v418_v57 = vpop.trf.xlu0 }
 0x195   : > { %v457_v58 = vrot.slane %v418_v57, 1  ;;  %1004 = vpush %v418_v57 }
 0x197   : > { %1006 = vpush %v457_v58 }
 0x1c6   : > { %s1005_s13 = spop %1004 }
 0x1c7   : > { %s435_s14 = sshrl.u32 %s1005_s13, 9  ;;  %s437_s15 = ssub.s32 0, %s1005_s13 }
 0x1c8   : > { %p436_p0 = scmp.lt.s32.totalorder %s1005_s13, 0  ;;  %s996_s16 = smin.u32 %s1005_s13, %s437_s15 }
 0x1c9   : > { %s439_s17 = sand.u32 511, %s996_s16   ;;  %s998_s18 = sshll.u32 %s435_s14, 3 }
 0x1ca   : > { %s440_s19 = ssub.s32 0, %s439_s17  ;;  %s1007_s20 = spop %1006 }
 0x1cb   : > { %s1201_s19 = smov (!%p436_p0, %s440_s19), %s439_s17  ;;  %s461_s24 = ssub.s32 0, %s1007_s20 }
 0x1cc   : > { %s442_s21 = sshrl.u32 %s1201_s19, 7  ;;  %s444_s22 = sand.u32 127, %s1201_s19  }
 0x1cd   : > { %s997_s23 = sshll.u32 %s442_s21, 8  ;;  %s1000_s26 = smin.u32 %s1007_s20, %s461_s24 }
 0x1ce   : > { %s445_s25 = sadd.s32 %s997_s23, %s444_s22  ;;  %p460_p1 = scmp.lt.s32.totalorder %s1007_s20, 0 }
 0x1cf   : > { %v447_v59 = vstv %s445_s25  ;;  %s463_s27 = sand.u32 511, %s1000_s26   ;;  %s451_s29 = scalar_lea.vmem [#allocation16], %s998_s18 }
 0x1d0   : > { %vm449_vm15 = vcmp.eq.s32.totalorder %v46_v3, %v447_v59  ;;  %s464_s28 = ssub.s32 0, %s463_s27  ;;  %s454_s30 = scalar_lea.vmem [#allocation17], %s998_s18 }
 0x1d1   : > { %452 = vst.msk [vmem:[%s451_s29] sm:$0xff] %vm449_vm15, %v1063_v60  ;;  %455 = vst.msk [vmem:[%s454_s30] sm:$0xff] %vm449_vm15, %v1064_v61  ;;  %s1203_s28 = smov (!%p460_p1, %s464_s28), %s463_s27  ;;  %s459_s3 = sshrl.u32 %s1007_s20, 9 }
 0x1d2   : > { %s466_s4 = sshrl.u32 %s1203_s28, 7  ;;  %s468_s5 = sand.u32 127, %s1203_s28  }
 0x1d3   : > { %s1001_s6 = sshll.u32 %s466_s4, 8  ;;  %s1002_s8 = sshll.u32 %s459_s3, 3 }
 0x1d4   : > { %s469_s7 = sadd.s32 %s1001_s6, %s468_s5  ;;  %s475_s9 = scalar_lea.vmem [#allocation16], %s1002_s8 }
 0x1d5   : > { %v471_v62 = vstv %s469_s7  ;;  %s478_s10 = scalar_lea.vmem [#allocation17], %s1002_s8  ;;  %82 = sbr.rel (!%p80_p2) target bundleno = 16 (0x10), region = 105 }
 0x1d6   : > { %v472_v63 = vadd.s32 128, %v471_v62 }
 0x1d8   : > { %vm473_vm0 = vcmp.eq.s32.totalorder %v46_v3, %v472_v63  ;;  %v1106_v3 = vsub.s32 (%p80_p2), %v521_v10, %v1088_v6 }
 0x1d9   : > { %476 = vst.msk [vmem:[%s475_s9] sm:$0xff] %vm473_vm0, %v1063_v60  ;;  %479 = vst.msk [vmem:[%s478_s10] sm:$0xff] %vm473_vm0, %v1064_v61 }
 0x1da   :  { %v525_v17 = vrot.slane (%p80_p2), %v506_v11, %v1106_v3  ;;  %v532_v18 = vrot.slane (%p80_p2), %v510_v13, %v1106_v3  ;;  %v706_v19 = vrot.slane (%p80_p2), %v508_v12, %v1106_v3  ;;  %v713_v21 = vrot.slane (%p80_p2), %v512_v15, %v1106_v3 }
 0x1dc   :  { %vm534_vm7 = vcmp.gt.s32.totalorder %v506_v11, %v525_v17  ;;  %vm535_vm8 = vcmp.eq.s32.totalorder %v506_v11, %v525_v17  ;;  %vm536_vm9 = vcmp.lt.s32.totalorder %v510_v13, %v532_v18  ;;  %vm716_vm11 = vcmp.eq.s32.totalorder %v508_v12, %v706_v19 }
 0x1dd   :  { %vm537_vm10 = vmand %vm535_vm8, %vm536_vm9  ;;  %vm717_vm12 = vcmp.lt.s32.totalorder %v512_v15, %v713_v21  ;;  %vm715_vm14 = vcmp.gt.s32.totalorder %v508_v12, %v706_v19 }
 0x1de   :  { %vm538_vm13 = vmor %vm534_vm7, %vm537_vm10 }
 0x1df   :  { %vm543_vm15 = vmxor %vm538_vm13, %vm1111_vm6 }
 0x1e0   :  { %v544_v26 = vsel %vm543_vm15, %v506_v11, %v525_v17  ;;  %v545_v27 = vsel %vm543_vm15, %v510_v13, %v532_v18  ;;  %vm718_vm0 = vmand %vm716_vm11, %vm717_vm12 }
 0x1e1   :  { %v553_v29 = vrot.slane %v544_v26, %v1117_v24  ;;  %v560_v30 = vrot.slane %v545_v27, %v1117_v24  ;;  %vm719_vm1 = vmor %vm715_vm14, %vm718_vm0 }
 0x1e2   :  { %vm724_vm3 = vmxor %vm719_vm1, %vm1111_vm6 }
 0x1e3   :  { %vm562_vm4 = vcmp.gt.s32.totalorder %v544_v26, %v553_v29  ;;  %vm563_vm5 = vcmp.eq.s32.totalorder %v544_v26, %v553_v29  ;;  %vm564_vm7 = vcmp.lt.s32.totalorder %v545_v27, %v560_v30  ;;  %v725_v32 = vsel %vm724_vm3, %v508_v12, %v706_v19 }
 0x1e4   :  { %vm565_vm8 = vmand %vm563_vm5, %vm564_vm7  ;;  %v726_v34 = vsel %vm724_vm3, %v512_v15, %v713_v21  ;;  %v734_v35 = vrot.slane %v725_v32, %v1117_v24 }
 0x1e5   :  { %vm566_vm9 = vmor %vm562_vm4, %vm565_vm8  ;;  %v741_v36 = vrot.slane %v726_v34, %v1117_v24  ;;  %vm1140_vm4 = vcmp.ne.s32.totalorder %v597_v37, 0 }
 0x1e6   :  { %vm571_vm10 = vmxor %vm566_vm9, %vm1124_vm2  ;;  %vm743_vm11 = vcmp.gt.s32.totalorder %v725_v32, %v734_v35  ;;  %vm744_vm12 = vcmp.eq.s32.totalorder %v725_v32, %v734_v35 }
 0x1e7   :  { %v572_v38 = vsel %vm571_vm10, %v544_v26, %v553_v29  ;;  %v573_v39 = vsel %vm571_vm10, %v545_v27, %v560_v30  ;;  %vm745_vm13 = vcmp.lt.s32.totalorder %v726_v34, %v741_v36 }
 0x1e8   :  { %v581_v40 = vrot.slane %v572_v38, %v1131_v33  ;;  %v588_v41 = vrot.slane %v573_v39, %v1131_v33  ;;  %vm746_vm14 = vmand %vm744_vm12, %vm745_vm13 }
 0x1e9   :  { %vm747_vm15 = vmor %vm743_vm11, %vm746_vm14 }
 0x1ea   :  { %vm590_vm0 = vcmp.gt.s32.totalorder %v572_v38, %v581_v40  ;;  %vm591_vm1 = vcmp.eq.s32.totalorder %v572_v38, %v581_v40  ;;  %vm592_vm3 = vcmp.lt.s32.totalorder %v573_v39, %v588_v41  ;;  %vm752_vm5 = vmxor %vm747_vm15, %vm1124_vm2 }
 0x1eb   :  { %vm593_vm7 = vmand %vm591_vm1, %vm592_vm3  ;;  %v753_v6 = vsel %vm752_vm5, %v725_v32, %v734_v35  ;;  %v754_v43 = vsel %vm752_vm5, %v726_v34, %v741_v36 }
 0x1ec   :  { %vm594_vm8 = vmor %vm590_vm0, %vm593_vm7  ;;  %v762_v44 = vrot.slane %v753_v6, %v1131_v33  ;;  %v769_v45 = vrot.slane %v754_v43, %v1131_v33 }
 0x1ed   :  { %vm599_vm9 = vmxor %vm594_vm8, %vm1140_vm4 }
 0x1ee   :  { %v600_v46 = vsel %vm599_vm9, %v572_v38, %v581_v40  ;;  %v601_v47 = vsel %vm599_vm9, %v573_v39, %v588_v41  ;;  %vm771_vm10 = vcmp.gt.s32.totalorder %v753_v6, %v762_v44  ;;  %vm772_vm11 = vcmp.eq.s32.totalorder %v753_v6, %v762_v44 }
 0x1ef   :  { %v615_v48 = vrot.slane %v600_v46, %v1106_v3  ;;  %v622_v49 = vrot.slane %v601_v47, %v1106_v3  ;;  %vm773_vm12 = vcmp.lt.s32.totalorder %v754_v43, %v769_v45 }
 0x1f0   :  { %vm774_vm13 = vmand %vm772_vm11, %vm773_vm12 }
 0x1f1   :  { %vm624_vm14 = vcmp.gt.s32.totalorder %v600_v46, %v615_v48  ;;  %vm625_vm15 = vcmp.eq.s32.totalorder %v600_v46, %v615_v48  ;;  %vm626_vm0 = vcmp.lt.s32.totalorder %v601_v47, %v622_v49  ;;  %vm775_vm1 = vmor %vm771_vm10, %vm774_vm13 }
 0x1f2   :  { %vm627_vm3 = vmand %vm625_vm15, %vm626_vm0 }
 0x1f3   :  { %vm628_vm5 = vmor %vm624_vm14, %vm627_vm3 }
 0x1f4   :  { %vm633_vm7 = vmxor %vm628_vm5, %vm1111_vm6 }
 0x1f5   :  { %v634_v50 = vsel %vm633_vm7, %v600_v46, %v615_v48  ;;  %v635_v51 = vsel %vm633_vm7, %v601_v47, %v622_v49  ;;  %vm780_vm8 = vmxor %vm775_vm1, %vm1140_vm4 }
 0x1f6   :  { %v643_v52 = vrot.slane %v634_v50, %v1117_v24  ;;  %v650_v53 = vrot.slane %v635_v51, %v1117_v24  ;;  %v781_v54 = vsel %vm780_vm8, %v753_v6, %v762_v44  ;;  %v782_v55 = vsel %vm780_vm8, %v754_v43, %v769_v45 }
 0x1f7   :  { %v796_v56 = vrot.slane %v781_v54, %v1106_v3  ;;  %v803_v57 = vrot.slane %v782_v55, %v1106_v3 }
 0x1f8   :  { %vm652_vm9 = vcmp.gt.s32.totalorder %v634_v50, %v643_v52  ;;  %vm653_vm10 = vcmp.eq.s32.totalorder %v634_v50, %v643_v52  ;;  %vm654_vm11 = vcmp.lt.s32.totalorder %v635_v51, %v650_v53 }
 0x1f9   :  { %vm655_vm12 = vmand %vm653_vm10, %vm654_vm11  ;;  %vm806_vm13 = vcmp.eq.s32.totalorder %v781_v54, %v796_v56  ;;  %vm807_vm14 = vcmp.lt.s32.totalorder %v782_v55, %v803_v57  ;;  %vm805_vm0 = vcmp.gt.s32.totalorder %v781_v54, %v796_v56 }
 0x1fa   :  { %vm656_vm15 = vmor %vm652_vm9, %vm655_vm12 }
 0x1fb   :  { %vm661_vm1 = vmxor %vm656_vm15, %vm1124_vm2 }
 0x1fc   :  { %v662_v58 = vsel %vm661_vm1, %v634_v50, %v643_v52  ;;  %v663_v59 = vsel %vm661_vm1, %v635_v51, %v650_v53  ;;  %vm808_vm3 = vmand %vm806_vm13, %vm807_vm14 }
 0x1fd   :  { %v671_v60 = vrot.slane %v662_v58, %v1131_v33  ;;  %v678_v61 = vrot.slane %v663_v59, %v1131_v33  ;;  %vm809_vm5 = vmor %vm805_vm0, %vm808_vm3 }
 0x1fe   :  { %vm814_vm7 = vmxor %vm809_vm5, %vm1111_vm6 }
 0x1ff   :  { %vm680_vm8 = vcmp.gt.s32.totalorder %v662_v58, %v671_v60  ;;  %vm681_vm10 = vcmp.eq.s32.totalorder %v662_v58, %v671_v60  ;;  %vm682_vm11 = vcmp.lt.s32.totalorder %v663_v59, %v678_v61  ;;  %v815_v62 = vsel %vm814_vm7, %v781_v54, %v796_v56 }
 0x200   :  { %vm683_vm9 = vmand %vm681_vm10, %vm682_vm11  ;;  %v816_v63 = vsel %vm814_vm7, %v782_v55, %v803_v57  ;;  %v824_v0 = vrot.slane %v815_v62, %v1117_v24 }
 0x201   :  { %vm684_vm12 = vmor %vm680_vm8, %vm683_vm9  ;;  %v831_v1 = vrot.slane %v816_v63, %v1117_v24 }
 0x202   :  { %vm689_vm13 = vmxor %vm684_vm12, %vm1140_vm4  ;;  %vm833_vm14 = vcmp.gt.s32.totalorder %v815_v62, %v824_v0  ;;  %vm834_vm15 = vcmp.eq.s32.totalorder %v815_v62, %v824_v0 }
 0x203   :  { %v690_v2 = vsel %vm689_vm13, %v662_v58, %v671_v60  ;;  %v691_v4 = vsel %vm689_vm13, %v663_v59, %v678_v61  ;;  %vm835_vm0 = vcmp.lt.s32.totalorder %v816_v63, %v831_v1 }
 0x204   :  { %693 = vst [vmem:[#allocation12] sm:$0xff] %v690_v2  ;;  %694 = vst [vmem:[#allocation14] sm:$0xff] %v691_v4 }
 0x205   :  { %vm836_vm6 = vmand %vm834_vm15, %vm835_vm0 }
 0x206   :  { %vm837_vm1 = vmor %vm833_vm14, %vm836_vm6 }
 0x207   :  { %vm842_vm3 = vmxor %vm837_vm1, %vm1124_vm2 }
 0x208   :  { %v843_v5 = vsel %vm842_vm3, %v815_v62, %v824_v0  ;;  %v844_v7 = vsel %vm842_vm3, %v816_v63, %v831_v1 }
 0x209   :  { %v852_v8 = vrot.slane %v843_v5, %v1131_v33  ;;  %v859_v9 = vrot.slane %v844_v7, %v1131_v33 }
 0x20b   :  { %vm861_vm5 = vcmp.gt.s32.totalorder %v843_v5, %v852_v8  ;;  %vm862_vm7 = vcmp.eq.s32.totalorder %v843_v5, %v852_v8  ;;  %vm863_vm8 = vcmp.lt.s32.totalorder %v844_v7, %v859_v9  ;;  %v901_v12 = vld [vmem:[#allocation14] sm:$0xff]  ;;  %v877_v13 = vld [vmem:[#allocation12] sm:$0xff] }
 0x20c   :  { %vm864_vm10 = vmand %vm862_vm7, %vm863_vm8  ;;  %902 = vxpose.xlu0.b32.start.end [1/1] (short) (narrow) %v901_v12, 8  ;;  %vm878_vm2 = vcmp.lt.s32.totalorder %v877_v13, 0  ;;  %v879_v14 = vsub.s32 2147483647, %v877_v13 }
 0x20d   :  { %vm865_vm11 = vmor %vm861_vm5, %vm864_vm10 }
 0x20e   :  { %vm870_vm9 = vmxor %vm865_vm11, %vm1140_vm4  ;;  %v880_v15 = vsel %vm878_vm2, %v879_v14, %v877_v13 }
 0x20f   :  { %v871_v10 = vsel %vm870_vm9, %v843_v5, %v852_v8  ;;  %v872_v11 = vsel %vm870_vm9, %v844_v7, %v859_v9  ;;  %881 = vst [vmem:[#allocation12] sm:$0xff] %v880_v15 }
 0x210   :  { %874 = vst [vmem:[#allocation13] sm:$0xff] %v871_v10  ;;  %875 = vst [vmem:[#allocation15] sm:$0xff] %v872_v11  ;;  %883 = vxpose.xlu0.b32.start.end [1/1] (short) (narrow) %v880_v15, 8 }
 0x28c   :  { %v903_v3 = vpop.trf.xlu0 }
 0x28d   :  { %919 = vst [vmem:[#allocation10] sm:$0xff] %v903_v3 }
 0x290   :  { %v884_v16 = vpop.trf.xlu0 }
 0x291   :  { %900 = vst [vmem:[#allocation7] sm:$0xff] %v884_v16 }
 0x294   :  { %v929_v17 = vld [vmem:[#allocation10] sm:$0x3] }
 0x295   :  { %931 = vst [vmem:[#allocation11] sm:$0x3] %v929_v17 }
 0x298   :  { %v923_v18 = vld [vmem:[#allocation7] sm:$0x3] }
 0x299   :  { %925 = vst [vmem:[#allocation8] sm:$0x3] %v923_v18 }
 0x29a   :  { %1038 = shalt.err (!%p1035_p7)
}
 0x29b   :  { %s1039_s15 = scalar_lea.hbm %s1192_s1, 32 }
 0x29c   :  { %p1040_p8 = scmp.ne.s32.totalorder %s1192_s1, %s1039_s15  ;;  %p1043_p9 = scmp.lt.u32.totalorder %s1039_s15, %s1192_s1 }
 0x29e   :  { %p1045_p10 = pnand %p1043_p9, %p1040_p8 }
 0x2a0   :  { %1048 = shalt.err (!%p1045_p10)
}
 0x2a1   :  { %939 = dma.vmem_to_hbm [thread:$0]  %s937_s11, 32, %s1192_s1, [#allocation9]   ;;  %v955_v19 = vld [vmem:[#allocation11] sm:$0x3] }
 0x2a2   :  { %956 = vst [vmem:[%s1193_s2] sm:$0x3] %v955_v19 }
 0x2a3   :  { %1053 = dma.done.wait [#allocation9], 32  }
 0x2a4   :  { %1054 = vsyncadd [#allocation9], 4294967264 }
 0x2a5   :  { %972 = vsyncpa [#allocation9], 1 }

// kernel: faster_rcnn_forward.3
= control target key start
LH: loop header
LB: loop body
LE: loop exit
PB: predicated region body
PF: predicated region fallthrough
CT: control target
= control target key end

     0   :  { %s2086_s25 = smov 0   ;;  %s2433_s0 = inlined_call_operand.vmem [shape: f32[2,2,784], index: 0, kind: input, shape index: {}]   ;;  %s2434_s1 = inlined_call_operand.vmem [shape: f32[2,98,16], index: 1, kind: input, shape index: {}]   ;;  %s2435_s2 = inlined_call_operand.vmem [shape: bf16[784,32], index: 2, kind: input, shape index: {}]   ;;  %s2436_s3 = inlined_call_operand.vmem [shape: f32[1,32], index: 3, kind: input, shape index: {}, may-alias: {3,5}]   ;;  %s2437_s4 = inlined_call_operand.vmem [shape: bf16[32,32], index: 4, kind: input, shape index: {}]   ;;  %s2438_s5 = inlined_call_operand.vmem [shape: f32[1,32], index: 5, kind: input, shape index: {}, may-alias: {3,5}]   ;;  %s2439_s6 = inlined_call_operand.vmem [shape: bf16[32,10], index: 6, kind: input, shape index: {}]   ;;  %s2440_s7 = inlined_call_operand.vmem [shape: f32[1,10], index: 7, kind: input, shape index: {}]   ;;  %s2441_s8 = inlined_call_operand.vmem [shape: bf16[16,64], index: 8, kind: input, shape index: {}]   ;;  %s2442_s9 = inlined_call_operand.vmem [shape: f32[1,64], index: 9, kind: input, shape index: {}]   ;;  %s2443_s10 = inlined_call_operand.vmem [shape: bf16[64,8], index: 10, kind: input, shape index: {}]   ;;  %s2444_s11 = inlined_call_operand.vmem [shape: f32[1,8], index: 11, kind: input, shape index: {}]   ;;  %s2445_s12 = inlined_call_operand.vmem [shape: f32[2,2,10], index: 12, kind: output, shape index: {0}]   ;;  %s2446_s13 = inlined_call_operand.vmem [shape: f32[2,98,8], index: 13, kind: output, shape index: {1}]  }
   0x1 LB: > { %s1652_s26 = sadd.s32 4294967295, %s2011_s25   ;;  %p1656_p0 = scmp.ge.s32.totalorder %s2011_s25, 1  ;;  %s2011_s25 = sphi %s2086_s25, %s24_s25  }
   0x2   : > { %p400_p1 = scmp.lt.s32.totalorder %s2011_s25, 3 }
   0x4   : > { %p401_p2 = pnand %p1656_p0, %p400_p1 }
   0x5   : > { %v1945_v0 = vld [vmem:[%s2435_s2 + $0x40] sm:$0xff] (!%p401_p2)   ;;  %v1949_v4 = vld [vmem:[%s2435_s2 + $0x48] sm:$0xff] (!%p401_p2)   ;;  %v1953_v8 = vld [vmem:[%s2435_s2 + $0x50] sm:$0xff] (!%p401_p2)   ;;  %p453_p3 = scmp.lt.s32.totalorder (!%p401_p2), %s1652_s26, 1  ;;  %v481_v28 = vlaneseq (!%p401_p2)  ;;  %v2013_v35 = vmov (!%p401_p2), 1983009808  }
   0x6   : > { %404 = sbr.rel (%p401_p2) target bundleno = 1000 (0x3e8), region = 68  ;;  %v1946_v1 = vld [vmem:[%s2435_s2] sm:$0xff] (!%p401_p2)   ;;  %1743 = vmatprep.subr.bf16.mxu0 (!%p401_p2), %v1945_v0  ;;  %v1950_v5 = vld [vmem:[%s2435_s2 + $0x8] sm:$0xff] (!%p401_p2)   ;;  %v1954_v9 = vld [vmem:[%s2435_s2 + $0x10] sm:$0xff] (!%p401_p2)   ;;  %v479_v36 = vunpack.c.l.s4 (!%p401_p2), %v2013_v35  ;;  %v2014_v40 = vmov (!%p401_p2), 0.0   ;;  %vm2015_vm0 = vmmov (!%p401_p2), 0  }
   0x7   : > { %v1947_v2 = vld [vmem:[%s2435_s2 + $0xc0] sm:$0xff] (!%p401_p2)   ;;  %1744 = vmatpush3.bf16.msra.mxu0 (!%p401_p2), %v1946_v1  ;;  %v1951_v6 = vld [vmem:[%s2435_s2 + $0xc8] sm:$0xff] (!%p401_p2)   ;;  %v1955_v10 = vld [vmem:[%s2435_s2 + $0xd0] sm:$0xff] (!%p401_p2)   ;;  %v482_v33 = vshrl.u32 (!%p401_p2), %v481_v28, 7  ;;  %vm923_vm1 = vcmask (!%p401_p2), 130048   ;;  %vm1112_vm2 = vcmask (!%p401_p2), 261120  }
   0x8   : > { %v1948_v3 = vld [vmem:[%s2435_s2 + $0x80] sm:$0xff] (!%p401_p2)   ;;  %1765 = vmatprep.subr.bf16.mxu1 (!%p401_p2), %v1947_v2  ;;  %1745 = vmatprep.subr.bf16.mxu0 (!%p401_p2), %v1949_v4  ;;  %v1952_v7 = vld [vmem:[%s2435_s2 + $0x88] sm:$0xff] (!%p401_p2)   ;;  %v1956_v11 = vld [vmem:[%s2435_s2 + $0x90] sm:$0xff] (!%p401_p2)   ;;  %v480_v38 = vunpack.c.0.s8 (!%p401_p2), %v479_v36  ;;  %vm1224_vm3 = vcmask (!%p401_p2), 74752   ;;  %vm1429_vm4 = vcmask (!%p401_p2), 523264   ;;  %vm1539_vm5 = vcmask (!%p401_p2), 64512  }
   0x9   : > { %1766 = vmatpush3.bf16.msra.mxu1 (!%p401_p2), %v1948_v3  ;;  %v1957_v12 = vld [vmem:[%s2435_s2 + $0x58] sm:$0xff] (!%p401_p2)   ;;  %v1961_v16 = vld [vmem:[%s2435_s2 + $0x60] sm:$0xff] (!%p401_p2)   ;;  %v1965_v20 = vld [vmem:[%s2435_s2 + $0x68] sm:$0xff] (!%p401_p2)   ;;  %vm1552_vm6 = vcmask (!%p401_p2), 58368  }
   0xa   : > { %1767 = vmatprep.subr.bf16.mxu1 (!%p401_p2), %v1951_v6  ;;  %v1958_v13 = vld [vmem:[%s2435_s2 + $0x18] sm:$0xff] (!%p401_p2)   ;;  %v1962_v17 = vld [vmem:[%s2435_s2 + $0x20] sm:$0xff] (!%p401_p2)   ;;  %v1966_v21 = vld [vmem:[%s2435_s2 + $0x28] sm:$0xff] (!%p401_p2)   ;;  %v483_v42 = vsub.s32 (!%p401_p2), %v480_v38, %v482_v33 }
   0xb   : > { %1746 = vmatpush3.bf16.msra.mxu0 (!%p401_p2), %v1950_v5  ;;  %v1959_v14 = vld [vmem:[%s2435_s2 + $0xd8] sm:$0xff] (!%p401_p2)   ;;  %v1963_v18 = vld [vmem:[%s2435_s2 + $0xe0] sm:$0xff] (!%p401_p2)   ;;  %v1967_v22 = vld [vmem:[%s2435_s2 + $0xe8] sm:$0xff] (!%p401_p2)  }
   0xc   : > { %1747 = vmatprep.subr.bf16.mxu0 (!%p401_p2), %v1953_v8  ;;  %v1960_v15 = vld [vmem:[%s2435_s2 + $0x98] sm:$0xff] (!%p401_p2)   ;;  %v1964_v19 = vld [vmem:[%s2435_s2 + $0xa0] sm:$0xff] (!%p401_p2)   ;;  %v1968_v23 = vld [vmem:[%s2435_s2 + $0xa8] sm:$0xff] (!%p401_p2)  }
   0xd   : > { %1768 = vmatpush3.bf16.msra.mxu1 %v1952_v7  ;;  %s2448_s26 = smov (!%p453_p3, %s1652_s26), 1  ;;  %v1969_v24 = vld [vmem:[%s2435_s2 + $0x70] sm:$0xff]   ;;  %v1973_v29 = vld [vmem:[%s2435_s2 + $0x78] sm:$0xff]   ;;  %v1978_v37 = vld [vmem:[%s2435_s2 + $0x140] sm:$0xff]  }
   0xe   : > { %1769 = vmatprep.subr.bf16.mxu1 %v1955_v10  ;;  %s1932_s15 = smul.u32 14, %s2448_s26  ;;  %v1970_v25 = vld [vmem:[%s2435_s2 + $0x30] sm:$0xff]   ;;  %v1974_v30 = vld [vmem:[%s2435_s2 + $0x38] sm:$0xff]   ;;  %v1980_v54 = vld [vmem:[%s2435_s2 + $0x100] sm:$0xff]  }
   0xf   : > { %1748 = vmatpush3.bf16.msra.mxu0 %v1954_v9  ;;  %v1971_v26 = vld [vmem:[%s2435_s2 + $0xf0] sm:$0xff]   ;;  %v1975_v31 = vld [vmem:[%s2435_s2 + $0xf8] sm:$0xff]   ;;  %v1981_v55 = vld [vmem:[%s2435_s2 + $0x148] sm:$0xff]   ;;  %s1933_s19 = smul.u32 104, %s2448_s26 }
  0x10   : > { %1749 = vmatprep.subr.bf16.mxu0 %v1957_v12  ;;  %v1972_v27 = vld [vmem:[%s2435_s2 + $0xb0] sm:$0xff]   ;;  %s457_s28 = scalar_lea.vmem %s2433_s0, %s1932_s15  ;;  %v1977_v34 = vld [vmem:[%s2435_s2 + $0xb8] sm:$0xff]   ;;  %v1982_v58 = vld [vmem:[%s2435_s2 + $0x108] sm:$0xff]   ;;  %s1659_s15 = sshll.u32 %s2448_s26, 1 }
  0x11   : > { %1770 = vmatpush3.bf16.msra.mxu1 %v1956_v11  ;;  %v473_v32 = vld [vmem:[%s457_s28] sm:$0xff]  ;;  %v474_v41 = vld [vmem:[%s457_s28 + $0x8] sm:$0x3f]  ;;  %v1983_v59 = vld [vmem:[%s2435_s2 + $0x150] sm:$0xff]   ;;  %s2295_s24 = scalar_lea.vmem %s2434_s1, %s1933_s19  ;;  %s2403_s17 = scalar_lea.vmem %s2446_s13, %s1933_s19 }
  0x12   : > { %1771 = vmatprep.subr.bf16.mxu1 %v1959_v14  ;;  %v477_v39 = vcombine.high %v473_v32, %v473_v32  ;;  %v484_v43 = vrot.slane %v473_v32, %v483_v42  ;;  %v501_v45 = vrot.slane %v474_v41, %v483_v42  ;;  %v494_v51 = vcombine.high %v474_v41, %v474_v41  ;;  %v1984_v60 = vld [vmem:[%s2435_s2 + $0x110] sm:$0xff]   ;;  %v1985_v61 = vld [vmem:[%s2435_s2 + $0x158] sm:$0xff]   ;;  %v1995_v62 = vld [vmem:[%s2435_s2 + $0x180] sm:$0xff]  }
  0x13   : > { %1750 = vmatpush3.bf16.msra.mxu0 %v1958_v13  ;;  %v1986_v0 = vld [vmem:[%s2435_s2 + $0x118] sm:$0xff]   ;;  %v1987_v1 = vld [vmem:[%s2435_s2 + $0x160] sm:$0xff]   ;;  %v1989_v3 = vld [vmem:[%s2435_s2 + $0x168] sm:$0xff]  }
  0x14   : > { %1751 = vmatprep.subr.bf16.mxu0 %v1961_v16  ;;  %v491_v44 = vrot.slane %v477_v39, %v483_v42  ;;  %v492_v46 = vcombine.high %v484_v43, %v484_v43  ;;  %v517_v48 = vpack.c.bf16 %v484_v43, %v484_v43  ;;  %v509_v50 = vcombine.high %v501_v45, %v501_v45  ;;  %v1988_v2 = vld [vmem:[%s2435_s2 + $0x120] sm:$0xff]   ;;  %v1990_v4 = vld [vmem:[%s2435_s2 + $0x128] sm:$0xff]   ;;  %v1991_v5 = vld [vmem:[%s2435_s2 + $0x170] sm:$0xff]  }
  0x15   : > { %1772 = vmatpush3.bf16.msra.mxu1 %v1960_v15  ;;  %v508_v57 = vrot.slane %v494_v51, %v483_v42  ;;  %v1992_v6 = vld [vmem:[%s2435_s2 + $0x130] sm:$0xff]   ;;  %v1993_v7 = vld [vmem:[%s2435_s2 + $0x178] sm:$0xff]   ;;  %v521_v9 = vpack.c.bf16 %v501_v45, %v501_v45  ;;  %v1996_v10 = vld [vmem:[%s2437_s4] sm:$0xff]  }
  0x16   : > { %1773 = vmatprep.subr.bf16.mxu1 %v1963_v18  ;;  %v493_v47 = vcombine.high %v491_v44, %v491_v44  ;;  %v519_v49 = vpack.c.bf16 %v491_v44, %v491_v44  ;;  %v518_v52 = vpack.c.bf16 %v492_v46, %v492_v46  ;;  %v522_v56 = vpack.c.bf16 %v509_v50, %v509_v50  ;;  %v1994_v8 = vld [vmem:[%s2435_s2 + $0x138] sm:$0xff]   ;;  %v1997_v11 = vld [vmem:[%s2437_s4 + $0x8] sm:$0xff]   ;;  %v1661_v14 = vld [vmem:[%s2436_s3] ss:$0 sm:$0xff] }
  0x17   : > { %1752 = vmatpush3.bf16.msra.mxu0 %v1962_v17  ;;  %v523_v63 = vpack.c.bf16 %v508_v57, %v508_v57  ;;  %v1999_v39 = vld [vmem:[%s2439_s6 + $0x8] sm:$0xff]   ;;  %v1712_v41 = vld [vmem:[%s2438_s5] ss:$0 sm:$0xff] }
  0x18   : > { %1753 = vmatprep.subr.bf16.mxu0 %v1965_v20  ;;  %v520_v53 = vpack.c.bf16 %v493_v47, %v493_v47  ;;  %959 = vmatprep.mubr.bf16.mxu0 %v518_v52  ;;  %v1226_v50 = vld [vmem:[%s2295_s24] sm:$0xff]  ;;  %v1227_v51 = vld [vmem:[%s2295_s24 + $0x8] sm:$0xff] }
  0x19   : > { %1774 = vmatpush3.bf16.msra.mxu1 %v1964_v19  ;;  %v1239_v52 = vpack.c.bf16 %v1227_v51, %v1226_v50  ;;  %v1231_v57 = vld [vmem:[%s2295_s24 + $0x28] sm:$0xff] }
  0x1a   : > { %1775 = vmatprep.subr.bf16.mxu1 %v1967_v22  ;;  %999 = vmatprep.mubr.bf16.mxu1 %v520_v53  ;;  %v1228_v53 = vld [vmem:[%s2295_s24 + $0x10] sm:$0xff] }
  0x1b   : > { %1754 = vmatpush3.bf16.msra.mxu0 %v1966_v21 }
  0x1c   : > { %1755 = vmatprep.subr.bf16.mxu0 %v1969_v24 }
  0x1d   : > { %1776 = vmatpush3.bf16.msra.mxu1 %v1968_v23 }
  0x1e   : > { %1777 = vmatprep.subr.bf16.mxu1 %v1971_v26 }
  0x1f   : > { %1756 = vmatpush3.bf16.msra.mxu0 %v1970_v25 }
  0x20   : > { %1757 = vmatprep.subr.bf16.mxu0 %v1973_v29 }
  0x21   : > { %1778 = vmatpush3.bf16.msra.mxu1 %v1972_v27 }
  0x22   : > { %1779 = vmatprep.subr.bf16.mxu1 %v1975_v31 }
  0x23   : > { %1758 = vmatpush3.bf16.msra.mxu0 %v1974_v30 }
  0x24   : > { %1787 = vmatprep.subr.bf16.mxu0 %v1978_v37  ;;  %v1998_v37 = vld [vmem:[%s2439_s6] sm:$0xff]  }
  0x25   : > { %1780 = vmatpush3.bf16.msra.mxu1 %v1977_v34 }
  0x26   : > { %1836 = vmatprep.subr.bf16.mxu1 %v2014_v40  ;;  %960 = vmatmul.mubr.bf16.vlgmr.msra.gmra.mrb[0].mxu0 %v517_v48  ;;  %v2000_v48 = vld [vmem:[%s2441_s8] sm:$0xff]  }
  0x27   : > { %1788 = vmatpush3.bf16.msra.mxu0 %v1980_v54  ;;  %1039 = vmatprep.mubr.bf16.mxu0 %v522_v56  ;;  %v1229_v54 = vld [vmem:[%s2295_s24 + $0x18] sm:$0xff]  ;;  %v1230_v56 = vld [vmem:[%s2295_s24 + $0x20] sm:$0xff] }
  0x28   : > { %1000 = vmatmul.mubr.bf16.vlgmr.msra.gmra.mrb[0].mxu1 %v519_v49  ;;  %1789 = vmatprep.subr.bf16.mxu0 %v1981_v55  ;;  %v1240_v55 = vpack.c.bf16 %v1229_v54, %v1228_v53 }
  0x29   : > { %1838 = vmatprep.mubr.msk.bf16.mxu1 %vm2015_vm0, %v2014_v40  ;;  %1837 = vmatpush3.bf16.msra.mxu1 %v1995_v62  ;;  %v1234_v62 = vld [vmem:[%s2295_s24 + $0x40] sm:$0xff] }
  0x2a   : > { %1842 = vmatprep.subr.bf16.mxu1 %v2014_v40 }
  0x2b   : > { %1790 = vmatpush3.bf16.msra.mxu0 %v1982_v58  ;;  %v1241_v58 = vpack.c.bf16 %v1231_v57, %v1230_v56 }
  0x2c   : > { %1791 = vmatprep.subr.bf16.mxu0 %v1983_v59  ;;  %v1232_v59 = vld [vmem:[%s2295_s24 + $0x30] sm:$0xff] }
  0x2f   : > { %1792 = vmatpush3.bf16.msra.mxu0 %v1984_v60  ;;  %v1233_v60 = vld [vmem:[%s2295_s24 + $0x38] sm:$0xff] }
  0x30   : > { %1839 = vmatmul.mubr.msk.bf16.vlgmr.msra.gmra.mrb[4].mxu1 %vm923_vm1, %v523_v63  ;;  %1793 = vmatprep.subr.bf16.mxu0 %v1985_v61  ;;  %v1242_v61 = vpack.c.bf16 %v1233_v60, %v1232_v59  ;;  %v1235_v63 = vld [vmem:[%s2295_s24 + $0x48] sm:$0xff] }
  0x31   : > { %1846 = vmatprep.mubr.msk.bf16.mxu1 %vm2015_vm0, %v2014_v40  ;;  %1843 = vmatpush3.bf16.msra.mxu1 %v1996_v10  ;;  %v1716_v10 = vld [vmem:[%s2440_s7] ss:$0 sm:$0xff] }
  0x32   : > { %1844 = vmatprep.subr.bf16.mxu1 %v2014_v40 }
  0x33   : > { %1794 = vmatpush3.bf16.msra.mxu0 %v1986_v0  ;;  %v1243_v0 = vpack.c.bf16 %v1235_v63, %v1234_v62 }
  0x34   : > { %1795 = vmatprep.subr.bf16.mxu0 %v1987_v1  ;;  %v1236_v1 = vld [vmem:[%s2295_s24 + $0x50] sm:$0xff] }
  0x35   : > { %1845 = vmatpush3.bf16.msra.mxu1 %v1997_v11 }
  0x36   : > { %1850 = vmatprep.subr.bf16.mxu1 %v2014_v40 }
  0x37   : > { %1796 = vmatpush3.bf16.msra.mxu0 %v1988_v2  ;;  %v1237_v2 = vld [vmem:[%s2295_s24 + $0x58] sm:$0xff] }
  0x38   : > { %1797 = vmatprep.subr.bf16.mxu0 %v1989_v3  ;;  %v1244_v3 = vpack.c.bf16 %v1237_v2, %v1236_v1 }
  0x3b   : > { %1798 = vmatpush3.bf16.msra.mxu0 %v1990_v4  ;;  %v1238_v4 = vld [vmem:[%s2295_s24 + $0x60] sm:$0x3]  ;;  %s466_s24 = scalar_lea.vmem %s2445_s12, %s1659_s15 }
  0x3c   : > { %1799 = vmatprep.subr.bf16.mxu0 %v1991_v5  ;;  %v1245_v5 = vpack.c.bf16 %v1238_v4, %v1238_v4 }
  0x3f   : > { %1800 = vmatpush3.bf16.msra.mxu0 %v1992_v6  ;;  %v2001_v6 = vld [vmem:[%s2443_s10] sm:$0xff]  }
  0x40   : > { %1801 = vmatprep.subr.bf16.mxu0 %v1993_v7  ;;  %v2002_v7 = vld [vmem:[%s2443_s10 + $0x8] sm:$0xff]  }
  0x43   : > { %1802 = vmatpush3.bf16.msra.mxu0 %v1994_v8  ;;  %v2003_v8 = vld [vmem:[%s2443_s10 + $0x10] sm:$0xff]  }
  0x44   : > { %1888 = vmatprep.subr.bf16.mxu0 %v2014_v40 }
  0x46   : > { %1040 = vmatmul.mubr.bf16.vlgmr.msra.gmra.mrb[4].mxu0 %v521_v9  ;;  %v2004_v9 = vld [vmem:[%s2443_s10 + $0x18] sm:$0xff]  }
  0x47   : > { %1896 = vmatprep.mubr.msk.bf16.mxu0 %vm2015_vm0, %v2014_v40  ;;  %1889 = vmatpush3.bf16.msra.mxu0 %v2001_v6 }
  0x48   : > { %1890 = vmatprep.subr.bf16.mxu0 %v2014_v40 }
  0x4b   : > { %1891 = vmatpush3.bf16.msra.mxu0 %v2002_v7 }
  0x4c   : > { %1892 = vmatprep.subr.bf16.mxu0 %v2014_v40 }
  0x4f   : > { %1893 = vmatpush3.bf16.msra.mxu0 %v2003_v8 }
  0x50   : > { %1894 = vmatprep.subr.bf16.mxu0 %v2014_v40 }
  0x53   : > { %1895 = vmatpush3.bf16.msra.mxu0 %v2004_v9 }
  0xf9   : > { %v1759_v12 = vpop.f32.mrb[0].mxu0 }
  0xfa   : > { %v1760_v15 = vpop.f32.mrb[1].mxu0 }
  0xfb   : > { %v1781_v13 = vpop.f32.mrb[0].mxu1  ;;  %v1761_v17 = vadd.f32 %v1760_v15, %v1759_v12  ;;  %v1762_v18 = vpop.f32.mrb[2].mxu0 }
  0xfc   : > { %v1782_v16 = vpop.f32.mrb[1].mxu1  ;;  %v1763_v21 = vpop.f32.mrb[3].mxu0 }
  0xfd   : > { %v1783_v19 = vadd.f32 %v1782_v16, %v1781_v13  ;;  %v1784_v20 = vpop.f32.mrb[2].mxu1  ;;  %v962_v23 = vadd.f32 %v1761_v17, %v1661_v14  ;;  %v2363_v16 = vld [vmem:[%s2442_s9] ss:$0 sm:$0xff] }
  0xfe   : > { %v1785_v22 = vpop.f32.mrb[3].mxu1 }
  0xff   : > { %v1002_v24 = vadd.f32 %v1783_v19, %v962_v23 }
 0x103   : > { %v1081_v25 = vpop.f32.mrb[4].mxu1 }
 0x104   : > { %v1840_v26 = vpop.f32.mrb[5].mxu1 }
 0x105   : > { %v1084_v27 = vpop.f32.mrb[6].mxu1 }
 0x106   : > { %v1841_v28 = vpop.f32.mrb[7].mxu1 }
 0x119   : > { %v1803_v29 = vpop.f32.mrb[4].mxu0 }
 0x11a   : > { %v1804_v30 = vpop.f32.mrb[5].mxu0 }
 0x11b   : > { %v1805_v31 = vadd.f32 %v1804_v30, %v1803_v29  ;;  %v1806_v32 = vpop.f32.mrb[6].mxu0 }
 0x11c   : > { %v1807_v33 = vpop.f32.mrb[7].mxu0 }
 0x11d   : > { %v1042_v34 = vadd.f32 %v1805_v31, %v1002_v24 }
 0x11f   : > { %v1082_v35 = vadd.f32 %v1081_v25, %v1042_v34 }
 0x121   : > { %v1087_v36 = vmax.f32 %v1082_v35, 0.0 }
 0x123   : > { %v1088_v38 = vpack.c.bf16 %v1087_v36, %v1087_v36 }
 0x125   : > { %1847 = vmatmul.mubr.msk.bf16.vlgmr.msra.gmra.mrb[8].mxu1 %vm1112_vm2, %v1088_v38 }
 0x126   : > { %1851 = vmatpush3.bf16.msra.mxu1 %v1998_v37  ;;  %1854 = vmatprep.mubr.msk.bf16.mxu1 %vm2015_vm0, %v2014_v40 }
 0x127   : > { %1852 = vmatprep.subr.bf16.mxu1 %v2014_v40 }
 0x12a   : > { %1853 = vmatpush3.bf16.msra.mxu1 %v1999_v39 }
 0x12b   : > { %1858 = vmatprep.subr.bf16.mxu1 %v2014_v40 }
 0x1f8   : > { %v1150_v42 = vpop.f32.mrb[8].mxu1 }
 0x1f9   : > { %v1151_v43 = vadd.f32 %v1712_v41, %v1150_v42  ;;  %v1848_v44 = vpop.f32.mrb[9].mxu1 }
 0x1fa   : > { %v1153_v45 = vpop.f32.mrb[10].mxu1 }
 0x1fb   : > { %v1156_v46 = vmax.f32 %v1151_v43, 0.0  ;;  %v1849_v47 = vpop.f32.mrb[11].mxu1 }
 0x1fd   : > { %v1157_v49 = vpack.c.bf16 %v1156_v46, %v1156_v46 }
 0x1ff   : > { %1855 = vmatmul.mubr.msk.bf16.vlgmr.msra.gmra.mrb[12].mxu1 %vm1112_vm2, %v1157_v49 }
 0x200   : > { %1859 = vmatpush3.bf16.msra.mxu1 %v2000_v48  ;;  %1860 = vmatprep.mubr.msk.bf16.mxu1 %vm2015_vm0, %v2014_v40 }
 0x201   : > { %1924 = vmatprep.subr.bf16.mxu1 %v2014_v40 }
 0x207   : > { %1861 = vmatmul.mubr.msk.bf16.vlgmr.msra.gmra.mrb[16].mxu1 %vm923_vm1, %v1239_v52 }
 0x208   : > { %1864 = vmatprep.mubr.msk.bf16.mxu1 %vm2015_vm0, %v2014_v40  ;;  %1928 = vmatpush3.bf16.msra.mxu1 %v2001_v6 }
 0x209   : > { %1925 = vmatprep.subr.bf16.mxu1 %v2014_v40 }
 0x20c   : > { %1929 = vmatpush3.bf16.msra.mxu1 %v2002_v7 }
 0x20d   : > { %1926 = vmatprep.subr.bf16.mxu1 %v2014_v40 }
 0x20f   : > { %1865 = vmatmul.mubr.msk.bf16.gmra.mrb[20].mxu1 %vm923_vm1, %v1240_v55 }
 0x210   : > { %1868 = vmatprep.mubr.msk.bf16.mxu1 %vm2015_vm0, %v2014_v40  ;;  %1930 = vmatpush3.bf16.msra.mxu1 %v2003_v8 }
 0x211   : > { %1927 = vmatprep.subr.bf16.mxu1 %v2014_v40 }
 0x214   : > { %1931 = vmatpush3.bf16.msra.mxu1 %v2004_v9 }
 0x217   : > { %1869 = vmatmul.mubr.msk.bf16.gmra.mrb[24].mxu1 %vm923_vm1, %v1241_v58 }
 0x218   : > { %1872 = vmatprep.mubr.msk.bf16.mxu1 %vm2015_vm0, %v2014_v40 }
 0x21f   : > { %1873 = vmatmul.mubr.msk.bf16.gmra.mrb[28].mxu1 %vm923_vm1, %v1242_v61 }
 0x220   : > { %1876 = vmatprep.mubr.msk.bf16.mxu1 %vm2015_vm0, %v2014_v40 }
 0x227   : > { %1877 = vmatmul.mubr.msk.bf16.gmra.mrb[32].mxu1 %vm923_vm1, %v1243_v0 }
 0x228   : > { %1880 = vmatprep.mubr.msk.bf16.mxu1 %vm2015_vm0, %v2014_v40 }
 0x22f   : > { %1881 = vmatmul.mubr.msk.bf16.gmra.mrb[36].mxu1 %vm923_vm1, %v1244_v3 }
 0x230   : > { %1884 = vmatprep.mubr.msk.bf16.mxu1 %vm2015_vm0, %v2014_v40 }
 0x237   : > { %1885 = vmatmul.mubr.msk.bf16.gmra.mrb[40].mxu1 %vm923_vm1, %v1245_v5 }
 0x238   : > { %1920 = vmatprep.mubr.msk.bf16.mxu1 %vm2015_vm0, %v2014_v40 }
 0x2d2   : > { %v1218_v11 = vpop.f32.mrb[12].mxu1 }
 0x2d3   : > { %v1219_v12 = vadd.f32 %v1716_v10, %v1218_v11  ;;  %v1856_v13 = vpop.f32.mrb[13].mxu1 }
 0x2d4   : > { %v1221_v14 = vpop.f32.mrb[14].mxu1 }
 0x2d5   : > { %1225 = vst.msk [vmem:[%s466_s24] sm:$0x3] %vm1224_vm3, %v1219_v12  ;;  %v1857_v15 = vpop.f32.mrb[15].mxu1 }
 0x2da   : > { %v1316_v17 = vpop.f32.mrb[16].mxu1 }
 0x2db   : > { %v1317_v18 = vadd.f32 %v2363_v16, %v1316_v17  ;;  %v1862_v19 = vpop.f32.mrb[17].mxu1 }
 0x2dc   : > { %v1319_v20 = vpop.f32.mrb[18].mxu1 }
 0x2dd   : > { %v1320_v21 = vadd.f32 %v2363_v16, %v1319_v20  ;;  %v1863_v22 = vpop.f32.mrb[19].mxu1  ;;  %v1370_v23 = vmax.f32 %v1317_v18, 0.0 }
 0x2df   : > { %v1371_v24 = vmax.f32 %v1320_v21, 0.0 }
 0x2e1   : > { %v1383_v25 = vpack.c.bf16 %v1371_v24, %v1370_v23 }
 0x2e2   : > { %v1324_v26 = vpop.f32.mrb[20].mxu1 }
 0x2e3   : > { %v1325_v27 = vadd.f32 %v2363_v16, %v1324_v26  ;;  %v1866_v28 = vpop.f32.mrb[21].mxu1  ;;  %1897 = vmatmul.mubr.msk.bf16.vlgmr.msra.gmra.mrb[8].mxu0 %vm1429_vm4, %v1383_v25 }
 0x2e4   : > { %v1327_v29 = vpop.f32.mrb[22].mxu1  ;;  %1900 = vmatprep.mubr.msk.bf16.mxu0 %vm2015_vm0, %v2014_v40 }
 0x2e5   : > { %v1328_v30 = vadd.f32 %v2363_v16, %v1327_v29  ;;  %v1867_v31 = vpop.f32.mrb[23].mxu1  ;;  %v1372_v32 = vmax.f32 %v1325_v27, 0.0 }
 0x2e7   : > { %v1373_v33 = vmax.f32 %v1328_v30, 0.0 }
 0x2e9   : > { %v1384_v34 = vpack.c.bf16 %v1373_v33, %v1372_v32 }
 0x2ea   : > { %v1332_v35 = vpop.f32.mrb[24].mxu1 }
 0x2eb   : > { %v1333_v36 = vadd.f32 %v2363_v16, %v1332_v35  ;;  %v1870_v37 = vpop.f32.mrb[25].mxu1  ;;  %1901 = vmatmul.mubr.msk.bf16.gmra.mrb[12].mxu0 %vm1429_vm4, %v1384_v34 }
 0x2ec   : > { %v1335_v38 = vpop.f32.mrb[26].mxu1  ;;  %1904 = vmatprep.mubr.msk.bf16.mxu0 %vm2015_vm0, %v2014_v40 }
 0x2ed   : > { %v1336_v39 = vadd.f32 %v2363_v16, %v1335_v38  ;;  %v1871_v41 = vpop.f32.mrb[27].mxu1  ;;  %v1374_v42 = vmax.f32 %v1333_v36, 0.0 }
 0x2ef   : > { %v1375_v43 = vmax.f32 %v1336_v39, 0.0 }
 0x2f1   : > { %v1385_v44 = vpack.c.bf16 %v1375_v43, %v1374_v42 }
 0x2f2   : > { %v1340_v45 = vpop.f32.mrb[28].mxu1 }
 0x2f3   : > { %v1341_v46 = vadd.f32 %v2363_v16, %v1340_v45  ;;  %v1874_v47 = vpop.f32.mrb[29].mxu1  ;;  %1905 = vmatmul.mubr.msk.bf16.gmra.mrb[16].mxu0 %vm1429_vm4, %v1385_v44 }
 0x2f4   : > { %v1343_v48 = vpop.f32.mrb[30].mxu1  ;;  %1908 = vmatprep.mubr.msk.bf16.mxu0 %vm2015_vm0, %v2014_v40 }
 0x2f5   : > { %v1344_v49 = vadd.f32 %v2363_v16, %v1343_v48  ;;  %v1875_v50 = vpop.f32.mrb[31].mxu1  ;;  %v1376_v51 = vmax.f32 %v1341_v46, 0.0 }
 0x2f7   : > { %v1377_v52 = vmax.f32 %v1344_v49, 0.0 }
 0x2f9   : > { %v1386_v53 = vpack.c.bf16 %v1377_v52, %v1376_v51 }
 0x2fa   : > { %v1348_v54 = vpop.f32.mrb[32].mxu1 }
 0x2fb   : > { %v1349_v55 = vadd.f32 %v2363_v16, %v1348_v54  ;;  %v1878_v56 = vpop.f32.mrb[33].mxu1  ;;  %1909 = vmatmul.mubr.msk.bf16.gmra.mrb[20].mxu0 %vm1429_vm4, %v1386_v53 }
 0x2fc   : > { %v1351_v57 = vpop.f32.mrb[34].mxu1  ;;  %1912 = vmatprep.mubr.msk.bf16.mxu0 %vm2015_vm0, %v2014_v40 }
 0x2fd   : > { %v1352_v58 = vadd.f32 %v2363_v16, %v1351_v57  ;;  %v1879_v59 = vpop.f32.mrb[35].mxu1  ;;  %v1378_v60 = vmax.f32 %v1349_v55, 0.0 }
 0x2ff   : > { %v1379_v61 = vmax.f32 %v1352_v58, 0.0 }
 0x301   : > { %v1387_v62 = vpack.c.bf16 %v1379_v61, %v1378_v60 }
 0x302   : > { %v1356_v63 = vpop.f32.mrb[36].mxu1 }
 0x303   : > { %v1357_v0 = vadd.f32 %v2363_v16, %v1356_v63  ;;  %v1882_v1 = vpop.f32.mrb[37].mxu1  ;;  %1913 = vmatmul.mubr.msk.bf16.gmra.mrb[24].mxu0 %vm1429_vm4, %v1387_v62 }
 0x304   : > { %v1359_v2 = vpop.f32.mrb[38].mxu1  ;;  %1916 = vmatprep.mubr.msk.bf16.mxu0 %vm2015_vm0, %v2014_v40  ;;  %v1729_v40 = vld [vmem:[%s2444_s11] ss:$0 sm:$0xff] }
 0x305   : > { %v1360_v3 = vadd.f32 %v2363_v16, %v1359_v2  ;;  %v1883_v4 = vpop.f32.mrb[39].mxu1  ;;  %v1380_v5 = vmax.f32 %v1357_v0, 0.0 }
 0x307   : > { %v1381_v6 = vmax.f32 %v1360_v3, 0.0 }
 0x309   : > { %v1388_v7 = vpack.c.bf16 %v1381_v6, %v1380_v5 }
 0x30a   : > { %v1364_v8 = vpop.f32.mrb[40].mxu1 }
 0x30b   : > { %v1365_v9 = vadd.f32 %v2363_v16, %v1364_v8  ;;  %v1886_v10 = vpop.f32.mrb[41].mxu1  ;;  %1917 = vmatmul.mubr.msk.bf16.gmra.mrb[28].mxu0 %vm1429_vm4, %v1388_v7 }
 0x30c   : > { %v1367_v11 = vpop.f32.mrb[42].mxu1 }
 0x30d   : > { %v1382_v12 = vmax.f32 %v1365_v9, 0.0  ;;  %v1887_v13 = vpop.f32.mrb[43].mxu1 }
 0x30f   : > { %v1389_v14 = vpack.c.bf16 %v1382_v12, %v1382_v12 }
 0x311   : > { %1921 = vmatmul.mubr.msk.bf16.vlgmr.msra.gmra.mrb[44].mxu1 %vm1429_vm4, %v1389_v14 }
 0x3b6   : > { %v1485_v15 = vpop.f32.mrb[8].mxu0 }
 0x3b7   : > { %v1486_v16 = vadd.f32 %v1729_v40, %v1485_v15  ;;  %v1898_v17 = vpop.f32.mrb[9].mxu0 }
 0x3b8   : > { %v1488_v18 = vpop.f32.mrb[10].mxu0 }
 0x3b9   : > { %1540 = vst.msk [vmem:[%s2403_s17] sm:$0xff] %vm1539_vm5, %v1486_v16  ;;  %v1489_v19 = vadd.f32 %v1729_v40, %v1488_v18  ;;  %v1899_v20 = vpop.f32.mrb[11].mxu0 }
 0x3bb   : > { %1541 = vst.msk [vmem:[%s2403_s17 + $0x8] sm:$0xff] %vm1539_vm5, %v1489_v19 }
 0x3be   : > { %v1493_v21 = vpop.f32.mrb[12].mxu0 }
 0x3bf   : > { %v1494_v22 = vadd.f32 %v1729_v40, %v1493_v21  ;;  %v1902_v23 = vpop.f32.mrb[13].mxu0 }
 0x3c0   : > { %v1496_v24 = vpop.f32.mrb[14].mxu0 }
 0x3c1   : > { %1542 = vst.msk [vmem:[%s2403_s17 + $0x10] sm:$0xff] %vm1539_vm5, %v1494_v22  ;;  %v1497_v25 = vadd.f32 %v1729_v40, %v1496_v24  ;;  %v1903_v26 = vpop.f32.mrb[15].mxu0 }
 0x3c3   : > { %1543 = vst.msk [vmem:[%s2403_s17 + $0x18] sm:$0xff] %vm1539_vm5, %v1497_v25 }
 0x3c6   : > { %v1501_v27 = vpop.f32.mrb[16].mxu0 }
 0x3c7   : > { %v1502_v28 = vadd.f32 %v1729_v40, %v1501_v27  ;;  %v1906_v29 = vpop.f32.mrb[17].mxu0 }
 0x3c8   : > { %v1504_v30 = vpop.f32.mrb[18].mxu0 }
 0x3c9   : > { %1544 = vst.msk [vmem:[%s2403_s17 + $0x20] sm:$0xff] %vm1539_vm5, %v1502_v28  ;;  %v1505_v31 = vadd.f32 %v1729_v40, %v1504_v30  ;;  %v1907_v32 = vpop.f32.mrb[19].mxu0 }
 0x3cb   : > { %1545 = vst.msk [vmem:[%s2403_s17 + $0x28] sm:$0xff] %vm1539_vm5, %v1505_v31 }
 0x3ce   : > { %v1509_v33 = vpop.f32.mrb[20].mxu0 }
 0x3cf   : > { %v1510_v34 = vadd.f32 %v1729_v40, %v1509_v33  ;;  %v1910_v35 = vpop.f32.mrb[21].mxu0 }
 0x3d0   : > { %v1512_v36 = vpop.f32.mrb[22].mxu0 }
 0x3d1   : > { %1546 = vst.msk [vmem:[%s2403_s17 + $0x30] sm:$0xff] %vm1539_vm5, %v1510_v34  ;;  %v1513_v37 = vadd.f32 %v1729_v40, %v1512_v36  ;;  %v1911_v38 = vpop.f32.mrb[23].mxu0 }
 0x3d3   : > { %1547 = vst.msk [vmem:[%s2403_s17 + $0x38] sm:$0xff] %vm1539_vm5, %v1513_v37 }
 0x3d6   : > { %v1517_v39 = vpop.f32.mrb[24].mxu0 }
 0x3d7   : > { %v1518_v41 = vadd.f32 %v1729_v40, %v1517_v39  ;;  %v1914_v42 = vpop.f32.mrb[25].mxu0 }
 0x3d8   : > { %v1520_v43 = vpop.f32.mrb[26].mxu0 }
 0x3d9   : > { %1548 = vst.msk [vmem:[%s2403_s17 + $0x40] sm:$0xff] %vm1539_vm5, %v1518_v41  ;;  %v1521_v44 = vadd.f32 %v1729_v40, %v1520_v43  ;;  %v1915_v45 = vpop.f32.mrb[27].mxu0 }
 0x3db   : > { %1549 = vst.msk [vmem:[%s2403_s17 + $0x48] sm:$0xff] %vm1539_vm5, %v1521_v44 }
 0x3de   : > { %v1525_v46 = vpop.f32.mrb[28].mxu0 }
 0x3df   : > { %v1526_v47 = vadd.f32 %v1729_v40, %v1525_v46  ;;  %v1918_v48 = vpop.f32.mrb[29].mxu0 }
 0x3e0   : > { %v1528_v49 = vpop.f32.mrb[30].mxu0 }
 0x3e1   : > { %1550 = vst.msk [vmem:[%s2403_s17 + $0x50] sm:$0xff] %vm1539_vm5, %v1526_v47  ;;  %v1529_v50 = vadd.f32 %v1729_v40, %v1528_v49  ;;  %v1919_v51 = vpop.f32.mrb[31].mxu0 }
 0x3e3   : > { %1551 = vst.msk [vmem:[%s2403_s17 + $0x58] sm:$0xff] %vm1539_vm5, %v1529_v50 }
 0x3e4   : > { %v1533_v52 = vpop.f32.mrb[44].mxu1 }
 0x3e5   : > { %v1534_v53 = vadd.f32 %v1729_v40, %v1533_v52  ;;  %v1922_v54 = vpop.f32.mrb[45].mxu1 }
 0x3e6   : > { %v1536_v55 = vpop.f32.mrb[46].mxu1 }
 0x3e7   : > { %1553 = vst.msk [vmem:[%s2403_s17 + $0x60] sm:$0x3] %vm1552_vm6, %v1534_v53  ;;  %v1923_v56 = vpop.f32.mrb[47].mxu1 }
 0x3e8 PF: > { %s24_s25 = sadd.s32 1, %s2011_s25  }
 0x3e9   : > { %p21_p4 = scmp.ge.s32.totalorder %s24_s25, 4  }
 0x3eb   :  { %23 = sbr.rel (!%p21_p4) target bundleno = 1 (0x1), region = 113 }

// kernel: faster_rcnn_forward.2
= control target key start
LH: loop header
LB: loop body
LE: loop exit
PB: predicated region body
PF: predicated region fallthrough
CT: control target
= control target key end

     0   :  { %s2699_s17 = smov 0   ;;  %s3533_s0 = inlined_call_operand.vmem [shape: bf16[2,256,27], index: 0, kind: input, shape index: {}]   ;;  %s3534_s1 = inlined_call_operand.vmem [shape: bf16[27,8], index: 1, kind: input, shape index: {}]   ;;  %s3535_s2 = inlined_call_operand.vmem [shape: f32[1,8], index: 2, kind: input, shape index: {}]   ;;  %s3536_s3 = inlined_call_operand.vmem [shape: bf16[72,16], index: 3, kind: input, shape index: {}]   ;;  %s3537_s4 = inlined_call_operand.vmem [shape: f32[1,16], index: 4, kind: input, shape index: {}, may-alias: {4,6,8}]   ;;  %s3538_s5 = inlined_call_operand.vmem [shape: bf16[16,16], index: 5, kind: input, shape index: {}]   ;;  %s3539_s6 = inlined_call_operand.vmem [shape: f32[1,16], index: 6, kind: input, shape index: {}, may-alias: {4,6,8}]   ;;  %s3540_s7 = inlined_call_operand.vmem [shape: bf16[144,16], index: 7, kind: input, shape index: {}]   ;;  %s3541_s8 = inlined_call_operand.vmem [shape: f32[1,16], index: 8, kind: input, shape index: {}, may-alias: {4,6,8}]   ;;  %s3542_s9 = inlined_call_operand.vmem [shape: bf16[16,15], index: 9, kind: input, shape index: {}]   ;;  %s3543_s10 = inlined_call_operand.vmem [shape: f32[1,15], index: 10, kind: input, shape index: {}]   ;;  %s3544_s11 = inlined_call_operand.vmem [shape: f32[2,64,31], index: 11, kind: output, shape index: {}]  }
   0x1 LB: > { %s2361_s18 = sadd.s32 4294967295, %s2623_s17   ;;  %p2365_p0 = scmp.ge.s32.totalorder %s2623_s17, 1  ;;  %s2623_s17 = sphi %s2699_s17, %s21_s17  }
   0x2   : > { %p337_p1 = scmp.lt.s32.totalorder %s2623_s17, 3 }
   0x4   : > { %p338_p2 = pnand %p2365_p0, %p337_p1 }
   0x5   : > { %v2583_v0 = vld [vmem:[%s3534_s1] sm:$0xff] (!%p338_p2)   ;;  %vm571_vm0 = vcmask (!%p338_p2), 1044480   ;;  %v2584_v1 = vld [vmem:[%s3534_s1 + $0x8] sm:$0x3f] (!%p338_p2)   ;;  %vm572_vm1 = vcmask (!%p338_p2), 1045504   ;;  %p377_p3 = scmp.lt.s32.totalorder (!%p338_p2), %s2361_s18, 1 }
   0x6   : > { %341 = sbr.rel (%p338_p2) target bundleno = 1721 (0x6b9), region = 64  ;;  %2482 = vmatprep.subr.bf16.mxu0 (!%p338_p2), %v2583_v0  ;;  %2556 = vmatprep.subr.bf16.mxu1 (!%p338_p2), %v2583_v0  ;;  %v2625_v2 = vmov (!%p338_p2), 65535   ;;  %vm522_vm2 = vcmask (!%p338_p2), 220160   ;;  %vm771_vm3 = vcmask (!%p338_p2), 64512   ;;  %vm773_vm4 = vcmask (!%p338_p2), 57344   ;;  %s2627_s27 = smov (!%p338_p2), 8  }
   0x7   : > { %2483 = vmatpush3.bf16.msra.mxu0 (!%p338_p2), %v2583_v0  ;;  %2558 = vmatpush3.bf16.msra.mxu1 (!%p338_p2), %v2583_v0  ;;  %v573_v3 = vsel (!%p338_p2), %vm571_vm0, 4294967295, %v2625_v2  ;;  %v2626_v22 = vmov (!%p338_p2), 0.0   ;;  %s2628_s28 = smov (!%p338_p2), 16   ;;  %vm967_vm5 = vcmask (!%p338_p2), 130112   ;;  %vm1016_vm6 = vcmask (!%p338_p2), 195712   ;;  %s2629_s12 = smov (!%p338_p2), 32  }
   0x8   : > { %v574_v4 = vsel (!%p338_p2), %vm572_vm1, %v573_v3, 0  ;;  %779 = vst.msk [vmem:[#allocation2 + $0x30] sm:$0xff] (!%p338_p2), %vm771_vm3, %v2626_v22  ;;  %775 = vst.msk [vmem:[#allocation2 + $0x10] sm:$0xff] (!%p338_p2), %vm771_vm3, %v2626_v22  ;;  %v2897_v28 = vld [vmem:[%s3535_s2] ss:$0 sm:$0xff] (!%p338_p2)  ;;  %s2630_s13 = smov (!%p338_p2), 48  }
   0x9   : > { %v576_v5 = vand.u32 (!%p338_p2), %v2584_v1, %v574_v4  ;;  %780 = vst.msk [vmem:[#allocation2 + $0x38] sm:$0x1] (!%p338_p2), %vm773_vm4, %v2626_v22  ;;  %776 = vst.msk [vmem:[#allocation2 + $0x18] sm:$0x1] (!%p338_p2), %vm773_vm4, %v2626_v22  ;;  %s2631_s14 = smov (!%p338_p2), 64   ;;  %s2632_s15 = smov (!%p338_p2), 24  }
   0xa   : > { %777 = vst.msk [vmem:[#allocation2 + $0x20] sm:$0xff] (!%p338_p2), %vm771_vm3, %v2626_v22  ;;  %781 = vst.msk [vmem:[#allocation2 + $0x40] sm:$0xff] (!%p338_p2), %vm771_vm3, %v2626_v22  ;;  %s2633_s16 = smov (!%p338_p2), 40   ;;  %s2634_s21 = smov (!%p338_p2), 56   ;;  %vm1387_vm7 = vcmask (!%p338_p2), 1043456   ;;  %vm1065_vm8 = vcmask (!%p338_p2), 261312  }
   0xb   : > { %2484 = vmatprep.subr.bf16.mxu0 (!%p338_p2), %v576_v5  ;;  %2557 = vmatprep.subr.bf16.mxu1 (!%p338_p2), %v576_v5  ;;  %778 = vst.msk [vmem:[#allocation2 + $0x28] sm:$0x1] (!%p338_p2), %vm773_vm4, %v2626_v22  ;;  %782 = vst.msk [vmem:[#allocation2 + $0x48] sm:$0x1] (!%p338_p2), %vm773_vm4, %v2626_v22  ;;  %vm1114_vm9 = vcmask (!%p338_p2), 326912   ;;  %vm1163_vm10 = vcmask (!%p338_p2), 392512  }
   0xc   : > { %2485 = vmatpush3.bf16.msra.mxu0 (!%p338_p2), %v576_v5  ;;  %2559 = vmatpush3.bf16.msra.mxu1 (!%p338_p2), %v576_v5  ;;  %783 = vst.msk [vmem:[#allocation2 + $0x50] sm:$0xff] (!%p338_p2), %vm771_vm3, %v2626_v22  ;;  %785 = vst.msk [vmem:[#allocation2 + $0x60] sm:$0xff] (!%p338_p2), %vm771_vm3, %v2626_v22  ;;  %vm1212_vm11 = vcmask (!%p338_p2), 458112   ;;  %vm1261_vm12 = vcmask (!%p338_p2), 523712   ;;  %vm1310_vm13 = vcmask (!%p338_p2), 589312   ;;  %vm1374_vm14 = vcmask (!%p338_p2), 588800  }
   0xd   : > { %s3546_s18 = smov (!%p377_p3, %s2361_s18), 1  ;;  %784 = vst.msk [vmem:[#allocation2 + $0x58] sm:$0x1] %vm773_vm4, %v2626_v22  ;;  %786 = vst.msk [vmem:[#allocation2 + $0x68] sm:$0x1] %vm773_vm4, %v2626_v22  ;;  %vm1483_vm15 = vcmask 130048  }
   0xe   : > { %s2443_s23 = sshll.u32 %s3546_s18, 7  ;;  %787 = vst.msk [vmem:[#allocation2 + $0x70] sm:$0xff] %vm771_vm3, %v2626_v22  ;;  %789 = vst.msk [vmem:[#allocation2 + $0x80] sm:$0xff] %vm771_vm3, %v2626_v22  ;;  %vm1570_vm0 = vcmask 123904   ;;  %vm1662_vm1 = vcmask 261248   ;;  %s2636_s29 = smov 112  }
   0xf   : > { %s2719_s26 = scalar_lea.vmem %s3533_s0, %s2443_s23  ;;  %788 = vst.msk [vmem:[#allocation2 + $0x78] sm:$0x1] %vm773_vm4, %v2626_v22  ;;  %790 = vst.msk [vmem:[#allocation2 + $0x88] sm:$0x1] %vm773_vm4, %v2626_v22 }
  0x10   : > { %v2585_v6 = vld [vmem:[%s2719_s26] sm:$0xff]   ;;  %v2586_v7 = vld [vmem:[%s2719_s26 + $0x50] sm:$0xff]   ;;  %v2587_v8 = vld [vmem:[%s2719_s26 + $0x8] sm:$0xff]   ;;  %793 = vst.msk [vmem:[#allocation2 + $0xa0] sm:$0xff] %vm771_vm3, %v2626_v22 }
  0x11   : > { %2486 = vmatprep.mubr.msk.bf16.mxu0 %vm522_vm2, %v2585_v6  ;;  %2506 = vmatprep.mubr.msk.bf16.mxu1 %vm522_vm2, %v2586_v7  ;;  %v2588_v9 = vld [vmem:[%s2719_s26 + $0x58] sm:$0xff]   ;;  %v2589_v10 = vld [vmem:[%s2719_s26 + $0x60] sm:$0xff]   ;;  %v2591_v11 = vld [vmem:[%s2719_s26 + $0x10] sm:$0xff]   ;;  %794 = vst.msk [vmem:[#allocation2 + $0xa8] sm:$0x1] %vm773_vm4, %v2626_v22 }
  0x12   : > { %2487 = vmatmul.mubr.msk.bf16.vlgmr.msra.gmra.mrb[0].mxu0 %vm522_vm2, %v2587_v8  ;;  %2507 = vmatmul.mubr.msk.bf16.vlgmr.msra.gmra.mrb[0].mxu1 %vm522_vm2, %v2588_v9  ;;  %v2590_v12 = vld [vmem:[%s2719_s26 + $0x68] sm:$0xff]   ;;  %v2592_v13 = vld [vmem:[%s2719_s26 + $0x18] sm:$0xff]   ;;  %v2593_v14 = vld [vmem:[%s2719_s26 + $0x20] sm:$0xff]   ;;  %795 = vst.msk [vmem:[#allocation2 + $0xb0] sm:$0xff] %vm771_vm3, %v2626_v22 }
  0x13   : > { %2510 = vmatprep.mubr.msk.bf16.mxu1 %vm522_vm2, %v2589_v10  ;;  %2490 = vmatprep.mubr.msk.bf16.mxu0 %vm522_vm2, %v2591_v11  ;;  %v2595_v15 = vld [vmem:[%s2719_s26 + $0x70] sm:$0xff]   ;;  %v2594_v16 = vld [vmem:[%s2719_s26 + $0x28] sm:$0xff]   ;;  %v2596_v17 = vld [vmem:[%s2719_s26 + $0x78] sm:$0xff]   ;;  %796 = vst.msk [vmem:[#allocation2 + $0xb8] sm:$0x1] %vm773_vm4, %v2626_v22 }
  0x14   : > { %v2597_v18 = vld [vmem:[%s2719_s26 + $0x30] sm:$0xff]   ;;  %v2598_v19 = vld [vmem:[%s2719_s26 + $0x38] sm:$0xff]   ;;  %v2599_v20 = vld [vmem:[%s2719_s26 + $0x40] sm:$0xff]   ;;  %797 = vst.msk [vmem:[#allocation2 + $0xc0] sm:$0xff] %vm771_vm3, %v2626_v22 }
  0x15   : > { %v2600_v21 = vld [vmem:[%s2719_s26 + $0x48] sm:$0xff]   ;;  %798 = vst.msk [vmem:[#allocation2 + $0xc8] sm:$0x1] %vm773_vm4, %v2626_v22  ;;  %800 = vst.msk [vmem:[#allocation2 + $0xd8] sm:$0x1] %vm773_vm4, %v2626_v22 }
  0x16   : > { %799 = vst.msk [vmem:[#allocation2 + $0xd0] sm:$0xff] %vm771_vm3, %v2626_v22  ;;  %801 = vst.msk [vmem:[#allocation2 + $0xe0] sm:$0xff] %vm771_vm3, %v2626_v22 }
  0x17   : > { %802 = vst.msk [vmem:[#allocation2 + $0xe8] sm:$0x1] %vm773_vm4, %v2626_v22  ;;  %804 = vst.msk [vmem:[#allocation2 + $0xf8] sm:$0x1] %vm773_vm4, %v2626_v22 }
  0x18   : > { %803 = vst.msk [vmem:[#allocation2 + $0xf0] sm:$0xff] %vm771_vm3, %v2626_v22  ;;  %805 = vst.msk [vmem:[#allocation2 + $0x100] sm:$0xff] %vm771_vm3, %v2626_v22 }
  0x19   : > { %806 = vst.msk [vmem:[#allocation2 + $0x108] sm:$0x1] %vm773_vm4, %v2626_v22  ;;  %808 = vst.msk [vmem:[#allocation2 + $0x118] sm:$0x1] %vm773_vm4, %v2626_v22 }
  0x1a   : > { %2491 = vmatmul.mubr.msk.bf16.gmra.mrb[4].mxu0 %vm522_vm2, %v2592_v13  ;;  %2511 = vmatmul.mubr.msk.bf16.gmra.mrb[4].mxu1 %vm522_vm2, %v2590_v12  ;;  %807 = vst.msk [vmem:[#allocation2 + $0x110] sm:$0xff] %vm771_vm3, %v2626_v22  ;;  %809 = vst.msk [vmem:[#allocation2 + $0x120] sm:$0xff] %vm771_vm3, %v2626_v22 }
  0x1b   : > { %2494 = vmatprep.mubr.msk.bf16.mxu0 %vm522_vm2, %v2593_v14  ;;  %2514 = vmatprep.mubr.msk.bf16.mxu1 %vm522_vm2, %v2595_v15  ;;  %810 = vst.msk [vmem:[#allocation2 + $0x128] sm:$0x1] %vm773_vm4, %v2626_v22  ;;  %812 = vst.msk [vmem:[#allocation2 + $0x138] sm:$0x1] %vm773_vm4, %v2626_v22 }
  0x1c   : > { %811 = vst.msk [vmem:[#allocation2 + $0x130] sm:$0xff] %vm771_vm3, %v2626_v22  ;;  %813 = vst.msk [vmem:[#allocation2 + $0x140] sm:$0xff] %vm771_vm3, %v2626_v22 }
  0x1d   : > { %814 = vst.msk [vmem:[#allocation2 + $0x148] sm:$0x1] %vm773_vm4, %v2626_v22  ;;  %816 = vst.msk [vmem:[#allocation2 + $0x158] sm:$0x1] %vm773_vm4, %v2626_v22 }
  0x1e   : > { %815 = vst.msk [vmem:[#allocation2 + $0x150] sm:$0xff] %vm771_vm3, %v2626_v22  ;;  %817 = vst.msk [vmem:[#allocation2 + $0x160] sm:$0xff] %vm771_vm3, %v2626_v22 }
  0x1f   : > { %818 = vst.msk [vmem:[#allocation2 + $0x168] sm:$0x1] %vm773_vm4, %v2626_v22  ;;  %820 = vst.msk [vmem:[#allocation2 + $0x178] sm:$0x1] %vm773_vm4, %v2626_v22 }
  0x20   : > { %819 = vst.msk [vmem:[#allocation2 + $0x170] sm:$0xff] %vm771_vm3, %v2626_v22  ;;  %821 = vst.msk [vmem:[#allocation2 + $0x180] sm:$0xff] %vm771_vm3, %v2626_v22 }
  0x21   : > { %822 = vst.msk [vmem:[#allocation2 + $0x188] sm:$0x1] %vm773_vm4, %v2626_v22  ;;  %824 = vst.msk [vmem:[#allocation2 + $0x198] sm:$0x1] %vm773_vm4, %v2626_v22 }
  0x22   : > { %2495 = vmatmul.mubr.msk.bf16.gmra.mrb[8].mxu0 %vm522_vm2, %v2594_v16  ;;  %2515 = vmatmul.mubr.msk.bf16.gmra.mrb[8].mxu1 %vm522_vm2, %v2596_v17  ;;  %823 = vst.msk [vmem:[#allocation2 + $0x190] sm:$0xff] %vm771_vm3, %v2626_v22  ;;  %825 = vst.msk [vmem:[#allocation2 + $0x1a0] sm:$0xff] %vm771_vm3, %v2626_v22  ;;  %v927_v23 = vld [vmem:[#allocation2 + $0x121] sm:$0xff] }
  0x23   : > { %2498 = vmatprep.mubr.msk.bf16.mxu0 %vm522_vm2, %v2597_v18  ;;  %826 = vst.msk [vmem:[#allocation2 + $0x1a8] sm:$0x1] %vm773_vm4, %v2626_v22  ;;  %828 = vst.msk [vmem:[#allocation2 + $0x1b8] sm:$0x1] %vm773_vm4, %v2626_v22  ;;  %943 = vrot.lane.b32.xlu0 %v927_v23, %s2627_s27 }
  0x24   : > { %827 = vst.msk [vmem:[#allocation2 + $0x1b0] sm:$0xff] %vm771_vm3, %v2626_v22  ;;  %829 = vst.msk [vmem:[#allocation2 + $0x1c0] sm:$0xff] %vm771_vm3, %v2626_v22 }
  0x25   : > { %830 = vst.msk [vmem:[#allocation2 + $0x1c8] sm:$0x1] %vm773_vm4, %v2626_v22  ;;  %832 = vst.msk [vmem:[#allocation2 + $0x1d8] sm:$0x1] %vm773_vm4, %v2626_v22 }
  0x26   : > { %831 = vst.msk [vmem:[#allocation2 + $0x1d0] sm:$0xff] %vm771_vm3, %v2626_v22  ;;  %833 = vst.msk [vmem:[#allocation2 + $0x1e0] sm:$0xff] %vm771_vm3, %v2626_v22 }
  0x27   : > { %834 = vst.msk [vmem:[#allocation2 + $0x1e8] sm:$0x1] %vm773_vm4, %v2626_v22  ;;  %836 = vst.msk [vmem:[#allocation2 + $0x1f8] sm:$0x1] %vm773_vm4, %v2626_v22 }
  0x28   : > { %835 = vst.msk [vmem:[#allocation2 + $0x1f0] sm:$0xff] %vm771_vm3, %v2626_v22  ;;  %837 = vst.msk [vmem:[#allocation2 + $0x200] sm:$0xff] %vm771_vm3, %v2626_v22 }
  0x29   : > { %838 = vst.msk [vmem:[#allocation2 + $0x208] sm:$0x1] %vm773_vm4, %v2626_v22  ;;  %840 = vst.msk [vmem:[#allocation2 + $0x218] sm:$0x1] %vm773_vm4, %v2626_v22 }
  0x2a   : > { %2499 = vmatmul.mubr.msk.bf16.gmra.mrb[12].mxu0 %vm522_vm2, %v2598_v19  ;;  %839 = vst.msk [vmem:[#allocation2 + $0x210] sm:$0xff] %vm771_vm3, %v2626_v22  ;;  %841 = vst.msk [vmem:[#allocation2 + $0x220] sm:$0xff] %vm771_vm3, %v2626_v22 }
  0x2b   : > { %2502 = vmatprep.mubr.msk.bf16.mxu0 %vm522_vm2, %v2599_v20  ;;  %842 = vst.msk [vmem:[#allocation2 + $0x228] sm:$0x1] %vm773_vm4, %v2626_v22  ;;  %844 = vst.msk [vmem:[#allocation2 + $0x238] sm:$0x1] %vm773_vm4, %v2626_v22  ;;  %v976_v24 = vld [vmem:[#allocation2 + $0x1b1] sm:$0xff]  ;;  %vm1809_vm4 = vcmask 654848  }
  0x2c   : > { %843 = vst.msk [vmem:[#allocation2 + $0x230] sm:$0xff] %vm771_vm3, %v2626_v22  ;;  %992 = vrot.lane.b32.xlu0 %v976_v24, %s2628_s28  ;;  %v910_v25 = vld [vmem:[#allocation2 + $0x1b0] sm:$0xff] }
  0x2d   : > { %918 = vst.msk [vmem:[#allocation3] sm:$0xff] %vm771_vm3, %v910_v25 }
  0x2e   : > { %1569 = vst.msk [vmem:[#allocation4] sm:$0xff] %vm1483_vm15, %v2626_v22  ;;  %1572 = vst.msk [vmem:[#allocation4 + $0x10] sm:$0xff] %vm1483_vm15, %v2626_v22 }
  0x2f   : > { %1574 = vst.msk [vmem:[#allocation4 + $0x20] sm:$0xff] %vm1483_vm15, %v2626_v22  ;;  %1576 = vst.msk [vmem:[#allocation4 + $0x30] sm:$0xff] %vm1483_vm15, %v2626_v22 }
  0x30   : > { %1578 = vst.msk [vmem:[#allocation4 + $0x40] sm:$0xff] %vm1483_vm15, %v2626_v22  ;;  %1580 = vst.msk [vmem:[#allocation4 + $0x50] sm:$0xff] %vm1483_vm15, %v2626_v22 }
  0x31   : > { %1582 = vst.msk [vmem:[#allocation4 + $0x60] sm:$0xff] %vm1483_vm15, %v2626_v22  ;;  %1584 = vst.msk [vmem:[#allocation4 + $0x70] sm:$0xff] %vm1483_vm15, %v2626_v22 }
  0x32   : > { %2503 = vmatmul.mubr.msk.bf16.gmra.mrb[16].mxu0 %vm522_vm2, %v2600_v21  ;;  %1586 = vst.msk [vmem:[#allocation4 + $0x80] sm:$0xff] %vm1483_vm15, %v2626_v22  ;;  %1588 = vst.msk [vmem:[#allocation4 + $0x90] sm:$0xff] %vm1483_vm15, %v2626_v22  ;;  %vm1711_vm2 = vcmask 392448  }
  0x33   : > { %1577 = vst.msk [vmem:[#allocation4 + $0x38] sm:$0x3] %vm1570_vm0, %v2626_v22  ;;  %1571 = vst.msk [vmem:[#allocation4 + $0x8] sm:$0x3] %vm1570_vm0, %v2626_v22 }
  0x34   : > { %1573 = vst.msk [vmem:[#allocation4 + $0x18] sm:$0x3] %vm1570_vm0, %v2626_v22  ;;  %1575 = vst.msk [vmem:[#allocation4 + $0x28] sm:$0x3] %vm1570_vm0, %v2626_v22 }
  0x35   : > { %1579 = vst.msk [vmem:[#allocation4 + $0x48] sm:$0x3] %vm1570_vm0, %v2626_v22  ;;  %1581 = vst.msk [vmem:[#allocation4 + $0x58] sm:$0x3] %vm1570_vm0, %v2626_v22 }
  0x36   : > { %1583 = vst.msk [vmem:[#allocation4 + $0x68] sm:$0x3] %vm1570_vm0, %v2626_v22  ;;  %1585 = vst.msk [vmem:[#allocation4 + $0x78] sm:$0x3] %vm1570_vm0, %v2626_v22 }
  0x37   : > { %1587 = vst.msk [vmem:[#allocation4 + $0x88] sm:$0x3] %vm1570_vm0, %v2626_v22  ;;  %1589 = vst.msk [vmem:[#allocation4 + $0x98] sm:$0x3] %vm1570_vm0, %v2626_v22  ;;  %v2415_v22 = vld [vmem:[%s3539_s6] ss:$0 sm:$0xff] }
  0x95   : > { %v944_v26 = vpop.permute.xlu0 %943 }
  0x96   : > { %968 = vst.msk [vmem:[#allocation3] sm:$0xff] %vm967_vm5, %v944_v26 }
  0x9e   : > { %v993_v27 = vpop.permute.xlu0 %992 }
  0x9f   : > { %1017 = vst.msk [vmem:[#allocation3] sm:$0xff] %vm1016_vm6, %v993_v27 }
  0xe5   : > { %v2488_v29 = vpop.f32.mrb[0].mxu0  ;;  %v2508_v31 = vpop.f32.mrb[0].mxu1 }
  0xe6   : > { %v621_v30 = vadd.f32 %v2488_v29, %v2897_v28  ;;  %v612_v32 = vpop.f32.mrb[1].mxu0  ;;  %v701_v33 = vadd.f32 %v2508_v31, %v2897_v28  ;;  %v692_v34 = vpop.f32.mrb[1].mxu1 }
  0xe7   : > { %v613_v35 = vadd.f32 %v2897_v28, %v612_v32  ;;  %v2489_v36 = vpop.f32.mrb[2].mxu0  ;;  %v693_v38 = vadd.f32 %v2897_v28, %v692_v34  ;;  %v2509_v39 = vpop.f32.mrb[2].mxu1 }
  0xe8   : > { %v741_v37 = vmax.f32 %v621_v30, 0.0  ;;  %v624_v40 = vadd.f32 %v2489_v36, %v2897_v28  ;;  %v615_v41 = vpop.f32.mrb[3].mxu0  ;;  %v761_v42 = vmax.f32 %v701_v33, 0.0  ;;  %v704_v43 = vadd.f32 %v2509_v39, %v2897_v28  ;;  %v695_v44 = vpop.f32.mrb[3].mxu1 }
  0xe9   : > { %v739_v45 = vmax.f32 %v613_v35, 0.0  ;;  %v616_v46 = vadd.f32 %v2897_v28, %v615_v41  ;;  %v759_v47 = vmax.f32 %v693_v38, 0.0  ;;  %v696_v48 = vadd.f32 %v2897_v28, %v695_v44 }
  0xea   : > { %850 = vst.msk [vmem:[#allocation2 + $0x31] sm:$0xff] %vm771_vm3, %v741_v37  ;;  %v742_v49 = vmax.f32 %v624_v40, 0.0  ;;  %890 = vst.msk [vmem:[#allocation2 + $0x191] sm:$0xff] %vm771_vm3, %v761_v42  ;;  %v762_v50 = vmax.f32 %v704_v43, 0.0 }
  0xeb   : > { %846 = vst.msk [vmem:[#allocation2 + $0x11] sm:$0xff] %vm771_vm3, %v739_v45  ;;  %v740_v51 = vmax.f32 %v616_v46, 0.0  ;;  %886 = vst.msk [vmem:[#allocation2 + $0x171] sm:$0xff] %vm771_vm3, %v759_v47  ;;  %v760_v52 = vmax.f32 %v696_v48, 0.0 }
  0xec   : > { %852 = vst.msk [vmem:[#allocation2 + $0x41] sm:$0xff] %vm771_vm3, %v742_v49  ;;  %892 = vst.msk [vmem:[#allocation2 + $0x1a1] sm:$0xff] %vm771_vm3, %v762_v50 }
  0xed   : > { %848 = vst.msk [vmem:[#allocation2 + $0x21] sm:$0xff] %vm771_vm3, %v740_v51  ;;  %v2492_v53 = vpop.f32.mrb[4].mxu0  ;;  %888 = vst.msk [vmem:[#allocation2 + $0x181] sm:$0xff] %vm771_vm3, %v760_v52  ;;  %v2512_v54 = vpop.f32.mrb[4].mxu1 }
  0xee   : > { %v637_v55 = vadd.f32 %v2492_v53, %v2897_v28  ;;  %v628_v56 = vpop.f32.mrb[5].mxu0  ;;  %v717_v57 = vadd.f32 %v2512_v54, %v2897_v28  ;;  %v708_v58 = vpop.f32.mrb[5].mxu1 }
  0xef   : > { %v629_v59 = vadd.f32 %v2897_v28, %v628_v56  ;;  %v2493_v60 = vpop.f32.mrb[6].mxu0  ;;  %v709_v61 = vadd.f32 %v2897_v28, %v708_v58  ;;  %v2513_v62 = vpop.f32.mrb[6].mxu1 }
  0xf0   : > { %v745_v63 = vmax.f32 %v637_v55, 0.0  ;;  %v640_v0 = vadd.f32 %v2493_v60, %v2897_v28  ;;  %v631_v1 = vpop.f32.mrb[7].mxu0  ;;  %v765_v2 = vmax.f32 %v717_v57, 0.0  ;;  %v720_v4 = vadd.f32 %v2513_v62, %v2897_v28  ;;  %v711_v5 = vpop.f32.mrb[7].mxu1 }
  0xf1   : > { %v1076_v3 = vld [vmem:[#allocation2 + $0x31] sm:$0xff]  ;;  %v743_v6 = vmax.f32 %v629_v59, 0.0  ;;  %v632_v7 = vadd.f32 %v2897_v28, %v631_v1  ;;  %v763_v9 = vmax.f32 %v709_v61, 0.0  ;;  %v712_v10 = vadd.f32 %v2897_v28, %v711_v5 }
  0xf2   : > { %v2922_v8 = vld [vmem:[#allocation2 + $0x191] sm:$0xff]  ;;  %1094 = vrot.lane.b32.xlu0 %v1076_v3, %s2629_s12  ;;  %858 = vst.msk [vmem:[#allocation2 + $0x71] sm:$0xff] %vm771_vm3, %v745_v63  ;;  %v746_v11 = vmax.f32 %v640_v0, 0.0  ;;  %898 = vst.msk [vmem:[#allocation2 + $0x1e1] sm:$0xff] %vm771_vm3, %v765_v2  ;;  %v766_v12 = vmax.f32 %v720_v4, 0.0 }
  0xf3   : > { %957 = vrot.lane.b32.xlu1 %v2922_v8, %s2627_s27  ;;  %v1074_v13 = vld [vmem:[#allocation2 + $0x11] sm:$0xff]  ;;  %854 = vst.msk [vmem:[#allocation2 + $0x51] sm:$0xff] %vm771_vm3, %v743_v6  ;;  %v744_v14 = vmax.f32 %v632_v7, 0.0  ;;  %894 = vst.msk [vmem:[#allocation2 + $0x1c1] sm:$0xff] %vm771_vm3, %v763_v9  ;;  %v764_v15 = vmax.f32 %v712_v10, 0.0  ;;  %v1077_v38 = vld [vmem:[#allocation2 + $0x41] sm:$0xff] }
  0xf4   : > { %860 = vst.msk [vmem:[#allocation2 + $0x81] sm:$0xff] %vm771_vm3, %v746_v11  ;;  %900 = vst.msk [vmem:[#allocation2 + $0x1f1] sm:$0xff] %vm771_vm3, %v766_v12  ;;  %v2936_v17 = vld [vmem:[#allocation2 + $0x171] sm:$0xff]  ;;  %v2946_v32 = vld [vmem:[#allocation2 + $0x181] sm:$0xff] }
  0xf5   : > { %856 = vst.msk [vmem:[#allocation2 + $0x61] sm:$0xff] %vm771_vm3, %v744_v14  ;;  %v2496_v16 = vpop.f32.mrb[8].mxu0  ;;  %896 = vst.msk [vmem:[#allocation2 + $0x1d1] sm:$0xff] %vm771_vm3, %v764_v15  ;;  %v2516_v19 = vpop.f32.mrb[8].mxu1  ;;  %v1075_v50 = vld [vmem:[#allocation2 + $0x21] sm:$0xff] }
  0xf6   : > { %1090 = vrot.lane.b32.xlu0 %v1074_v13, %s2629_s12  ;;  %v653_v18 = vadd.f32 %v2496_v16, %v2897_v28  ;;  %v644_v20 = vpop.f32.mrb[9].mxu0  ;;  %v733_v21 = vadd.f32 %v2516_v19, %v2897_v28  ;;  %v724_v23 = vpop.f32.mrb[9].mxu1 }
  0xf7   : > { %953 = vrot.lane.b32.xlu1 %v2936_v17, %s2627_s27  ;;  %v645_v24 = vadd.f32 %v2897_v28, %v644_v20  ;;  %v2497_v25 = vpop.f32.mrb[10].mxu0  ;;  %v725_v27 = vadd.f32 %v2897_v28, %v724_v23  ;;  %v2517_v29 = vpop.f32.mrb[10].mxu1 }
  0xf8   : > { %v749_v26 = vmax.f32 %v653_v18, 0.0  ;;  %v656_v30 = vadd.f32 %v2497_v25, %v2897_v28  ;;  %v647_v31 = vpop.f32.mrb[11].mxu0  ;;  %v769_v33 = vmax.f32 %v733_v21, 0.0  ;;  %v736_v34 = vadd.f32 %v2517_v29, %v2897_v28  ;;  %v727_v35 = vpop.f32.mrb[11].mxu1 }
  0xf9   : > { %v747_v36 = vmax.f32 %v645_v24, 0.0  ;;  %v648_v37 = vadd.f32 %v2897_v28, %v647_v31  ;;  %v1174_v39 = vld [vmem:[#allocation2 + $0x1e0] sm:$0xff]  ;;  %v767_v40 = vmax.f32 %v725_v27, 0.0  ;;  %v728_v41 = vadd.f32 %v2897_v28, %v727_v35  ;;  %v1080_v63 = vld [vmem:[#allocation2 + $0x71] sm:$0xff] }
  0xfa   : > { %955 = vrot.lane.b32.xlu0 %v2946_v32, %s2627_s27  ;;  %866 = vst.msk [vmem:[#allocation2 + $0xc1] sm:$0xff] %vm771_vm3, %v749_v26  ;;  %v750_v42 = vmax.f32 %v656_v30, 0.0  ;;  %v1172_v43 = vld [vmem:[#allocation2 + $0x1c0] sm:$0xff]  ;;  %906 = vst.msk [vmem:[#allocation2 + $0x221] sm:$0xff] %vm771_vm3, %v769_v33  ;;  %v770_v44 = vmax.f32 %v736_v34, 0.0 }
  0xfb   : > { %1096 = vrot.lane.b32.xlu1 %v1077_v38, %s2629_s12  ;;  %862 = vst.msk [vmem:[#allocation2 + $0xa1] sm:$0xff] %vm771_vm3, %v747_v36  ;;  %v748_v45 = vmax.f32 %v648_v37, 0.0  ;;  %921 = vst.msk [vmem:[#allocation3 + $0x18] sm:$0xff] %vm771_vm3, %v1174_v39  ;;  %v1175_v46 = vld [vmem:[#allocation2 + $0x1f0] sm:$0xff]  ;;  %v768_v47 = vmax.f32 %v728_v41, 0.0  ;;  %v979_v53 = vld [vmem:[#allocation2 + $0x1e1] sm:$0xff] }
  0xfc   : > { %902 = vst.msk [vmem:[#allocation2 + $0x201] sm:$0xff] %vm771_vm3, %v767_v40  ;;  %868 = vst.msk [vmem:[#allocation2 + $0xd1] sm:$0xff] %vm771_vm3, %v750_v42  ;;  %v2962_v48 = vld [vmem:[#allocation2 + $0x1d0] sm:$0xff]  ;;  %v977_v3 = vld [vmem:[#allocation2 + $0x1c1] sm:$0xff] }
  0xfd   : > { %919 = vst.msk [vmem:[#allocation3 + $0x8] sm:$0xff] %vm771_vm3, %v1172_v43  ;;  %908 = vst.msk [vmem:[#allocation2 + $0x231] sm:$0xff] %vm771_vm3, %v770_v44  ;;  %v2500_v49 = vpop.f32.mrb[12].mxu0  ;;  %v1273_v18 = vld [vmem:[#allocation2 + $0x1f1] sm:$0xff]  ;;  %v1081_v19 = vld [vmem:[#allocation2 + $0x81] sm:$0xff] }
  0xfe   : > { %864 = vst.msk [vmem:[#allocation2 + $0xb1] sm:$0xff] %vm771_vm3, %v748_v45  ;;  %922 = vst.msk [vmem:[#allocation3 + $0x20] sm:$0xff] %vm771_vm3, %v1175_v46  ;;  %1192 = vrot.lane.b32.xlu0 %v1174_v39, %s2630_s13  ;;  %v669_v51 = vadd.f32 %v2500_v49, %v2897_v28  ;;  %v660_v52 = vpop.f32.mrb[13].mxu0  ;;  %v1271_v20 = vld [vmem:[#allocation2 + $0x1d1] sm:$0xff]  ;;  %v1079_v23 = vld [vmem:[#allocation2 + $0x61] sm:$0xff] }
  0xff   : > { %904 = vst.msk [vmem:[#allocation2 + $0x211] sm:$0xff] %vm771_vm3, %v768_v47  ;;  %920 = vst.msk [vmem:[#allocation3 + $0x10] sm:$0xff] %vm771_vm3, %v2962_v48  ;;  %1092 = vrot.lane.b32.xlu1 %v1075_v50, %s2629_s12  ;;  %v661_v54 = vadd.f32 %v2897_v28, %v660_v52  ;;  %v2501_v55 = vpop.f32.mrb[14].mxu0  ;;  %v2601_v44 = vld [vmem:[%s3536_s3] sm:$0xff]   ;;  %v2602_v47 = vld [vmem:[%s3536_s3 + $0x8] sm:$0xff]  }
 0x100   : > { %v753_v56 = vmax.f32 %v669_v51, 0.0  ;;  %v672_v57 = vadd.f32 %v2501_v55, %v2897_v28  ;;  %v663_v58 = vpop.f32.mrb[15].mxu0  ;;  %2518 = vmatprep.subr.bf16.mxu1 %v2601_v44  ;;  %v2603_v49 = vld [vmem:[%s3536_s3 + $0x10] sm:$0xff]   ;;  %v2604_v50 = vld [vmem:[%s3536_s3 + $0x18] sm:$0xff]   ;;  %v2605_v52 = vld [vmem:[%s3536_s3 + $0x20] ss:$0 sps:$4 sm:$0xff]  }
 0x101   : > { %v751_v59 = vmax.f32 %v661_v54, 0.0  ;;  %v664_v60 = vadd.f32 %v2897_v28, %v663_v58  ;;  %v1178_v61 = vld [vmem:[#allocation2 + $0x220] sm:$0xff]  ;;  %2519 = vmatpush3.bf16.msra.mxu1 %v2601_v44 }
 0x102   : > { %1290 = vrot.lane.b32.xlu0 %v979_v53, %s2631_s14  ;;  %874 = vst.msk [vmem:[#allocation2 + $0x101] sm:$0xff] %vm771_vm3, %v753_v56  ;;  %v754_v62 = vmax.f32 %v672_v57, 0.0  ;;  %925 = vst.msk [vmem:[#allocation3 + $0x38] sm:$0xff] %vm771_vm3, %v1178_v61  ;;  %v1027_v21 = vld [vmem:[#allocation2 + $0xc0] sm:$0xff]  ;;  %2520 = vmatprep.subr.bf16.mxu1 %v2602_v47 }
 0x103   : > { %998 = vrot.lane.b32.xlu1 %v979_v53, %s2628_s28  ;;  %870 = vst.msk [vmem:[#allocation2 + $0xe1] sm:$0xff] %vm771_vm3, %v751_v59  ;;  %v752_v0 = vmax.f32 %v664_v60, 0.0  ;;  %v1176_v1 = vld [vmem:[#allocation2 + $0x200] sm:$0xff]  ;;  %v1028_v29 = vld [vmem:[#allocation2 + $0xd0] sm:$0xff]  ;;  %v1389_v53 = vsel %vm1387_vm7, %v2605_v52, 0 }
 0x104   : > { %876 = vst.msk [vmem:[#allocation2 + $0x111] sm:$0xff] %vm771_vm3, %v754_v62  ;;  %923 = vst.msk [vmem:[#allocation3 + $0x28] sm:$0xff] %vm771_vm3, %v1176_v1  ;;  %v1125_v24 = vld [vmem:[#allocation2 + $0xc1] sm:$0xff]  ;;  %v1126_v31 = vld [vmem:[#allocation2 + $0xd1] sm:$0xff] }
 0x105   : > { %872 = vst.msk [vmem:[#allocation2 + $0xf1] sm:$0xff] %vm771_vm3, %v752_v0  ;;  %v2504_v2 = vpop.f32.mrb[16].mxu0  ;;  %v3010_v25 = vld [vmem:[#allocation2 + $0x221] sm:$0xff]  ;;  %v1179_v33 = vld [vmem:[#allocation2 + $0x230] sm:$0xff]  ;;  %2521 = vmatpush3.bf16.msra.mxu1 %v2602_v47 }
 0x106   : > { %1102 = vrot.lane.b32.xlu0 %v1080_v63, %s2629_s12  ;;  %v685_v4 = vadd.f32 %v2504_v2, %v2897_v28  ;;  %v2985_v5 = vld [vmem:[#allocation2 + $0x210] sm:$0xff]  ;;  %v676_v6 = vpop.f32.mrb[17].mxu0  ;;  %v3015_v26 = vld [vmem:[#allocation2 + $0x201] sm:$0xff]  ;;  %2522 = vmatprep.subr.bf16.mxu1 %v2603_v49 }
 0x107   : > { %994 = vrot.lane.b32.xlu1 %v977_v3, %s2628_s28  ;;  %v677_v7 = vadd.f32 %v2897_v28, %v676_v6  ;;  %v2505_v9 = vpop.f32.mrb[18].mxu0  ;;  %924 = vst.msk [vmem:[#allocation3 + $0x30] sm:$0xff] %vm771_vm3, %v2985_v5  ;;  %v1025_v27 = vld [vmem:[#allocation2 + $0xa0] sm:$0xff]  ;;  %v3026_v34 = vld [vmem:[#allocation2 + $0x211] sm:$0xff] }
 0x108   : > { %v757_v10 = vmax.f32 %v685_v4, 0.0  ;;  %v688_v11 = vadd.f32 %v2505_v9, %v2897_v28  ;;  %v679_v12 = vpop.f32.mrb[19].mxu0  ;;  %v1123_v30 = vld [vmem:[#allocation2 + $0xa1] sm:$0xff]  ;;  %v1026_v35 = vld [vmem:[#allocation2 + $0xb0] sm:$0xff] }
 0x109   : > { %v755_v13 = vmax.f32 %v677_v7, 0.0  ;;  %v680_v14 = vadd.f32 %v2897_v28, %v679_v12  ;;  %v1078_v28 = vld [vmem:[#allocation2 + $0x51] sm:$0xff]  ;;  %v1031_v36 = vld [vmem:[#allocation2 + $0x100] sm:$0xff]  ;;  %2523 = vmatpush3.bf16.msra.mxu1 %v2603_v49 }
 0x10a   : > { %1188 = vrot.lane.b32.xlu0 %v1172_v43, %s2630_s13  ;;  %882 = vst.msk [vmem:[#allocation2 + $0x151] sm:$0xff] %vm771_vm3, %v757_v10  ;;  %v758_v15 = vmax.f32 %v688_v11, 0.0  ;;  %v1124_v37 = vld [vmem:[#allocation2 + $0xb1] sm:$0xff]  ;;  %v1129_v38 = vld [vmem:[#allocation2 + $0x101] sm:$0xff]  ;;  %2524 = vmatprep.subr.bf16.mxu1 %v2604_v50 }
 0x10b   : > { %1194 = vrot.lane.b32.xlu1 %v1175_v46, %s2630_s13  ;;  %878 = vst.msk [vmem:[#allocation2 + $0x131] sm:$0xff] %vm771_vm3, %v755_v13  ;;  %v756_v16 = vmax.f32 %v680_v14, 0.0  ;;  %v1029_v39 = vld [vmem:[#allocation2 + $0xe0] sm:$0xff]  ;;  %v1032_v40 = vld [vmem:[#allocation2 + $0x110] sm:$0xff] }
 0x10c   : > { %884 = vst.msk [vmem:[#allocation2 + $0x161] sm:$0xff] %vm771_vm3, %v758_v15  ;;  %v1127_v41 = vld [vmem:[#allocation2 + $0xe1] sm:$0xff]  ;;  %v1130_v42 = vld [vmem:[#allocation2 + $0x111] sm:$0xff] }
 0x10d   : > { %880 = vst.msk [vmem:[#allocation2 + $0x141] sm:$0xff] %vm771_vm3, %v756_v16  ;;  %v1030_v45 = vld [vmem:[#allocation2 + $0xf0] sm:$0xff]  ;;  %2525 = vmatpush3.bf16.msra.mxu1 %v2604_v50  ;;  %v1228_v56 = vld [vmem:[#allocation2 + $0x1a1] sm:$0xff]  ;;  %vm1760_vm3 = vcmask 523648  }
 0x10e   : > { %1286 = vrot.lane.b32.xlu0 %v977_v3, %s2631_s14  ;;  %2560 = vmatprep.subr.msk.bf16.mxu1 %vm1387_vm7, %v2605_v52  ;;  %v1277_v60 = vld [vmem:[#allocation2 + $0x231] sm:$0xff]  ;;  %vm1956_vm7 = vcmask 1048448  }
 0x10f   : > { %1292 = vrot.lane.b32.xlu1 %v1273_v18, %s2631_s14 }
 0x111   : > { %v1223_v43 = vld [vmem:[#allocation2 + $0x151] sm:$0xff]  ;;  %2527 = vmatpush3.bf16.msra.mxu1 %v1389_v53 }
 0x112   : > { %1098 = vrot.lane.b32.xlu0 %v1078_v28, %s2629_s12  ;;  %v928_v46 = vld [vmem:[#allocation2 + $0x131] sm:$0xff] }
 0x113   : > { %1104 = vrot.lane.b32.xlu1 %v1081_v19, %s2629_s12  ;;  %v1224_v51 = vld [vmem:[#allocation2 + $0x161] sm:$0xff] }
 0x116   : > { %1000 = vrot.lane.b32.xlu0 %v1273_v18, %s2628_s28 }
 0x117   : > { %1190 = vrot.lane.b32.xlu1 %v2962_v48, %s2630_s13  ;;  %v1128_v48 = vld [vmem:[#allocation2 + $0xf1] sm:$0xff] }
 0x11a   : > { %996 = vrot.lane.b32.xlu0 %v1271_v20, %s2628_s28 }
 0x11b   : > { %1288 = vrot.lane.b32.xlu1 %v1271_v20, %s2631_s14 }
 0x11e   : > { %1045 = vrot.lane.b32.xlu0 %v1027_v21, %s2632_s15 }
 0x11f   : > { %1100 = vrot.lane.b32.xlu1 %v1079_v23, %s2629_s12 }
 0x122   : > { %1143 = vrot.lane.b32.xlu0 %v1125_v24, %s2633_s16 }
 0x123   : > { %1006 = vrot.lane.b32.xlu1 %v3010_v25, %s2628_s28 }
 0x126   : > { %1200 = vrot.lane.b32.xlu0 %v1178_v61, %s2630_s13 }
 0x127   : > { %1002 = vrot.lane.b32.xlu1 %v3015_v26, %s2628_s28 }
 0x12a   : > { %1041 = vrot.lane.b32.xlu0 %v1025_v27, %s2632_s15 }
 0x12b   : > { %1047 = vrot.lane.b32.xlu1 %v1028_v29, %s2632_s15 }
 0x12e   : > { %1139 = vrot.lane.b32.xlu0 %v1123_v30, %s2633_s16 }
 0x12f   : > { %1145 = vrot.lane.b32.xlu1 %v1126_v31, %s2633_s16 }
 0x132   : > { %1196 = vrot.lane.b32.xlu0 %v1176_v1, %s2630_s13 }
 0x133   : > { %1202 = vrot.lane.b32.xlu1 %v1179_v33, %s2630_s13 }
 0x136   : > { %1004 = vrot.lane.b32.xlu0 %v3026_v34, %s2628_s28 }
 0x137   : > { %1043 = vrot.lane.b32.xlu1 %v1026_v35, %s2632_s15 }
 0x13a   : > { %1053 = vrot.lane.b32.xlu0 %v1031_v36, %s2632_s15 }
 0x13b   : > { %1141 = vrot.lane.b32.xlu1 %v1124_v37, %s2633_s16 }
 0x13e   : > { %1151 = vrot.lane.b32.xlu0 %v1129_v38, %s2633_s16 }
 0x13f   : > { %1198 = vrot.lane.b32.xlu1 %v2985_v5, %s2630_s13 }
 0x142   : > { %1049 = vrot.lane.b32.xlu0 %v1029_v39, %s2632_s15 }
 0x143   : > { %1055 = vrot.lane.b32.xlu1 %v1032_v40, %s2632_s15 }
 0x146   : > { %1147 = vrot.lane.b32.xlu0 %v1127_v41, %s2633_s16 }
 0x147   : > { %1153 = vrot.lane.b32.xlu1 %v1130_v42, %s2633_s16 }
 0x14a   : > { %1241 = vrot.lane.b32.xlu0 %v1223_v43, %s2634_s21 }
 0x14b   : > { %1051 = vrot.lane.b32.xlu1 %v1030_v45, %s2632_s15 }
 0x14e   : > { %945 = vrot.lane.b32.xlu0 %v928_v46, %s2627_s27 }
 0x14f   : > { %1149 = vrot.lane.b32.xlu1 %v1128_v48, %s2633_s16 }
 0x152   : > { %1245 = vrot.lane.b32.xlu0 %v2936_v17, %s2634_s21  ;;  %v929_v17 = vld [vmem:[#allocation2 + $0x141] sm:$0xff] }
 0x153   : > { %949 = vrot.lane.b32.xlu1 %v1223_v43, %s2627_s27 }
 0x156   : > { %1237 = vrot.lane.b32.xlu0 %v928_v46, %s2634_s21 }
 0x157   : > { %1243 = vrot.lane.b32.xlu1 %v1224_v51, %s2634_s21 }
 0x15a   : > { %951 = vrot.lane.b32.xlu0 %v1224_v51, %s2627_s27 }
 0x15b   : > { %947 = vrot.lane.b32.xlu1 %v929_v17, %s2627_s27  ;;  %s2638_s27 = smov 80  }
 0x15e   : > { %1249 = vrot.lane.b32.xlu0 %v2922_v8, %s2634_s21 }
 0x15f   : > { %1239 = vrot.lane.b32.xlu1 %v929_v17, %s2634_s21 }
 0x162   : > { %1294 = vrot.lane.b32.xlu0 %v3015_v26, %s2631_s14 }
 0x163   : > { %1247 = vrot.lane.b32.xlu1 %v2946_v32, %s2634_s21  ;;  %v3085_v32 = vld [vmem:[%s3538_s5] sm:$0xff]  }
 0x164   : > { %v3073_v54 = vpop.permute.xlu0 %1094  ;;  %2536 = vmatprep.subr.bf16.mxu1 %v3085_v32 }
 0x165   : > { %v958_v55 = vpop.permute.xlu1 %957 }
 0x166   : > { %975 = vst.msk [vmem:[#allocation3 + $0x38] sm:$0xff] %vm967_vm5, %v958_v55  ;;  %1298 = vrot.lane.b32.xlu0 %v3010_v25, %s2631_s14 }
 0x167   : > { %1251 = vrot.lane.b32.xlu1 %v1228_v56, %s2634_s21  ;;  %s2444_s21 = sshll.u32 %s3546_s18, 6  ;;  %s2635_s18 = smov 96  }
 0x168   : > { %v1091_v8 = vpop.permute.xlu0 %1090  ;;  %s3250_s26 = scalar_lea.vmem %s3544_s11, %s2444_s21 }
 0x169   : > { %v954_v57 = vpop.permute.xlu1 %953 }
 0x16a   : > { %973 = vst.msk [vmem:[#allocation3 + $0x28] sm:$0xff] %vm967_vm5, %v954_v57 }
 0x16b   : > { %1296 = vrot.lane.b32.xlu1 %v3026_v34, %s2631_s14 }
 0x16c   : > { %v956_v58 = vpop.permute.xlu0 %955 }
 0x16d   : > { %v3087_v59 = vpop.permute.xlu1 %1096  ;;  %974 = vst.msk [vmem:[#allocation3 + $0x30] sm:$0xff] %vm967_vm5, %v956_v58 }
 0x16f   : > { %1300 = vrot.lane.b32.xlu1 %v1277_v60, %s2631_s14 }
 0x170   : > { %v3092_v61 = vpop.permute.xlu0 %1192 }
 0x171   : > { %v3094_v62 = vpop.permute.xlu1 %1092 }
 0x174   : > { %v3096_v63 = vpop.permute.xlu0 %1290 }
 0x175   : > { %v3098_v0 = vpop.permute.xlu1 %998 }
 0x178   : > { %v1103_v1 = vpop.permute.xlu0 %1102 }
 0x179   : > { %v995_v2 = vpop.permute.xlu1 %994 }
 0x17c   : > { %v1189_v3 = vpop.permute.xlu0 %1188 }
 0x17d   : > { %v3100_v4 = vpop.permute.xlu1 %1194 }
 0x180   : > { %v3102_v5 = vpop.permute.xlu0 %1286 }
 0x181   : > { %v3104_v6 = vpop.permute.xlu1 %1292 }
 0x184   : > { %v3106_v7 = vpop.permute.xlu0 %1098 }
 0x185   : > { %v1105_v9 = vpop.permute.xlu1 %1104 }
 0x188   : > { %v3108_v10 = vpop.permute.xlu0 %1000 }
 0x189   : > { %v1191_v11 = vpop.permute.xlu1 %1190 }
 0x18c   : > { %v3110_v12 = vpop.permute.xlu0 %996 }
 0x18d   : > { %v3112_v13 = vpop.permute.xlu1 %1288 }
 0x190   : > { %v3114_v14 = vpop.permute.xlu0 %1045 }
 0x191   : > { %v1101_v15 = vpop.permute.xlu1 %1100 }
 0x194   : > { %v3116_v16 = vpop.permute.xlu0 %1143 }
 0x195   : > { %v1007_v18 = vpop.permute.xlu1 %1006 }
 0x196   : > { %1024 = vst.msk [vmem:[#allocation3 + $0x38] sm:$0xff] %vm1016_vm6, %v1007_v18 }
 0x198   : > { %v1201_v28 = vpop.permute.xlu0 %1200 }
 0x199   : > { %v1003_v19 = vpop.permute.xlu1 %1002 }
 0x19a   : > { %1022 = vst.msk [vmem:[#allocation3 + $0x28] sm:$0xff] %vm1016_vm6, %v1003_v19 }
 0x19c   : > { %v1042_v20 = vpop.permute.xlu0 %1041 }
 0x19d   : > { %v1048_v21 = vpop.permute.xlu1 %1047  ;;  %1066 = vst.msk [vmem:[#allocation3] sm:$0xff] %vm1065_vm8, %v1042_v20 }
 0x19e   : > { %1115 = vst.msk [vmem:[#allocation3] sm:$0xff] %vm1114_vm9, %v1091_v8 }
 0x1a0   : > { %v1140_v23 = vpop.permute.xlu0 %1139 }
 0x1a1   : > { %v1146_v24 = vpop.permute.xlu1 %1145  ;;  %1164 = vst.msk [vmem:[#allocation3] sm:$0xff] %vm1163_vm10, %v1140_v23 }
 0x1a2   : > { %1213 = vst.msk [vmem:[#allocation3] sm:$0xff] %vm1212_vm11, %v1189_v3 }
 0x1a4   : > { %v3124_v25 = vpop.permute.xlu0 %1196 }
 0x1a5   : > { %v1203_v26 = vpop.permute.xlu1 %1202 }
 0x1a8   : > { %v1005_v27 = vpop.permute.xlu0 %1004 }
 0x1a9   : > { %v1044_v29 = vpop.permute.xlu1 %1043  ;;  %1023 = vst.msk [vmem:[#allocation3 + $0x30] sm:$0xff] %vm1016_vm6, %v1005_v27 }
 0x1ac   : > { %v1054_v30 = vpop.permute.xlu0 %1053 }
 0x1ad   : > { %v1142_v31 = vpop.permute.xlu1 %1141  ;;  %1072 = vst.msk [vmem:[#allocation3 + $0x30] sm:$0xff] %vm1065_vm8, %v1054_v30 }
 0x1ae   : > { %1121 = vst.msk [vmem:[#allocation3 + $0x30] sm:$0xff] %vm1114_vm9, %v1103_v1 }
 0x1b0   : > { %v1152_v33 = vpop.permute.xlu0 %1151 }
 0x1b1   : > { %v1199_v34 = vpop.permute.xlu1 %1198  ;;  %1170 = vst.msk [vmem:[#allocation3 + $0x30] sm:$0xff] %vm1163_vm10, %v1152_v33 }
 0x1b2   : > { %1219 = vst.msk [vmem:[#allocation3 + $0x30] sm:$0xff] %vm1212_vm11, %v1201_v28 }
 0x1b4   : > { %v1050_v35 = vpop.permute.xlu0 %1049 }
 0x1b5   : > { %v1056_v36 = vpop.permute.xlu1 %1055 }
 0x1b6   : > { %1073 = vst.msk [vmem:[#allocation3 + $0x38] sm:$0xff] %vm1065_vm8, %v1056_v36  ;;  %v1671_v36 = vld [vmem:[#allocation4 + $0x2] sm:$0xff] }
 0x1b7   : > { %1122 = vst.msk [vmem:[#allocation3 + $0x38] sm:$0xff] %vm1114_vm9, %v1105_v9 }
 0x1b8   : > { %v1148_v37 = vpop.permute.xlu0 %1147 }
 0x1b9   : > { %v1154_v38 = vpop.permute.xlu1 %1153 }
 0x1ba   : > { %1171 = vst.msk [vmem:[#allocation3 + $0x38] sm:$0xff] %vm1163_vm10, %v1154_v38  ;;  %v1606_v38 = vld [vmem:[#allocation4] sm:$0xff] }
 0x1bb   : > { %1220 = vst.msk [vmem:[#allocation3 + $0x38] sm:$0xff] %vm1212_vm11, %v1203_v26 }
 0x1bc   : > { %v1242_v39 = vpop.permute.xlu0 %1241  ;;  %1614 = vst.msk [vmem:[#allocation5] sm:$0xff] %vm1483_vm15, %v1606_v38 }
 0x1bd   : > { %v1052_v40 = vpop.permute.xlu1 %1051 }
 0x1be   : > { %1071 = vst.msk [vmem:[#allocation3 + $0x28] sm:$0xff] %vm1065_vm8, %v1052_v40 }
 0x1bf   : > { %1120 = vst.msk [vmem:[#allocation3 + $0x28] sm:$0xff] %vm1114_vm9, %v1101_v15 }
 0x1c0   : > { %v946_v41 = vpop.permute.xlu0 %945 }
 0x1c1   : > { %v1150_v42 = vpop.permute.xlu1 %1149  ;;  %969 = vst.msk [vmem:[#allocation3 + $0x8] sm:$0xff] %vm967_vm5, %v946_v41 }
 0x1c2   : > { %1169 = vst.msk [vmem:[#allocation3 + $0x28] sm:$0xff] %vm1163_vm10, %v1150_v42 }
 0x1c3   : > { %1018 = vst.msk [vmem:[#allocation3 + $0x8] sm:$0xff] %vm1016_vm6, %v995_v2 }
 0x1c4   : > { %1067 = vst.msk [vmem:[#allocation3 + $0x8] sm:$0xff] %vm1065_vm8, %v1044_v29  ;;  %v1246_v43 = vpop.permute.xlu0 %1245 }
 0x1c5   : > { %1218 = vst.msk [vmem:[#allocation3 + $0x28] sm:$0xff] %vm1212_vm11, %v1199_v34  ;;  %v950_v44 = vpop.permute.xlu1 %949 }
 0x1c6   : > { %1116 = vst.msk [vmem:[#allocation3 + $0x8] sm:$0xff] %vm1114_vm9, %v3094_v62 }
 0x1c7   : > { %1165 = vst.msk [vmem:[#allocation3 + $0x8] sm:$0xff] %vm1163_vm10, %v1142_v31 }
 0x1c8   : > { %971 = vst.msk [vmem:[#allocation3 + $0x18] sm:$0xff] %vm967_vm5, %v950_v44  ;;  %v1238_v45 = vpop.permute.xlu0 %1237 }
 0x1c9   : > { %1214 = vst.msk [vmem:[#allocation3 + $0x8] sm:$0xff] %vm1212_vm11, %v1191_v11  ;;  %v1244_v46 = vpop.permute.xlu1 %1243 }
 0x1ca   : > { %1020 = vst.msk [vmem:[#allocation3 + $0x18] sm:$0xff] %vm1016_vm6, %v3098_v0 }
 0x1cb   : > { %1069 = vst.msk [vmem:[#allocation3 + $0x18] sm:$0xff] %vm1065_vm8, %v1048_v21 }
 0x1cc   : > { %1118 = vst.msk [vmem:[#allocation3 + $0x18] sm:$0xff] %vm1114_vm9, %v3087_v59  ;;  %v952_v47 = vpop.permute.xlu0 %951 }
 0x1cd   : > { %1262 = vst.msk [vmem:[#allocation3] sm:$0xff] %vm1261_vm12, %v1238_v45  ;;  %v948_v48 = vpop.permute.xlu1 %947 }
 0x1ce   : > { %1167 = vst.msk [vmem:[#allocation3 + $0x18] sm:$0xff] %vm1163_vm10, %v1146_v24 }
 0x1cf   : > { %1311 = vst.msk [vmem:[#allocation3] sm:$0xff] %vm1310_vm13, %v3102_v5 }
 0x1d0   : > { %1216 = vst.msk [vmem:[#allocation3 + $0x18] sm:$0xff] %vm1212_vm11, %v3100_v4  ;;  %v1250_v49 = vpop.permute.xlu0 %1249 }
 0x1d1   : > { %1265 = vst.msk [vmem:[#allocation3 + $0x18] sm:$0xff] %vm1261_vm12, %v1244_v46  ;;  %v1240_v50 = vpop.permute.xlu1 %1239  ;;  %1268 = vst.msk [vmem:[#allocation3 + $0x30] sm:$0xff] %vm1261_vm12, %v1250_v49 }
 0x1d2   : > { %1314 = vst.msk [vmem:[#allocation3 + $0x18] sm:$0xff] %vm1310_vm13, %v3104_v6 }
 0x1d3   : > { %972 = vst.msk [vmem:[#allocation3 + $0x20] sm:$0xff] %vm967_vm5, %v952_v47  ;;  %970 = vst.msk [vmem:[#allocation3 + $0x10] sm:$0xff] %vm967_vm5, %v948_v48  ;;  %vm1858_vm5 = vcmask 786048  }
 0x1d4   : > { %1021 = vst.msk [vmem:[#allocation3 + $0x20] sm:$0xff] %vm1016_vm6, %v3108_v10  ;;  %1019 = vst.msk [vmem:[#allocation3 + $0x10] sm:$0xff] %vm1016_vm6, %v3110_v12  ;;  %v1295_v51 = vpop.permute.xlu0 %1294  ;;  %vm1907_vm6 = vcmask 917248  }
 0x1d5   : > { %1070 = vst.msk [vmem:[#allocation3 + $0x20] sm:$0xff] %vm1065_vm8, %v1050_v35  ;;  %1068 = vst.msk [vmem:[#allocation3 + $0x10] sm:$0xff] %vm1065_vm8, %v3114_v14  ;;  %v1248_v52 = vpop.permute.xlu1 %1247  ;;  %v1622_v35 = vld [vmem:[#allocation4 + $0x1] sm:$0xff]  ;;  %vm2297_vm8 = vcmask 253056  }
 0x1d6   : > { %1119 = vst.msk [vmem:[#allocation3 + $0x20] sm:$0xff] %vm1114_vm9, %v3106_v7  ;;  %1117 = vst.msk [vmem:[#allocation3 + $0x10] sm:$0xff] %vm1114_vm9, %v3073_v54  ;;  %v1319_v54 = vld [vmem:[#allocation3] sm:$0xff]  ;;  %1638 = vrot.lane.b32.xlu0 %v1622_v35, %s2628_s28 }
 0x1d7   : > { %1168 = vst.msk [vmem:[#allocation3 + $0x20] sm:$0xff] %vm1163_vm10, %v1148_v37  ;;  %1166 = vst.msk [vmem:[#allocation3 + $0x10] sm:$0xff] %vm1163_vm10, %v3116_v16  ;;  %v1972_v37 = vld [vmem:[#allocation4 + $0x92] sm:$0xff] }
 0x1d8   : > { %1217 = vst.msk [vmem:[#allocation3 + $0x20] sm:$0xff] %vm1212_vm11, %v3124_v25  ;;  %1215 = vst.msk [vmem:[#allocation3 + $0x10] sm:$0xff] %vm1212_vm11, %v3092_v61  ;;  %v1299_v17 = vpop.permute.xlu0 %1298 }
 0x1d9   : > { %1263 = vst.msk [vmem:[#allocation3 + $0x8] sm:$0xff] %vm1261_vm12, %v1240_v50  ;;  %1266 = vst.msk [vmem:[#allocation3 + $0x20] sm:$0xff] %vm1261_vm12, %v1246_v43  ;;  %v1252_v53 = vpop.permute.xlu1 %1251  ;;  %v1322_v57 = vld [vmem:[#allocation3 + $0x18] sm:$0xff] }
 0x1da   : > { %1312 = vst.msk [vmem:[#allocation3 + $0x8] sm:$0xff] %vm1310_vm13, %v3112_v13  ;;  %1315 = vst.msk [vmem:[#allocation3 + $0x20] sm:$0xff] %vm1310_vm13, %v1295_v51  ;;  %1687 = vrot.lane.b32.xlu0 %v1671_v36, %s2629_s12 }
 0x1db   : > { %1264 = vst.msk [vmem:[#allocation3 + $0x10] sm:$0xff] %vm1261_vm12, %v1242_v39  ;;  %1267 = vst.msk [vmem:[#allocation3 + $0x28] sm:$0xff] %vm1261_vm12, %v1248_v52 }
 0x1dc   : > { %1313 = vst.msk [vmem:[#allocation3 + $0x10] sm:$0xff] %vm1310_vm13, %v3096_v63  ;;  %1317 = vst.msk [vmem:[#allocation3 + $0x30] sm:$0xff] %vm1310_vm13, %v1299_v17 }
 0x1dd   : > { %1269 = vst.msk [vmem:[#allocation3 + $0x38] sm:$0xff] %vm1261_vm12, %v1252_v53  ;;  %v1297_v58 = vpop.permute.xlu1 %1296 }
 0x1de   : > { %1316 = vst.msk [vmem:[#allocation3 + $0x28] sm:$0xff] %vm1310_vm13, %v1297_v58 }
 0x1df   : > { %1980 = vst.msk [vmem:[#allocation5 + $0x78] sm:$0xff] %vm1483_vm15, %v1972_v37 }
 0x1e1   : > { %v1320_v55 = vld [vmem:[#allocation3 + $0x8] sm:$0xff]  ;;  %v1301_v60 = vpop.permute.xlu1 %1300  ;;  %v1323_v61 = vld [vmem:[#allocation3 + $0x20] sm:$0xff] }
 0x1e2   : > { %v1327_v56 = vpack.c.bf16 %v1320_v55, %v1319_v54  ;;  %1318 = vst.msk [vmem:[#allocation3 + $0x38] sm:$0xff] %vm1310_vm13, %v1301_v60 }
 0x1e3   : > { %v1321_v8 = vld [vmem:[#allocation3 + $0x10] sm:$0xff] }
 0x1e4   : > { %2528 = vmatprep.mubr.msk.bf16.mxu1 %vm1374_vm14, %v1327_v56  ;;  %v1328_v59 = vpack.c.bf16 %v1322_v57, %v1321_v8  ;;  %v1325_v0 = vld [vmem:[#allocation3 + $0x30] sm:$0xff] }
 0x1e5   : > { %v1324_v62 = vld [vmem:[#allocation3 + $0x28] sm:$0xff] }
 0x1e6   : > { %2529 = vmatmul.mubr.msk.bf16.vlgmr.msra.gmra.mrb[12].mxu1 %vm1374_vm14, %v1328_v59  ;;  %v1329_v63 = vpack.c.bf16 %v1324_v62, %v1323_v61 }
 0x1e7   : > { %2537 = vmatpush3.bf16.msra.mxu1 %v3085_v32  ;;  %v2405_v32 = vld [vmem:[%s3537_s4] ss:$0 sm:$0xff] }
 0x1e8   : > { %2532 = vmatprep.mubr.msk.bf16.mxu1 %vm1374_vm14, %v1329_v63  ;;  %v2607_v63 = vld [vmem:[%s3540_s7] sm:$0xff]  }
 0x1e9   : > { %v1326_v1 = vld [vmem:[#allocation3 + $0x38] sm:$0xff] }
 0x1ea   : > { %v1330_v2 = vpack.c.bf16 %v1326_v1, %v1325_v0  ;;  %v2637_v0 = vmov 0  }
 0x1eb   : > { %2096 = vmatprep.subr.bf16.mxu0 %v2637_v0 }
 0x1ec   : > { %2097 = vmatpush1.bf16.msra.mxu0 %v2607_v63 }
 0x1ed   : > { %2098 = vmatprep.subr.bf16.mxu0 %v2637_v0 }
 0x1ee   : > { %2533 = vmatmul.mubr.msk.bf16.gmra.mrb[16].mxu1 %vm1374_vm14, %v1330_v2 }
 0x248   : > { %v1639_v39 = vpop.permute.xlu0 %1638 }
 0x249   : > { %1663 = vst.msk [vmem:[#allocation5] sm:$0xff] %vm1662_vm1, %v1639_v39 }
 0x24c   : > { %v1688_v40 = vpop.permute.xlu0 %1687 }
 0x24d   : > { %1712 = vst.msk [vmem:[#allocation5] sm:$0xff] %vm1711_vm2, %v1688_v40 }
 0x2b9   : > { %v2530_v3 = vpop.f32.mrb[12].mxu1 }
 0x2ba   : > { %v1434_v4 = vadd.f32 %v2530_v3, %v2405_v32  ;;  %v1425_v5 = vpop.f32.mrb[13].mxu1 }
 0x2bb   : > { %v1426_v6 = vadd.f32 %v2405_v32, %v1425_v5  ;;  %v2531_v7 = vpop.f32.mrb[14].mxu1 }
 0x2bc   : > { %v1437_v9 = vadd.f32 %v2531_v7, %v2405_v32  ;;  %v1428_v10 = vpop.f32.mrb[15].mxu1  ;;  %v1458_v12 = vmax.f32 %v1434_v4, 0.0 }
 0x2bd   : > { %v1429_v11 = vadd.f32 %v2405_v32, %v1428_v10  ;;  %v1456_v14 = vmax.f32 %v1426_v6, 0.0 }
 0x2be   : > { %v1459_v13 = vmax.f32 %v1437_v9, 0.0 }
 0x2bf   : > { %v1457_v15 = vmax.f32 %v1429_v11, 0.0 }
 0x2c0   : > { %v1465_v16 = vpack.c.bf16 %v1459_v13, %v1458_v12  ;;  %v2609_v13 = vld [vmem:[%s3540_s7 + $0x10] sm:$0xff]  }
 0x2c1   : > { %v1464_v18 = vpack.c.bf16 %v1457_v15, %v1456_v14  ;;  %v2534_v28 = vpop.f32.mrb[16].mxu1  ;;  %v2610_v14 = vld [vmem:[%s3540_s7 + $0x18] sm:$0xff]  }
 0x2c2   : > { %v1450_v19 = vadd.f32 %v2534_v28, %v2405_v32  ;;  %v1441_v20 = vpop.f32.mrb[17].mxu1 }
 0x2c3   : > { %2538 = vmatprep.mubr.msk.bf16.mxu1 %vm1483_vm15, %v1464_v18  ;;  %v1442_v21 = vadd.f32 %v2405_v32, %v1441_v20  ;;  %v2535_v23 = vpop.f32.mrb[18].mxu1  ;;  %v2612_v18 = vld [vmem:[%s3540_s7 + $0x28] sm:$0xff]   ;;  %v2614_v20 = vld [vmem:[%s3540_s7 + $0x38] sm:$0xff]  }
 0x2c4   : > { %2539 = vmatmul.mubr.msk.bf16.vlgmr.msra.gmra.mrb[20].mxu1 %vm1483_vm15, %v1465_v16  ;;  %v1453_v24 = vadd.f32 %v2535_v23, %v2405_v32  ;;  %v1444_v25 = vpop.f32.mrb[19].mxu1  ;;  %v1462_v27 = vmax.f32 %v1450_v19, 0.0  ;;  %v2611_v16 = vld [vmem:[%s3540_s7 + $0x20] sm:$0xff]   ;;  %v2613_v19 = vld [vmem:[%s3540_s7 + $0x30] sm:$0xff]  }
 0x2c5   : > { %v1445_v26 = vadd.f32 %v2405_v32, %v1444_v25  ;;  %v1460_v30 = vmax.f32 %v1442_v21, 0.0  ;;  %v2608_v32 = vld [vmem:[%s3540_s7 + $0x8] sm:$0xff]   ;;  %v2615_v21 = vld [vmem:[%s3540_s7 + $0x40] sm:$0xff]  }
 0x2c6   : > { %v1463_v29 = vmax.f32 %v1453_v24, 0.0  ;;  %2099 = vmatpush1.bf16.msra.mxu0 %v2608_v32 }
 0x2c7   : > { %v1461_v31 = vmax.f32 %v1445_v26, 0.0  ;;  %2100 = vmatprep.subr.bf16.mxu0 %v2637_v0 }
 0x2c8   : > { %v1467_v33 = vpack.c.bf16 %v1463_v29, %v1462_v27 }
 0x2c9   : > { %v1466_v34 = vpack.c.bf16 %v1461_v31, %v1460_v30  ;;  %v1874_v30 = vld [vmem:[#allocation4 + $0x90] sm:$0xff] }
 0x2ca   : > { %2101 = vmatpush1.bf16.msra.mxu0 %v2609_v13  ;;  %v1923_v31 = vld [vmem:[#allocation4 + $0x91] sm:$0xff] }
 0x2cb   : > { %2542 = vmatprep.mubr.msk.bf16.mxu1 %vm1483_vm15, %v1466_v34  ;;  %2102 = vmatprep.subr.bf16.mxu0 %v2637_v0 }
 0x2cc   : > { %2543 = vmatmul.mubr.msk.bf16.gmra.mrb[24].mxu1 %vm1483_vm15, %v1467_v33 }
 0x2ce   : > { %2103 = vmatpush1.bf16.msra.mxu0 %v2610_v14 }
 0x2cf   : > { %2104 = vmatprep.subr.bf16.mxu0 %v2637_v0 }
 0x2d2   : > { %2105 = vmatpush1.bf16.msra.mxu0 %v2611_v16 }
 0x2d3   : > { %2106 = vmatprep.subr.bf16.mxu0 %v2637_v0 }
 0x2d6   : > { %2107 = vmatpush1.bf16.msra.mxu0 %v2612_v18 }
 0x2d7   : > { %2108 = vmatprep.subr.bf16.mxu0 %v2637_v0 }
 0x2da   : > { %2109 = vmatpush1.bf16.msra.mxu0 %v2613_v19 }
 0x2db   : > { %2110 = vmatprep.subr.bf16.mxu0 %v2637_v0 }
 0x2de   : > { %2111 = vmatpush1.bf16.msra.mxu0 %v2614_v20 }
 0x2df   : > { %2112 = vmatprep.subr.bf16.mxu0 %v2637_v0 }
 0x2e2   : > { %2113 = vmatpush1.bf16.msra.mxu0 %v2615_v21 }
 0x397   : > { %v2540_v41 = vpop.f32.mrb[20].mxu1 }
 0x398   : > { %v1539_v42 = vadd.f32 %v2540_v41, %v2415_v22  ;;  %v1530_v43 = vpop.f32.mrb[21].mxu1 }
 0x399   : > { %v1531_v44 = vadd.f32 %v2415_v22, %v1530_v43  ;;  %v2541_v45 = vpop.f32.mrb[22].mxu1 }
 0x39a   : > { %1563 = vst.msk [vmem:[%s3250_s26 + $0x10] sm:$0xff] %vm1483_vm15, %v1539_v42  ;;  %1595 = vst.msk [vmem:[#allocation4 + $0x31] sm:$0xff] %vm1483_vm15, %v1539_v42  ;;  %v1542_v46 = vadd.f32 %v2541_v45, %v2415_v22  ;;  %v1533_v47 = vpop.f32.mrb[23].mxu1 }
 0x39b   : > { %1561 = vst.msk [vmem:[%s3250_s26] sm:$0xff] %vm1483_vm15, %v1531_v44  ;;  %1591 = vst.msk [vmem:[#allocation4 + $0x11] sm:$0xff] %vm1483_vm15, %v1531_v44  ;;  %v1534_v48 = vadd.f32 %v2415_v22, %v1533_v47 }
 0x39c   : > { %1564 = vst.msk [vmem:[%s3250_s26 + $0x18] sm:$0xff] %vm1483_vm15, %v1542_v46  ;;  %1597 = vst.msk [vmem:[#allocation4 + $0x41] sm:$0xff] %vm1483_vm15, %v1542_v46 }
 0x39d   : > { %1562 = vst.msk [vmem:[%s3250_s26 + $0x8] sm:$0xff] %vm1483_vm15, %v1534_v48  ;;  %1593 = vst.msk [vmem:[#allocation4 + $0x21] sm:$0xff] %vm1483_vm15, %v1534_v48 }
 0x39f   : > { %v2544_v54 = vpop.f32.mrb[24].mxu1 }
 0x3a0   : > { %v1555_v56 = vadd.f32 %v2544_v54, %v2415_v22  ;;  %v1546_v8 = vpop.f32.mrb[25].mxu1 }
 0x3a1   : > { %v1966_v49 = vld [vmem:[#allocation4 + $0x32] sm:$0xff]  ;;  %v1547_v58 = vadd.f32 %v2415_v22, %v1546_v8  ;;  %v2545_v59 = vpop.f32.mrb[26].mxu1 }
 0x3a2   : > { %v1868_v50 = vld [vmem:[#allocation4 + $0x30] sm:$0xff]  ;;  %1974 = vst.msk [vmem:[#allocation5 + $0x18] sm:$0xff] %vm1483_vm15, %v1966_v49  ;;  %1567 = vst.msk [vmem:[%s3250_s26 + $0x30] sm:$0xff] %vm1483_vm15, %v1555_v56  ;;  %v1558_v60 = vadd.f32 %v2545_v59, %v2415_v22  ;;  %v1549_v61 = vpop.f32.mrb[27].mxu1 }
 0x3a3   : > { %1885 = vrot.lane.b32.xlu1 %v1868_v50, %s2635_s18  ;;  %1740 = vrot.lane.b32.xlu0 %v1868_v50, %s2630_s13  ;;  %v1720_v51 = vld [vmem:[#allocation4 + $0x10] sm:$0xff]  ;;  %1617 = vst.msk [vmem:[#allocation5 + $0x30] sm:$0xff] %vm1483_vm15, %v1868_v50  ;;  %v3268_v52 = vld [vmem:[#allocation4 + $0x42] sm:$0xff]  ;;  %1603 = vst.msk [vmem:[#allocation4 + $0x71] sm:$0xff] %vm1483_vm15, %v1555_v56  ;;  %v1550_v62 = vadd.f32 %v2415_v22, %v1549_v61 }
 0x3a4   : > { %v3270_v17 = vld [vmem:[#allocation4 + $0x40] sm:$0xff]  ;;  %1615 = vst.msk [vmem:[#allocation5 + $0x10] sm:$0xff] %vm1483_vm15, %v1720_v51  ;;  %1975 = vst.msk [vmem:[#allocation5 + $0x28] sm:$0xff] %vm1483_vm15, %v3268_v52  ;;  %v1917_v57 = vld [vmem:[#allocation4 + $0x31] sm:$0xff] }
 0x3a5   : > { %v3275_v53 = vld [vmem:[#allocation4 + $0x22] sm:$0xff]  ;;  %1618 = vst.msk [vmem:[#allocation5 + $0x40] sm:$0xff] %vm1483_vm15, %v3270_v17  ;;  %1565 = vst.msk [vmem:[%s3250_s26 + $0x20] sm:$0xff] %vm1483_vm15, %v1547_v58  ;;  %v1769_v11 = vld [vmem:[#allocation4 + $0x11] sm:$0xff] }
 0x3a6   : > { %v3277_v55 = vld [vmem:[#allocation4 + $0x20] sm:$0xff]  ;;  %1973 = vst.msk [vmem:[#allocation5 + $0x8] sm:$0xff] %vm1483_vm15, %v3275_v53  ;;  %1599 = vst.msk [vmem:[#allocation4 + $0x51] sm:$0xff] %vm1483_vm15, %v1547_v58  ;;  %v1818_v15 = vld [vmem:[#allocation4 + $0x12] sm:$0xff] }
 0x3a7   : > { %1616 = vst.msk [vmem:[#allocation5 + $0x20] sm:$0xff] %vm1483_vm15, %v3277_v55  ;;  %1934 = vrot.lane.b32.xlu1 %v1917_v57, %s2636_s29  ;;  %1789 = vrot.lane.b32.xlu0 %v1917_v57, %s2631_s14  ;;  %1568 = vst.msk [vmem:[%s3250_s26 + $0x38] sm:$0xff] %vm1483_vm15, %v1558_v60  ;;  %v1918_v28 = vld [vmem:[#allocation4 + $0x41] sm:$0xff] }
 0x3a8   : > { %1605 = vst.msk [vmem:[#allocation4 + $0x81] sm:$0xff] %vm1483_vm15, %v1558_v60  ;;  %1566 = vst.msk [vmem:[%s3250_s26 + $0x28] sm:$0xff] %vm1483_vm15, %v1550_v62  ;;  %v1770_v23 = vld [vmem:[#allocation4 + $0x21] sm:$0xff] }
 0x3a9   : > { %1601 = vst.msk [vmem:[#allocation4 + $0x61] sm:$0xff] %vm1483_vm15, %v1550_v62  ;;  %v1984_v2 = vld [vmem:[#allocation5 + $0x18] sm:$0xff] }
 0x3aa   : > { %v3309_v4 = vld [vmem:[#allocation4 + $0x72] sm:$0xff] }
 0x3ab   : > { %1838 = vrot.lane.b32.xlu0 %v1966_v49, %s2638_s27  ;;  %1644 = vrot.lane.b32.xlu1 %v1917_v57, %s2628_s28  ;;  %v1872_v5 = vld [vmem:[#allocation4 + $0x70] sm:$0xff]  ;;  %1978 = vst.msk [vmem:[#allocation5 + $0x58] sm:$0xff] %vm1483_vm15, %v3309_v4  ;;  %v1986_v62 = vld [vmem:[#allocation5 + $0x28] sm:$0xff] }
 0x3ac   : > { %1621 = vst.msk [vmem:[#allocation5 + $0x70] sm:$0xff] %vm1483_vm15, %v1872_v5  ;;  %v1921_v24 = vld [vmem:[#allocation4 + $0x71] sm:$0xff] }
 0x3ad   : > { %v1982_v1 = vld [vmem:[#allocation5 + $0x8] sm:$0xff]  ;;  %v3315_v6 = vld [vmem:[#allocation4 + $0x52] sm:$0xff] }
 0x3ae   : > { %v1998_v3 = vpack.c.bf16 %v1984_v2, %v1982_v1  ;;  %v3318_v7 = vld [vmem:[#allocation4 + $0x50] sm:$0xff]  ;;  %1976 = vst.msk [vmem:[#allocation5 + $0x38] sm:$0xff] %vm1483_vm15, %v3315_v6 }
 0x3af   : > { %1693 = vrot.lane.b32.xlu1 %v1966_v49, %s2629_s12  ;;  %1736 = vrot.lane.b32.xlu0 %v1720_v51, %s2630_s13  ;;  %v3323_v9 = vld [vmem:[#allocation4 + $0x82] sm:$0xff]  ;;  %1619 = vst.msk [vmem:[#allocation5 + $0x50] sm:$0xff] %vm1483_vm15, %v3318_v7  ;;  %v1919_v25 = vld [vmem:[#allocation4 + $0x51] sm:$0xff] }
 0x3b0   : > { %2431 = vmatprep.mubr.msk.bf16.mxu0 %vm1483_vm15, %v1998_v3  ;;  %1979 = vst.msk [vmem:[#allocation5 + $0x68] sm:$0xff] %vm1483_vm15, %v3323_v9  ;;  %v3330_v10 = vld [vmem:[#allocation4 + $0x62] sm:$0xff] }
 0x3b1   : > { %v3332_v12 = vld [vmem:[#allocation4 + $0x60] sm:$0xff]  ;;  %1977 = vst.msk [vmem:[#allocation5 + $0x48] sm:$0xff] %vm1483_vm15, %v3330_v10 }
 0x3b2   : > { %1620 = vst.msk [vmem:[#allocation5 + $0x60] sm:$0xff] %vm1483_vm15, %v3332_v12  ;;  %v1727_v26 = vld [vmem:[#allocation4 + $0x80] sm:$0xff]  ;;  %v1992_v16 = vld [vmem:[#allocation5 + $0x58] sm:$0xff] }
 0x3b3   : > { %1785 = vrot.lane.b32.xlu0 %v1769_v11, %s2631_s14  ;;  %1640 = vrot.lane.b32.xlu1 %v1769_v11, %s2628_s28  ;;  %v1920_v27 = vld [vmem:[#allocation4 + $0x61] sm:$0xff] }
 0x3b4   : > { %v1776_v29 = vld [vmem:[#allocation4 + $0x81] sm:$0xff] }
 0x3b5   : > { %v1988_v58 = vld [vmem:[#allocation5 + $0x38] sm:$0xff] }
 0x3b6   : > { %v2000_v1 = vpack.c.bf16 %v1988_v58, %v1986_v62 }
 0x3b7   : > { %1834 = vrot.lane.b32.xlu0 %v1818_v15, %s2638_s27  ;;  %1689 = vrot.lane.b32.xlu1 %v1818_v15, %s2629_s12 }
 0x3bb   : > { %1887 = vrot.lane.b32.xlu0 %v3270_v17, %s2635_s18  ;;  %1742 = vrot.lane.b32.xlu1 %v3270_v17, %s2630_s13 }
 0x3bf   : > { %1936 = vrot.lane.b32.xlu0 %v1918_v28, %s2636_s29  ;;  %1791 = vrot.lane.b32.xlu1 %v1918_v28, %s2631_s14 }
 0x3c3   : > { %1646 = vrot.lane.b32.xlu0 %v1918_v28, %s2628_s28  ;;  %1840 = vrot.lane.b32.xlu1 %v3268_v52, %s2638_s27 }
 0x3c7   : > { %1695 = vrot.lane.b32.xlu0 %v3268_v52, %s2629_s12  ;;  %1738 = vrot.lane.b32.xlu1 %v3277_v55, %s2630_s13 }
 0x3cb   : > { %1883 = vrot.lane.b32.xlu0 %v3277_v55, %s2635_s18  ;;  %1787 = vrot.lane.b32.xlu1 %v1770_v23, %s2631_s14 }
 0x3cf   : > { %1932 = vrot.lane.b32.xlu0 %v1770_v23, %s2636_s29  ;;  %1836 = vrot.lane.b32.xlu1 %v3275_v53, %s2638_s27 }
 0x3d3   : > { %1642 = vrot.lane.b32.xlu0 %v1770_v23, %s2628_s28  ;;  %1893 = vrot.lane.b32.xlu1 %v1872_v5, %s2635_s18 }
 0x3d7   : > { %1691 = vrot.lane.b32.xlu0 %v3275_v53, %s2629_s12  ;;  %1942 = vrot.lane.b32.xlu1 %v1921_v24, %s2636_s29 }
 0x3db   : > { %1748 = vrot.lane.b32.xlu0 %v1872_v5, %s2630_s13  ;;  %1652 = vrot.lane.b32.xlu1 %v1921_v24, %s2628_s28 }
 0x3df   : > { %1797 = vrot.lane.b32.xlu0 %v1921_v24, %s2631_s14  ;;  %1701 = vrot.lane.b32.xlu1 %v3309_v4, %s2629_s12 }
 0x3e3   : > { %1846 = vrot.lane.b32.xlu0 %v3309_v4, %s2638_s27  ;;  %1889 = vrot.lane.b32.xlu1 %v3318_v7, %s2635_s18 }
 0x3e7   : > { %1938 = vrot.lane.b32.xlu1 %v1919_v25, %s2636_s29  ;;  %1744 = vrot.lane.b32.xlu0 %v3318_v7, %s2630_s13 }
 0x3eb   : > { %1793 = vrot.lane.b32.xlu0 %v1919_v25, %s2631_s14  ;;  %1648 = vrot.lane.b32.xlu1 %v1919_v25, %s2628_s28 }
 0x3ef   : > { %1842 = vrot.lane.b32.xlu0 %v3315_v6, %s2638_s27  ;;  %1697 = vrot.lane.b32.xlu1 %v3315_v6, %s2629_s12 }
 0x3f3   : > { %1891 = vrot.lane.b32.xlu0 %v3332_v12, %s2635_s18  ;;  %1750 = vrot.lane.b32.xlu1 %v1727_v26, %s2630_s13 }
 0x3f7   : > { %1940 = vrot.lane.b32.xlu0 %v1920_v27, %s2636_s29  ;;  %1799 = vrot.lane.b32.xlu1 %v1776_v29, %s2631_s14 }
 0x3fb   : > { %1650 = vrot.lane.b32.xlu0 %v1920_v27, %s2628_s28  ;;  %1746 = vrot.lane.b32.xlu1 %v3332_v12, %s2630_s13 }
 0x3ff   : > { %1699 = vrot.lane.b32.xlu0 %v3330_v10, %s2629_s12  ;;  %1795 = vrot.lane.b32.xlu1 %v1920_v27, %s2631_s14 }
 0x403   : > { %1895 = vrot.lane.b32.xlu0 %v1727_v26, %s2635_s18  ;;  %1844 = vrot.lane.b32.xlu1 %v3330_v10, %s2638_s27  ;;  %v1990_v10 = vld [vmem:[#allocation5 + $0x48] sm:$0xff] }
 0x404   : > { %v2002_v18 = vpack.c.bf16 %v1992_v16, %v1990_v10 }
 0x407   : > { %1944 = vrot.lane.b32.xlu0 %v1776_v29, %s2636_s29  ;;  %1848 = vrot.lane.b32.xlu1 %v3323_v9, %s2638_s27 }
 0x40b   : > { %1897 = vrot.lane.b32.xlu1 %v1874_v30, %s2635_s18 }
 0x40f   : > { %1946 = vrot.lane.b32.xlu1 %v1923_v31, %s2636_s29 }
 0x415   : > { %v1886_v33 = vpop.permute.xlu1 %1885  ;;  %v1741_v34 = vpop.permute.xlu0 %1740 }
 0x419   : > { %v1935_v35 = vpop.permute.xlu1 %1934  ;;  %v1790_v36 = vpop.permute.xlu0 %1789 }
 0x41d   : > { %v1645_v37 = vpop.permute.xlu1 %1644  ;;  %v1839_v38 = vpop.permute.xlu0 %1838 }
 0x41e   : > { %1666 = vst.msk [vmem:[#allocation5 + $0x30] sm:$0xff] %vm1662_vm1, %v1645_v37 }
 0x421   : > { %v1694_v39 = vpop.permute.xlu1 %1693  ;;  %v1737_v40 = vpop.permute.xlu0 %1736 }
 0x422   : > { %1715 = vst.msk [vmem:[#allocation5 + $0x30] sm:$0xff] %vm1711_vm2, %v1694_v39 }
 0x423   : > { %1761 = vst.msk [vmem:[#allocation5] sm:$0xff] %vm1760_vm3, %v1737_v40 }
 0x425   : > { %v1641_v22 = vpop.permute.xlu1 %1640  ;;  %v1786_v41 = vpop.permute.xlu0 %1785 }
 0x426   : > { %1664 = vst.msk [vmem:[#allocation5 + $0x10] sm:$0xff] %vm1662_vm1, %v1641_v22 }
 0x427   : > { %1810 = vst.msk [vmem:[#allocation5] sm:$0xff] %vm1809_vm4, %v1786_v41 }
 0x429   : > { %v1690_v42 = vpop.permute.xlu1 %1689  ;;  %v1835_v43 = vpop.permute.xlu0 %1834 }
 0x42a   : > { %1713 = vst.msk [vmem:[#allocation5 + $0x10] sm:$0xff] %vm1711_vm2, %v1690_v42 }
 0x42b   : > { %1859 = vst.msk [vmem:[#allocation5] sm:$0xff] %vm1858_vm5, %v1835_v43  ;;  %v2616_v43 = vld [vmem:[%s3542_s9] sm:$0xff]  }
 0x42c   : > { %2546 = vmatprep.subr.bf16.mxu1 %v2616_v43 }
 0x42d   : > { %v1743_v44 = vpop.permute.xlu1 %1742  ;;  %v1888_v45 = vpop.permute.xlu0 %1887  ;;  %2547 = vmatpush3.bf16.msra.mxu1 %v2616_v43 }
 0x42e   : > { %1764 = vst.msk [vmem:[#allocation5 + $0x30] sm:$0xff] %vm1760_vm3, %v1743_v44  ;;  %v2421_v44 = vld [vmem:[%s3541_s8] ss:$0 sm:$0xff] }
 0x431   : > { %v1792_v46 = vpop.permute.xlu1 %1791  ;;  %v1937_v47 = vpop.permute.xlu0 %1936 }
 0x432   : > { %1813 = vst.msk [vmem:[#allocation5 + $0x30] sm:$0xff] %vm1809_vm4, %v1792_v46 }
 0x435   : > { %v1841_v48 = vpop.permute.xlu1 %1840  ;;  %v1647_v49 = vpop.permute.xlu0 %1646 }
 0x436   : > { %1862 = vst.msk [vmem:[#allocation5 + $0x30] sm:$0xff] %vm1858_vm5, %v1841_v48 }
 0x437   : > { %1667 = vst.msk [vmem:[#allocation5 + $0x40] sm:$0xff] %vm1662_vm1, %v1647_v49 }
 0x439   : > { %v1739_v50 = vpop.permute.xlu1 %1738  ;;  %v1696_v51 = vpop.permute.xlu0 %1695 }
 0x43a   : > { %1762 = vst.msk [vmem:[#allocation5 + $0x10] sm:$0xff] %vm1760_vm3, %v1739_v50 }
 0x43b   : > { %1716 = vst.msk [vmem:[#allocation5 + $0x40] sm:$0xff] %vm1711_vm2, %v1696_v51 }
 0x43d   : > { %v1788_v52 = vpop.permute.xlu1 %1787  ;;  %v1884_v17 = vpop.permute.xlu0 %1883 }
 0x43e   : > { %1811 = vst.msk [vmem:[#allocation5 + $0x10] sm:$0xff] %vm1809_vm4, %v1788_v52 }
 0x43f   : > { %1908 = vst.msk [vmem:[#allocation5] sm:$0xff] %vm1907_vm6, %v1884_v17 }
 0x441   : > { %v1837_v53 = vpop.permute.xlu1 %1836  ;;  %v1933_v54 = vpop.permute.xlu0 %1932 }
 0x442   : > { %1860 = vst.msk [vmem:[#allocation5 + $0x10] sm:$0xff] %vm1858_vm5, %v1837_v53 }
 0x443   : > { %1957 = vst.msk [vmem:[#allocation5] sm:$0xff] %vm1956_vm7, %v1933_v54 }
 0x444   : > { %1909 = vst.msk [vmem:[#allocation5 + $0x10] sm:$0xff] %vm1907_vm6, %v1886_v33 }
 0x445   : > { %1958 = vst.msk [vmem:[#allocation5 + $0x10] sm:$0xff] %vm1956_vm7, %v1935_v35  ;;  %v3449_v55 = vpop.permute.xlu1 %1893  ;;  %v1643_v56 = vpop.permute.xlu0 %1642  ;;  %v1996_v35 = vld [vmem:[#allocation5 + $0x78] sm:$0xff] }
 0x446   : > { %1665 = vst.msk [vmem:[#allocation5 + $0x20] sm:$0xff] %vm1662_vm1, %v1643_v56 }
 0x449   : > { %v3452_v8 = vpop.permute.xlu1 %1942  ;;  %v1692_v57 = vpop.permute.xlu0 %1691 }
 0x44a   : > { %1714 = vst.msk [vmem:[#allocation5 + $0x20] sm:$0xff] %vm1711_vm2, %v1692_v57  ;;  %v1981_v59 = vld [vmem:[#allocation5] sm:$0xff] }
 0x44b   : > { %1763 = vst.msk [vmem:[#allocation5 + $0x20] sm:$0xff] %vm1760_vm3, %v1741_v34  ;;  %v1994_v34 = vld [vmem:[#allocation5 + $0x68] sm:$0xff] }
 0x44c   : > { %v1983_v60 = vld [vmem:[#allocation5 + $0x10] sm:$0xff]  ;;  %1812 = vst.msk [vmem:[#allocation5 + $0x20] sm:$0xff] %vm1809_vm4, %v1790_v36  ;;  %v2004_v40 = vpack.c.bf16 %v1996_v35, %v1994_v34 }
 0x44d   : > { %v1997_v61 = vpack.c.bf16 %v1983_v60, %v1981_v59  ;;  %1861 = vst.msk [vmem:[#allocation5 + $0x20] sm:$0xff] %vm1858_vm5, %v1839_v38  ;;  %v1653_v63 = vpop.permute.xlu1 %1652  ;;  %v1749_v0 = vpop.permute.xlu0 %1748 }
 0x44e   : > { %1910 = vst.msk [vmem:[#allocation5 + $0x20] sm:$0xff] %vm1907_vm6, %v1888_v45 }
 0x44f   : > { %1670 = vst.msk [vmem:[#allocation5 + $0x70] sm:$0xff] %vm1662_vm1, %v1653_v63  ;;  %2129 = vmatmul.mubr.bf16.vlgmr.msra.gmra.mrb[20].mxu0 %v1997_v61 }
 0x450   : > { %1959 = vst.msk [vmem:[#allocation5 + $0x20] sm:$0xff] %vm1956_vm7, %v1937_v47  ;;  %2432 = vmatprep.mubr.msk.bf16.mxu0 %vm1483_vm15, %v2000_v1 }
 0x451   : > { %v1702_v2 = vpop.permute.xlu1 %1701  ;;  %v1798_v32 = vpop.permute.xlu0 %1797 }
 0x452   : > { %1719 = vst.msk [vmem:[#allocation5 + $0x70] sm:$0xff] %vm1711_vm2, %v1702_v2 }
 0x455   : > { %v1890_v3 = vpop.permute.xlu1 %1889  ;;  %v1847_v4 = vpop.permute.xlu0 %1846 }
 0x456   : > { %1911 = vst.msk [vmem:[#allocation5 + $0x30] sm:$0xff] %vm1907_vm6, %v1890_v3 }
 0x457   : > { %v1985_v13 = vld [vmem:[#allocation5 + $0x20] sm:$0xff] }
 0x459   : > { %v1939_v5 = vpop.permute.xlu1 %1938  ;;  %v1745_v6 = vpop.permute.xlu0 %1744 }
 0x45a   : > { %1960 = vst.msk [vmem:[#allocation5 + $0x30] sm:$0xff] %vm1956_vm7, %v1939_v5 }
 0x45b   : > { %1765 = vst.msk [vmem:[#allocation5 + $0x40] sm:$0xff] %vm1760_vm3, %v1745_v6 }
 0x45d   : > { %v1649_v7 = vpop.permute.xlu1 %1648  ;;  %v1794_v9 = vpop.permute.xlu0 %1793 }
 0x45e   : > { %1668 = vst.msk [vmem:[#allocation5 + $0x50] sm:$0xff] %vm1662_vm1, %v1649_v7 }
 0x45f   : > { %1814 = vst.msk [vmem:[#allocation5 + $0x40] sm:$0xff] %vm1809_vm4, %v1794_v9 }
 0x461   : > { %v1698_v11 = vpop.permute.xlu1 %1697  ;;  %v1843_v12 = vpop.permute.xlu0 %1842  ;;  %v1987_v14 = vld [vmem:[#allocation5 + $0x30] sm:$0xff] }
 0x462   : > { %1717 = vst.msk [vmem:[#allocation5 + $0x50] sm:$0xff] %vm1711_vm2, %v1698_v11  ;;  %v1999_v15 = vpack.c.bf16 %v1987_v14, %v1985_v13 }
 0x463   : > { %1863 = vst.msk [vmem:[#allocation5 + $0x40] sm:$0xff] %vm1858_vm5, %v1843_v12 }
 0x464   : > { %2137 = vmatmul.mubr.bf16.gmra.mrb[24].mxu0 %v1999_v15  ;;  %v2435_v15 = vld [vmem:[%s3543_s10] ss:$0 sm:$0xff] }
 0x465   : > { %v1751_v28 = vpop.permute.xlu1 %1750  ;;  %2433 = vmatprep.mubr.msk.bf16.mxu0 %vm1483_vm15, %v2002_v18  ;;  %v1892_v19 = vpop.permute.xlu0 %1891 }
 0x466   : > { %1768 = vst.msk [vmem:[#allocation5 + $0x70] sm:$0xff] %vm1760_vm3, %v1751_v28 }
 0x467   : > { %1912 = vst.msk [vmem:[#allocation5 + $0x40] sm:$0xff] %vm1907_vm6, %v1892_v19 }
 0x469   : > { %v1800_v20 = vpop.permute.xlu1 %1799  ;;  %v1941_v21 = vpop.permute.xlu0 %1940 }
 0x46a   : > { %1817 = vst.msk [vmem:[#allocation5 + $0x70] sm:$0xff] %vm1809_vm4, %v1800_v20 }
 0x46b   : > { %1961 = vst.msk [vmem:[#allocation5 + $0x40] sm:$0xff] %vm1956_vm7, %v1941_v21 }
 0x46d   : > { %v1747_v23 = vpop.permute.xlu1 %1746  ;;  %v1651_v24 = vpop.permute.xlu0 %1650 }
 0x46e   : > { %1766 = vst.msk [vmem:[#allocation5 + $0x50] sm:$0xff] %vm1760_vm3, %v1747_v23 }
 0x46f   : > { %1669 = vst.msk [vmem:[#allocation5 + $0x60] sm:$0xff] %vm1662_vm1, %v1651_v24 }
 0x471   : > { %v1796_v25 = vpop.permute.xlu1 %1795  ;;  %v1700_v26 = vpop.permute.xlu0 %1699 }
 0x472   : > { %1815 = vst.msk [vmem:[#allocation5 + $0x50] sm:$0xff] %vm1809_vm4, %v1796_v25  ;;  %v1989_v36 = vld [vmem:[#allocation5 + $0x40] sm:$0xff] }
 0x473   : > { %1718 = vst.msk [vmem:[#allocation5 + $0x60] sm:$0xff] %vm1711_vm2, %v1700_v26 }
 0x474   : > { %1767 = vst.msk [vmem:[#allocation5 + $0x60] sm:$0xff] %vm1760_vm3, %v1749_v0 }
 0x475   : > { %1816 = vst.msk [vmem:[#allocation5 + $0x60] sm:$0xff] %vm1809_vm4, %v1798_v32  ;;  %v1845_v27 = vpop.permute.xlu1 %1844  ;;  %v1896_v29 = vpop.permute.xlu0 %1895 }
 0x476   : > { %1865 = vst.msk [vmem:[#allocation5 + $0x60] sm:$0xff] %vm1858_vm5, %v1847_v4  ;;  %1864 = vst.msk [vmem:[#allocation5 + $0x50] sm:$0xff] %vm1858_vm5, %v1845_v27 }
 0x477   : > { %1914 = vst.msk [vmem:[#allocation5 + $0x60] sm:$0xff] %vm1907_vm6, %v1896_v29  ;;  %1913 = vst.msk [vmem:[#allocation5 + $0x50] sm:$0xff] %vm1907_vm6, %v3449_v55 }
 0x478   : > { %1962 = vst.msk [vmem:[#allocation5 + $0x50] sm:$0xff] %vm1956_vm7, %v3452_v8 }
 0x479   : > { %v1849_v30 = vpop.permute.xlu1 %1848  ;;  %v1945_v31 = vpop.permute.xlu0 %1944 }
 0x47a   : > { %1866 = vst.msk [vmem:[#allocation5 + $0x70] sm:$0xff] %vm1858_vm5, %v1849_v30 }
 0x47b   : > { %1963 = vst.msk [vmem:[#allocation5 + $0x60] sm:$0xff] %vm1956_vm7, %v1945_v31 }
 0x47d   : > { %v1898_v33 = vpop.permute.xlu1 %1897 }
 0x47e   : > { %1915 = vst.msk [vmem:[#allocation5 + $0x70] sm:$0xff] %vm1907_vm6, %v1898_v33 }
 0x47f   : > { %v1991_v37 = vld [vmem:[#allocation5 + $0x50] sm:$0xff] }
 0x480   : > { %v2001_v38 = vpack.c.bf16 %v1991_v37, %v1989_v36 }
 0x481   : > { %v1947_v39 = vpop.permute.xlu1 %1946 }
 0x482   : > { %1964 = vst.msk [vmem:[#allocation5 + $0x70] sm:$0xff] %vm1956_vm7, %v1947_v39  ;;  %2145 = vmatmul.mubr.bf16.gmra.mrb[28].mxu0 %v2001_v38  ;;  %v1993_v22 = vld [vmem:[#allocation5 + $0x60] sm:$0xff] }
 0x483   : > { %2434 = vmatprep.mubr.msk.bf16.mxu0 %vm1483_vm15, %v2004_v40 }
 0x489   : > { %v1995_v41 = vld [vmem:[#allocation5 + $0x70] sm:$0xff] }
 0x48a   : > { %v2003_v42 = vpack.c.bf16 %v1995_v41, %v1993_v22 }
 0x48c   : > { %2153 = vmatmul.mubr.bf16.gmra.mrb[32].mxu0 %v2003_v42 }
 0x522   : > { %v2130_v45 = vpop.f32.mrb[20].mxu0 }
 0x523   : > { %v2131_v46 = vadd.f32 %v2421_v44, %v2130_v45  ;;  %v2132_v47 = vpop.f32.mrb[21].mxu0 }
 0x524   : > { %v2133_v48 = vpop.f32.mrb[22].mxu0 }
 0x525   : > { %v2134_v49 = vadd.f32 %v2421_v44, %v2133_v48  ;;  %v2135_v50 = vpop.f32.mrb[23].mxu0  ;;  %v2161_v51 = vmax.f32 %v2131_v46, 0.0 }
 0x527   : > { %v2162_v52 = vmax.f32 %v2134_v49, 0.0 }
 0x529   : > { %v2169_v17 = vpack.c.bf16 %v2162_v52, %v2161_v51 }
 0x52b   : > { %2548 = vmatprep.mubr.msk.bf16.mxu1 %vm1483_vm15, %v2169_v17 }
 0x537   : > { %v2138_v53 = vpop.f32.mrb[24].mxu0 }
 0x538   : > { %v2139_v54 = vadd.f32 %v2421_v44, %v2138_v53  ;;  %v2140_v55 = vpop.f32.mrb[25].mxu0 }
 0x539   : > { %v2141_v56 = vpop.f32.mrb[26].mxu0 }
 0x53a   : > { %v2142_v8 = vadd.f32 %v2421_v44, %v2141_v56  ;;  %v2143_v57 = vpop.f32.mrb[27].mxu0  ;;  %v2163_v58 = vmax.f32 %v2139_v54, 0.0 }
 0x53c   : > { %v2164_v59 = vmax.f32 %v2142_v8, 0.0 }
 0x53e   : > { %v2170_v60 = vpack.c.bf16 %v2164_v59, %v2163_v58 }
 0x540   : > { %2549 = vmatmul.mubr.msk.bf16.vlgmr.msra.gmra.mrb[28].mxu1 %vm1483_vm15, %v2170_v60 }
 0x555   : > { %v2146_v61 = vpop.f32.mrb[28].mxu0 }
 0x556   : > { %v2147_v62 = vadd.f32 %v2421_v44, %v2146_v61  ;;  %v2148_v63 = vpop.f32.mrb[29].mxu0 }
 0x557   : > { %v2149_v0 = vpop.f32.mrb[30].mxu0 }
 0x558   : > { %v2150_v1 = vadd.f32 %v2421_v44, %v2149_v0  ;;  %v2151_v2 = vpop.f32.mrb[31].mxu0  ;;  %v2165_v32 = vmax.f32 %v2147_v62, 0.0 }
 0x55a   : > { %v2166_v3 = vmax.f32 %v2150_v1, 0.0 }
 0x55c   : > { %v2171_v4 = vpack.c.bf16 %v2166_v3, %v2165_v32 }
 0x55e   : > { %2552 = vmatprep.mubr.msk.bf16.mxu1 %vm1483_vm15, %v2171_v4 }
 0x55f   : > { %v2154_v5 = vpop.f32.mrb[32].mxu0 }
 0x560   : > { %v2155_v6 = vadd.f32 %v2421_v44, %v2154_v5  ;;  %v2156_v7 = vpop.f32.mrb[33].mxu0 }
 0x561   : > { %v2157_v9 = vpop.f32.mrb[34].mxu0 }
 0x562   : > { %v2158_v10 = vadd.f32 %v2421_v44, %v2157_v9  ;;  %v2159_v11 = vpop.f32.mrb[35].mxu0  ;;  %v2167_v12 = vmax.f32 %v2155_v6, 0.0 }
 0x564   : > { %v2168_v13 = vmax.f32 %v2158_v10, 0.0 }
 0x566   : > { %v2172_v14 = vpack.c.bf16 %v2168_v13, %v2167_v12 }
 0x568   : > { %2553 = vmatmul.mubr.msk.bf16.gmra.mrb[32].mxu1 %vm1483_vm15, %v2172_v14 }
 0x613   : > { %v2550_v16 = vpop.f32.mrb[28].mxu1 }
 0x614   : > { %v2243_v18 = vadd.f32 %v2550_v16, %v2435_v15  ;;  %v2234_v28 = vpop.f32.mrb[29].mxu1 }
 0x615   : > { %v2551_v19 = vpop.f32.mrb[30].mxu1  ;;  %v2235_v23 = vadd.f32 %v2435_v15, %v2234_v28 }
 0x616   : > { %v2246_v20 = vadd.f32 %v2551_v19, %v2435_v15  ;;  %2277 = vrot.lane.b32.xlu0 %v2243_v18, %s2628_s28  ;;  %v2237_v21 = vpop.f32.mrb[31].mxu1 }
 0x617   : > { %v2238_v24 = vadd.f32 %v2435_v15, %v2237_v21 }
 0x618   : > { %2279 = vrot.lane.b32.xlu1 %v2246_v20, %s2628_s28 }
 0x61a   : > { %2273 = vrot.lane.b32.xlu0 %v2235_v23, %s2628_s28 }
 0x61c   : > { %2275 = vrot.lane.b32.xlu1 %v2238_v24, %s2628_s28 }
 0x63b   : > { %v2554_v25 = vpop.f32.mrb[32].mxu1 }
 0x63c   : > { %v2250_v26 = vpop.f32.mrb[33].mxu1  ;;  %v2259_v33 = vadd.f32 %v2554_v25, %v2435_v15 }
 0x63d   : > { %v2251_v27 = vadd.f32 %v2435_v15, %v2250_v26  ;;  %v2555_v29 = vpop.f32.mrb[34].mxu1 }
 0x63e   : > { %v2253_v30 = vpop.f32.mrb[35].mxu1  ;;  %v2262_v34 = vadd.f32 %v2555_v29, %v2435_v15 }
 0x63f   : > { %v2254_v31 = vadd.f32 %v2435_v15, %v2253_v30  ;;  %2281 = vrot.lane.b32.xlu0 %v2251_v27, %s2628_s28 }
 0x641   : > { %2283 = vrot.lane.b32.xlu1 %v2254_v31, %s2628_s28 }
 0x643   : > { %2285 = vrot.lane.b32.xlu0 %v2259_v33, %s2628_s28 }
 0x645   : > { %2287 = vrot.lane.b32.xlu1 %v2262_v34, %s2628_s28 }
 0x688   : > { %v2278_v35 = vpop.permute.xlu0 %2277 }
 0x689   : > { %2300 = vst.msk [vmem:[%s3250_s26 + $0x10] sm:$0xff] %vm2297_vm8, %v2278_v35 }
 0x68a   : > { %v2280_v36 = vpop.permute.xlu1 %2279 }
 0x68b   : > { %2301 = vst.msk [vmem:[%s3250_s26 + $0x18] sm:$0xff] %vm2297_vm8, %v2280_v36 }
 0x68c   : > { %v2274_v37 = vpop.permute.xlu0 %2273 }
 0x68d   : > { %2298 = vst.msk [vmem:[%s3250_s26] sm:$0xff] %vm2297_vm8, %v2274_v37 }
 0x68e   : > { %v2276_v38 = vpop.permute.xlu1 %2275 }
 0x68f   : > { %2299 = vst.msk [vmem:[%s3250_s26 + $0x8] sm:$0xff] %vm2297_vm8, %v2276_v38 }
 0x6b1   : > { %v2282_v39 = vpop.permute.xlu0 %2281 }
 0x6b2   : > { %2302 = vst.msk [vmem:[%s3250_s26 + $0x20] sm:$0xff] %vm2297_vm8, %v2282_v39 }
 0x6b3   : > { %v2284_v40 = vpop.permute.xlu1 %2283 }
 0x6b4   : > { %2303 = vst.msk [vmem:[%s3250_s26 + $0x28] sm:$0xff] %vm2297_vm8, %v2284_v40 }
 0x6b5   : > { %v2286_v22 = vpop.permute.xlu0 %2285 }
 0x6b6   : > { %2304 = vst.msk [vmem:[%s3250_s26 + $0x30] sm:$0xff] %vm2297_vm8, %v2286_v22 }
 0x6b7   : > { %v2288_v41 = vpop.permute.xlu1 %2287 }
 0x6b8   : > { %2305 = vst.msk [vmem:[%s3250_s26 + $0x38] sm:$0xff] %vm2297_vm8, %v2288_v41 }
 0x6b9 PF: > { %s21_s17 = sadd.s32 1, %s2623_s17  }
 0x6ba   : > { %p18_p4 = scmp.ge.s32.totalorder %s21_s17, 4  }
 0x6bc   :  { %20 = sbr.rel (!%p18_p4) target bundleno = 1 (0x1), region = 136 }

</bundles_post_ra>
